<compile_context>
chip_gen: v5e
topology: v5e:2x2
jax: 0.10.0
libtpu: 0.0.40
codegen_flags: <defaults>
</compile_context>

<pallas_src>
import functools

import jax
import jax.numpy as jnp
from jax.experimental import pallas as pl
from jax.experimental.pallas import tpu as pltpu


# -----------------------------------------------------------------------------
# Synthetic module_defs (what parse_model_config would have produced), scaled
# down: input 4 channels, 64x64 image, two YOLO heads (stride 32 and 16).
# -----------------------------------------------------------------------------
ANCHORS = "10,13, 16,30, 33,23, 30,61, 62,45, 59,119, 116,90, 156,198, 373,326"

MODULE_DEFS = [
    {"type": "net", "channels": "4", "height": 64},
    # 0..4: backbone
    {"type": "convolutional", "batch_normalize": "1", "filters": "8",  "size": "3", "stride": "2", "pad": "1", "activation": "leaky"},
    {"type": "convolutional", "batch_normalize": "1", "filters": "16", "size": "3", "stride": "2", "pad": "1", "activation": "leaky"},
    {"type": "convolutional", "batch_normalize": "1", "filters": "32", "size": "3", "stride": "2", "pad": "1", "activation": "leaky"},
    {"type": "convolutional", "batch_normalize": "1", "filters": "16", "size": "1", "stride": "1", "pad": "1", "activation": "leaky"},
    {"type": "convolutional", "batch_normalize": "1", "filters": "32", "size": "3", "stride": "1", "pad": "1", "activation": "leaky"},
    # 5: residual
    {"type": "shortcut", "from": "-3", "activation": "linear"},
    # 6..8: head @ stride 32
    {"type": "convolutional", "batch_normalize": "1", "filters": "32", "size": "3", "stride": "2", "pad": "1", "activation": "leaky"},
    {"type": "convolutional", "batch_normalize": "1", "filters": "64", "size": "3", "stride": "2", "pad": "1", "activation": "leaky"},
    {"type": "convolutional", "batch_normalize": "0", "filters": "21", "size": "1", "stride": "1", "pad": "1", "activation": "linear"},
    # 9: yolo (nA=3, nC=2 -> 21 = 3*(5+2)), mask[0]==6==2*nA -> stride 32
    {"type": "yolo", "mask": "6,7,8", "anchors": ANCHORS, "classes": "2"},
    # 10..15: second head @ stride 16 (route back, upsample, concat)
    {"type": "route", "layers": "-3"},
    {"type": "convolutional", "batch_normalize": "1", "filters": "32", "size": "1", "stride": "1", "pad": "1", "activation": "leaky"},
    {"type": "upsample", "stride": "2"},
    {"type": "route", "layers": "-1,6"},
    {"type": "convolutional", "batch_normalize": "1", "filters": "32", "size": "3", "stride": "1", "pad": "1", "activation": "leaky"},
    {"type": "convolutional", "batch_normalize": "0", "filters": "21", "size": "1", "stride": "1", "pad": "1", "activation": "linear"},
    # 16: yolo, mask[0]==3==nA -> stride 16
    {"type": "yolo", "mask": "3,4,5", "anchors": ANCHORS, "classes": "2"},
]


_LANE = 128         # pad Cout to a multiple of this -> lane-dense, unmasked stores
_K_ALIGN = 16       # bf16 sublane alignment for the contraction dim
_MAX_M_TILE = 2048


def _round_up(x, m):
    return ((x + m - 1) // m) * m


def _choose_tm(m):
    """M-tile: big tiles (low per-step overhead); >= 2 steps once m >= 512 so a
    "parallel" M axis can be split across v7x's two TensorCores."""
    if m >= 512:
        return min(_MAX_M_TILE, _round_up((m + 1) // 2, 16))
    return _round_up(m, 8)


# -----------------------------------------------------------------------------
# Pallas kernel: one M-tile of the fused conv
# -----------------------------------------------------------------------------
def _conv_kernel(a_ref, w_ref, b_ref, *rest, leaky, has_residual):
    """bf16 matmul (f32 acc) + bias (+ optional residual) + LeakyReLU, bf16 store.

    a_ref: (tm, K_pad) bf16 im2col rows   w_ref: (K_pad, Cout_pad) bf16 (BN folded)
    b_ref: (1, Cout_pad) f32 bias         optional r_ref: (tm, Cout_pad) bf16 residual
    o_ref: (tm, Cout_pad) bf16
    """
    if has_residual:
        r_ref, o_ref = rest
    else:
        (o_ref,) = rest
    acc = jnp.dot(a_ref[...], w_ref[...], preferred_element_type=jnp.float32)
    y = acc + b_ref[...]                       # (tm, Cout_pad) + (1, Cout_pad)
    if leaky:
        y = jnp.maximum(y, 0.1 * y)            # LeakyReLU(0.1), single VPU op
    if has_residual:                           # residual added AFTER activation (PyTorch order)
        y = y + r_ref[...].astype(jnp.float32)
    o_ref[...] = y.astype(o_ref.dtype)


# -----------------------------------------------------------------------------
# Layer wrappers (glue in plain JAX, hot path inside the Pallas kernel above)
# -----------------------------------------------------------------------------
def _im2col_nhwc(x, k, stride, pad):
    """x: (N, H, W, C) -> (N*Hout*Wout, k*k*C), feature order (ki, kj, c)."""
    n, h, w, c = x.shape
    if k == 1 and stride == 1 and pad == 0:    # 1x1 conv: pure reshape, no expansion
        return x.reshape(n * h * w, c), h, w
    hp, wp = h + 2 * pad, w + 2 * pad
    hout = (hp - k) // stride + 1
    wout = (wp - k) // stride + 1
    xp = jnp.pad(x, ((0, 0), (pad, pad), (pad, pad), (0, 0))) if pad else x
    cols = []
    for ki in range(k):
        for kj in range(k):
            cols.append(
                xp[:, ki:ki + stride * hout:stride, kj:kj + stride * wout:stride, :]
            )  # (N, Hout, Wout, C)
    col = jnp.concatenate(cols, axis=-1)                   # (N, Hout, Wout, k*k*C)
    return col.reshape(n * hout * wout, k * k * c), hout, wout


def conv_bn_leaky(x, wmat, bias2d, cout, ksize, stride, pad, leaky, residual=None):
    """x NHWC bf16 (N,H,W,Cin); wmat (K_pad, Cout_pad) bf16 pre-packed with BN
    scale folded in; bias2d (1, Cout_pad) f32. Returns NHWC bf16 (N,Hout,Wout,cout)."""
    n = x.shape[0]
    k_pad, cout_pad = wmat.shape
    col, hout, wout = _im2col_nhwc(x, ksize, stride, pad)   # bf16 (m, K)
    m, k = col.shape
    if k_pad != k:
        col = jnp.pad(col, ((0, 0), (0, k_pad - k)))
    tm = _choose_tm(m)
    m_pad = _round_up(m, tm)
    if m_pad != m:
        col = jnp.pad(col, ((0, m_pad - m), (0, 0)))

    in_specs = [
        pl.BlockSpec((tm, k_pad), lambda i: (i, 0)),          # A tile, streamed over M
        pl.BlockSpec((k_pad, cout_pad), lambda i: (0, 0)),    # weights, stay resident
        pl.BlockSpec((1, cout_pad), lambda i: (0, 0)),        # bias, stays resident
    ]
    args = [col, wmat, bias2d]
    has_residual = residual is not None
    if has_residual:
        res = residual.reshape(m, residual.shape[-1]).astype(jnp.bfloat16)
        pc, pm = cout_pad - res.shape[-1], m_pad - m
        if pc or pm:
            res = jnp.pad(res, ((0, pm), (0, pc)))
        in_specs.append(pl.BlockSpec((tm, cout_pad), lambda i: (i, 0)))
        args.append(res)

    out = pl.pallas_call(
        functools.partial(_conv_kernel, leaky=leaky, has_residual=has_residual),
        out_shape=jax.ShapeDtypeStruct((m_pad, cout_pad), jnp.bfloat16),
        grid=(m_pad // tm,),
        in_specs=in_specs,
        out_specs=pl.BlockSpec((tm, cout_pad), lambda i: (i, 0)),
        compiler_params=pltpu.CompilerParams(dimension_semantics=("parallel",)),
    )(*args)
    return out[:m, :cout].reshape(n, hout, wout, cout)


def yolo_head(p, anchors, n_classes, img_dim):
    """p NHWC (bs, nG, nG, nA*(5+nC)) -> (bs, nA*nG*nG, 5+nC) decoded detections.

    Plain JAX (per review): 12/48 detections per head is far below one 128-lane
    vreg, so a dedicated Pallas launch costs more than letting XLA fuse it.
    """
    bs, ng = p.shape[0], p.shape[1]
    na = len(anchors)
    bbox = 5 + n_classes
    stride = float(img_dim) / float(ng)
    pr = p.astype(jnp.float32).reshape(bs, ng, ng, na, bbox)
    pr = pr.transpose(0, 3, 1, 2, 4)                        # (bs, nA, gy, gx, attr)
    ar = jnp.arange(ng, dtype=jnp.float32)
    gx = ar.reshape(1, 1, 1, ng)
    gy = ar.reshape(1, 1, ng, 1)
    sa = jnp.asarray([(aw / stride, ah / stride) for aw, ah in anchors], jnp.float32)
    aw = sa[:, 0].reshape(1, na, 1, 1)
    ah = sa[:, 1].reshape(1, na, 1, 1)
    bx = jax.nn.sigmoid(pr[..., 0]) + gx
    by = jax.nn.sigmoid(pr[..., 1]) + gy
    bw = jnp.exp(pr[..., 2]) * aw
    bh = jnp.exp(pr[..., 3]) * ah
    boxes = jnp.stack([bx, by, bw, bh], axis=-1) * stride   # (bs, nA, nG, nG, 4)
    conf = jax.nn.sigmoid(pr[..., 4:5])
    cls_logits = pr[..., 5:]                                # raw class logits (inference path)
    return jnp.concatenate([boxes.reshape(bs, -1, 4),
                            conf.reshape(bs, -1, 1),
                            cls_logits.reshape(bs, -1, n_classes)], axis=-1)


# -----------------------------------------------------------------------------
# Parameter init (deterministic, synthetic) + one-time packing for the kernel
# -----------------------------------------------------------------------------
def init_darknet_params(module_defs, key):
    """Raw PyTorch-equivalent parameters (conv weight, eval-mode BN stats / bias)."""
    in_ch = int(module_defs[0]["channels"])
    layer_ch = []
    params = {}
    prev = in_ch
    for i, md in enumerate(module_defs[1:]):
        t = md["type"]
        if t == "convolutional":
            bn = int(md["batch_normalize"])
            f = int(md["filters"])
            k = int(md["size"])
            kk = jax.random.fold_in(key, i)
            fan_in = prev * k * k
            w = jax.random.normal(jax.random.fold_in(kk, 0), (f, prev, k, k),
                                  jnp.float32) * (1.0 / jnp.sqrt(fan_in))
            if bn:
                gamma = 1.0 + 0.1 * jax.random.normal(jax.random.fold_in(kk, 1), (f,), jnp.float32)
                beta = 0.1 * jax.random.normal(jax.random.fold_in(kk, 2), (f,), jnp.float32)
                rmean = 0.1 * jax.random.normal(jax.random.fold_in(kk, 3), (f,), jnp.float32)
                rvar = 1.0 + 0.1 * jnp.abs(jax.random.normal(jax.random.fold_in(kk, 4), (f,), jnp.float32))
                scale = gamma / jnp.sqrt(rvar + 1e-5)
                bias = beta - rmean * scale
            else:
                scale = jnp.ones((f,), jnp.float32)
                bias = 0.1 * jax.random.normal(jax.random.fold_in(kk, 1), (f,), jnp.float32)
            params[i] = {"w": w, "scale": scale, "bias": bias}
            out_c = f
        elif t == "upsample":
            out_c = prev
        elif t == "route":
            layers = [int(v) for v in md["layers"].split(",")]
            out_c = sum(layer_ch[li] for li in layers)
        elif t == "shortcut":
            out_c = layer_ch[-1]
        elif t == "yolo":
            out_c = prev
        else:
            raise ValueError(t)
        layer_ch.append(out_c)
        prev = out_c
    return params


def prepare_params(raw_params):
    """One-time prep (hoisted out of the forward): fold BN scale into the weight
    matrix, lay it out (ki,kj,c)->cout, pad Cout to a lane-dense 128 multiple,
    align K to 16 for bf16 sublane packing, cast to bf16; pad the bias."""
    prepped = {}
    for i, p in raw_params.items():
        w, scale, bias = p["w"], p["scale"], p["bias"]
        cout, cin, kh, kw = w.shape
        k = kh * kw * cin
        k_pad = _round_up(k, _K_ALIGN)
        cout_pad = _round_up(cout, _LANE)
        wmat = jnp.transpose(w, (2, 3, 1, 0)).reshape(k, cout) * scale[None, :]
        wmat = jnp.pad(wmat, ((0, k_pad - k), (0, cout_pad - cout))).astype(jnp.bfloat16)
        b = jnp.pad(bias, (0, cout_pad - cout)).reshape(1, cout_pad).astype(jnp.float32)
        prepped[i] = {"wmat": wmat, "bias": b}
    return prepped


# -----------------------------------------------------------------------------
# Darknet forward driver
# -----------------------------------------------------------------------------
def _later_references(mds, start):
    """Absolute layer indices referenced by any route/shortcut at index >= start."""
    refs = set()
    for j in range(start, len(mds)):
        md = mds[j]
        if md["type"] == "route":
            for v in md["layers"].split(","):
                li = int(v)
                refs.add(li if li >= 0 else j + li)
        elif md["type"] == "shortcut":
            li = int(md["from"])
            refs.add(li if li >= 0 else j + li)
            refs.add(j - 1)
    return refs


def darknet_forward(params, x, module_defs=MODULE_DEFS):
    img_size = int(module_defs[0]["height"])
    mds = module_defs[1:]
    # NCHW -> NHWC and f32 -> bf16 exactly once, at the model boundary.
    x = jnp.transpose(x, (0, 2, 3, 1)).astype(jnp.bfloat16)
    layer_outputs = []
    yolo_outputs = []
    fused_shortcut = set()
    for i, md in enumerate(mds):
        t = md["type"]
        if t == "convolutional":
            p = params[i]
            ks = int(md["size"])
            pad = (ks - 1) // 2 if int(md["pad"]) else 0
            st = int(md["stride"])
            leaky = md["activation"] == "leaky"
            cout = int(md["filters"])
            residual = None
            # Fuse an immediately-following shortcut into this conv's Pallas
            # epilogue.  Only safe if no later route/shortcut references this
            # conv's pre-add output (layer_outputs[i] holds the post-add tensor).
            if i + 1 < len(mds) and mds[i + 1]["type"] == "shortcut":
                ri = int(mds[i + 1]["from"])
                ri = ri if ri >= 0 else (i + 1) + ri
                cand = layer_outputs[ri]
                if (st == 1 and cand.shape[1:3] == x.shape[1:3]
                        and cand.shape[3] == cout
                        and i not in _later_references(mds, i + 2)):
                    residual = cand
                    fused_shortcut.add(i + 1)
            x = conv_bn_leaky(x, p["wmat"], p["bias"], cout, ks, st, pad, leaky,
                              residual=residual)
        elif t == "upsample":
            s = int(md["stride"])
            # TODO(synk): fold nearest-upsample into the consumer conv's gather.
            x = jnp.repeat(jnp.repeat(x, s, axis=1), s, axis=2)
        elif t == "route":
            layers = [int(v) for v in md["layers"].split(",")]
            x = jnp.concatenate([layer_outputs[li] for li in layers], axis=-1)
        elif t == "shortcut":
            if i not in fused_shortcut:
                li = int(md["from"])
                x = layer_outputs[-1] + layer_outputs[li]
            # else: already added inside the previous conv's Pallas epilogue.
        elif t == "yolo":
            anchor_idxs = [int(v) for v in md["mask"].split(",")]
            a = [float(v) for v in md["anchors"].split(",")]
            anchors = [(a[j], a[j + 1]) for j in range(0, len(a), 2)]
            anchors = [anchors[j] for j in anchor_idxs]
            x = yolo_head(x, anchors, int(md["classes"]), img_size)
            yolo_outputs.append(x)
        layer_outputs.append(x)
    # Inference path: concatenate detections from all yolo heads along dim 1.
    return jnp.concatenate(yolo_outputs, axis=1)


# -----------------------------------------------------------------------------
if __name__ == "__main__":
    key = jax.random.PRNGKey(0)
    raw_params = init_darknet_params(MODULE_DEFS, jax.random.fold_in(key, 1))
    params = prepare_params(raw_params)        # one-time weight packing, outside forward

    batch = 2
    channels = int(MODULE_DEFS[0]["channels"])
    img = int(MODULE_DEFS[0]["height"])
    x = jax.random.normal(jax.random.fold_in(key, 2), (batch, channels, img, img),
                          jnp.float32)

    fwd = jax.jit(darknet_forward)
    out = jax.block_until_ready(fwd(params, x))

    # head1: 3 anchors * 2*2 cells = 12 rows; head2: 3 * 4*4 = 48 rows; attrs = 5+2
    assert out.shape == (batch, 60, 7), out.shape
    assert bool(jnp.all(jnp.isfinite(out)))
    print("KERNEL_OK")
</pallas_src>

<mosaic_0001>
module attributes {stable_mosaic.version = 11 : i64} {
  func.func @_conv_kernel(%arg0: i32, %arg1: memref<1024x48xbf16, #tpu.memory_space<vmem>>, %arg2: memref<48x128xbf16, #tpu.memory_space<vmem>>, %arg3: memref<1x128xf32, #tpu.memory_space<vmem>>, %arg4: memref<1024x128xbf16, #tpu.memory_space<vmem>>) attributes {dimension_semantics = [#tpu.dimension_semantics<parallel>], iteration_bounds = array<i64: 2>, scalar_prefetch = 0 : i64, scratch_operands = 0 : i64, tpu.core_type = #tpu.core_type<tc>, window_params = [{transform_indices = @transform_0, window_bounds = array<i64: 1024, 48>}, {pipeline_mode = #tpu.pipeline_mode<synchronous>, transform_indices = @transform_1, window_bounds = array<i64: 48, 128>}, {pipeline_mode = #tpu.pipeline_mode<synchronous>, transform_indices = @transform_2, window_bounds = array<i64: 1, 128>}, {transform_indices = @transform_3, window_bounds = array<i64: 1024, 128>}]} {
    %c0 = arith.constant 0 : index
    %c0_0 = arith.constant 0 : index
    %0 = vector.load %arg1[%c0, %c0_0] : memref<1024x48xbf16, #tpu.memory_space<vmem>>, vector<1024x48xbf16>
    %c0_1 = arith.constant 0 : index
    %c0_2 = arith.constant 0 : index
    %1 = vector.load %arg2[%c0_1, %c0_2] : memref<48x128xbf16, #tpu.memory_space<vmem>>, vector<48x128xbf16>
    %cst = arith.constant dense<0.000000e+00> : vector<1024x128xf32>
    %2 = tpu.matmul %0, %1, %cst {dimension_numbers = #tpu.dot_dimension_numbers<[1], [0], [0], [1], [0, 0, 1, 1], [], []>} : vector<1024x48xbf16>, vector<48x128xbf16>, vector<1024x128xf32> -> vector<1024x128xf32>
    %c0_3 = arith.constant 0 : index
    %c0_4 = arith.constant 0 : index
    %3 = vector.load %arg3[%c0_3, %c0_4] : memref<1x128xf32, #tpu.memory_space<vmem>>, vector<1x128xf32>
    %4 = vector.broadcast %3 : vector<1x128xf32> to vector<1024x128xf32>
    %5 = arith.addf %2, %4 : vector<1024x128xf32>
    %cst_5 = arith.constant 1.000000e-01 : f32
    %6 = vector.broadcast %cst_5 : f32 to vector<1024x128xf32>
    %7 = arith.mulf %6, %5 : vector<1024x128xf32>
    %8 = arith.maximumf %5, %7 : vector<1024x128xf32>
    %9 = arith.truncf %8 : vector<1024x128xf32> to vector<1024x128xbf16>
    %c0_6 = arith.constant 0 : index
    %c0_7 = arith.constant 0 : index
    %10 = vector.load %arg4[%c0_6, %c0_7] : memref<1024x128xbf16, #tpu.memory_space<vmem>>, vector<1024x128xbf16>
    tpu.vector_store %arg4[%c0_6, %c0_7], %9 {strides = array<i32>} : memref<1024x128xbf16, #tpu.memory_space<vmem>>, vector<1024x128xbf16>,
    return
  }
  func.func @transform_0(%arg0: i32) -> (i32, i32) {
    %c0_i32 = arith.constant 0 : i32
    %c0_i32_0 = arith.constant 0 : i32
    return %arg0, %c0_i32 : i32, i32
  }
  func.func @transform_1(%arg0: i32) -> (i32, i32) {
    %c0_i32 = arith.constant 0 : i32
    %c0_i32_0 = arith.constant 0 : i32
    %c0_i32_1 = arith.constant 0 : i32
    return %c0_i32, %c0_i32_0 : i32, i32
  }
  func.func @transform_2(%arg0: i32) -> (i32, i32) {
    %c0_i32 = arith.constant 0 : i32
    %c0_i32_0 = arith.constant 0 : i32
    %c0_i32_1 = arith.constant 0 : i32
    return %c0_i32, %c0_i32_0 : i32, i32
  }
  func.func @transform_3(%arg0: i32) -> (i32, i32) {
    %c0_i32 = arith.constant 0 : i32
    %c0_i32_0 = arith.constant 0 : i32
    return %arg0, %c0_i32 : i32, i32
  }
}

module attributes {stable_mosaic.version = 11 : i64} {
  func.func @_conv_kernel(%arg0: i32, %arg1: memref<256x80xbf16, #tpu.memory_space<vmem>>, %arg2: memref<80x128xbf16, #tpu.memory_space<vmem>>, %arg3: memref<1x128xf32, #tpu.memory_space<vmem>>, %arg4: memref<256x128xbf16, #tpu.memory_space<vmem>>) attributes {dimension_semantics = [#tpu.dimension_semantics<parallel>], iteration_bounds = array<i64: 2>, scalar_prefetch = 0 : i64, scratch_operands = 0 : i64, tpu.core_type = #tpu.core_type<tc>, window_params = [{transform_indices = @transform_0, window_bounds = array<i64: 256, 80>}, {pipeline_mode = #tpu.pipeline_mode<synchronous>, transform_indices = @transform_1, window_bounds = array<i64: 80, 128>}, {pipeline_mode = #tpu.pipeline_mode<synchronous>, transform_indices = @transform_2, window_bounds = array<i64: 1, 128>}, {transform_indices = @transform_3, window_bounds = array<i64: 256, 128>}]} {
    %c0 = arith.constant 0 : index
    %c0_0 = arith.constant 0 : index
    %0 = vector.load %arg1[%c0, %c0_0] : memref<256x80xbf16, #tpu.memory_space<vmem>>, vector<256x80xbf16>
    %c0_1 = arith.constant 0 : index
    %c0_2 = arith.constant 0 : index
    %1 = vector.load %arg2[%c0_1, %c0_2] : memref<80x128xbf16, #tpu.memory_space<vmem>>, vector<80x128xbf16>
    %cst = arith.constant dense<0.000000e+00> : vector<256x128xf32>
    %2 = tpu.matmul %0, %1, %cst {dimension_numbers = #tpu.dot_dimension_numbers<[1], [0], [0], [1], [0, 0, 1, 1], [], []>} : vector<256x80xbf16>, vector<80x128xbf16>, vector<256x128xf32> -> vector<256x128xf32>
    %c0_3 = arith.constant 0 : index
    %c0_4 = arith.constant 0 : index
    %3 = vector.load %arg3[%c0_3, %c0_4] : memref<1x128xf32, #tpu.memory_space<vmem>>, vector<1x128xf32>
    %4 = vector.broadcast %3 : vector<1x128xf32> to vector<256x128xf32>
    %5 = arith.addf %2, %4 : vector<256x128xf32>
    %cst_5 = arith.constant 1.000000e-01 : f32
    %6 = vector.broadcast %cst_5 : f32 to vector<256x128xf32>
    %7 = arith.mulf %6, %5 : vector<256x128xf32>
    %8 = arith.maximumf %5, %7 : vector<256x128xf32>
    %9 = arith.truncf %8 : vector<256x128xf32> to vector<256x128xbf16>
    %c0_6 = arith.constant 0 : index
    %c0_7 = arith.constant 0 : index
    %10 = vector.load %arg4[%c0_6, %c0_7] : memref<256x128xbf16, #tpu.memory_space<vmem>>, vector<256x128xbf16>
    tpu.vector_store %arg4[%c0_6, %c0_7], %9 {strides = array<i32>} : memref<256x128xbf16, #tpu.memory_space<vmem>>, vector<256x128xbf16>,
    return
  }
  func.func @transform_0(%arg0: i32) -> (i32, i32) {
    %c0_i32 = arith.constant 0 : i32
    %c0_i32_0 = arith.constant 0 : i32
    return %arg0, %c0_i32 : i32, i32
  }
  func.func @transform_1(%arg0: i32) -> (i32, i32) {
    %c0_i32 = arith.constant 0 : i32
    %c0_i32_0 = arith.constant 0 : i32
    %c0_i32_1 = arith.constant 0 : i32
    return %c0_i32, %c0_i32_0 : i32, i32
  }
  func.func @transform_2(%arg0: i32) -> (i32, i32) {
    %c0_i32 = arith.constant 0 : i32
    %c0_i32_0 = arith.constant 0 : i32
    %c0_i32_1 = arith.constant 0 : i32
    return %c0_i32, %c0_i32_0 : i32, i32
  }
  func.func @transform_3(%arg0: i32) -> (i32, i32) {
    %c0_i32 = arith.constant 0 : i32
    %c0_i32_0 = arith.constant 0 : i32
    return %arg0, %c0_i32 : i32, i32
  }
}

module attributes {stable_mosaic.version = 11 : i64} {
  func.func @_conv_kernel(%arg0: i32, %arg1: memref<128x32xbf16, #tpu.memory_space<vmem>>, %arg2: memref<32x128xbf16, #tpu.memory_space<vmem>>, %arg3: memref<1x128xf32, #tpu.memory_space<vmem>>, %arg4: memref<128x128xbf16, #tpu.memory_space<vmem>>) attributes {dimension_semantics = [#tpu.dimension_semantics<parallel>], iteration_bounds = array<i64: 1>, scalar_prefetch = 0 : i64, scratch_operands = 0 : i64, tpu.core_type = #tpu.core_type<tc>, window_params = [{transform_indices = @transform_0, window_bounds = array<i64: 128, 32>}, {pipeline_mode = #tpu.pipeline_mode<synchronous>, transform_indices = @transform_1, window_bounds = array<i64: 32, 128>}, {pipeline_mode = #tpu.pipeline_mode<synchronous>, transform_indices = @transform_2, window_bounds = array<i64: 1, 128>}, {transform_indices = @transform_3, window_bounds = array<i64: 128, 128>}]} {
    %c0 = arith.constant 0 : index
    %c0_0 = arith.constant 0 : index
    %0 = vector.load %arg1[%c0, %c0_0] : memref<128x32xbf16, #tpu.memory_space<vmem>>, vector<128x32xbf16>
    %c0_1 = arith.constant 0 : index
    %c0_2 = arith.constant 0 : index
    %1 = vector.load %arg2[%c0_1, %c0_2] : memref<32x128xbf16, #tpu.memory_space<vmem>>, vector<32x128xbf16>
    %cst = arith.constant dense<0.000000e+00> : vector<128x128xf32>
    %2 = tpu.matmul %0, %1, %cst {dimension_numbers = #tpu.dot_dimension_numbers<[1], [0], [0], [1], [0, 0, 1, 1], [], []>} : vector<128x32xbf16>, vector<32x128xbf16>, vector<128x128xf32> -> vector<128x128xf32>
    %c0_3 = arith.constant 0 : index
    %c0_4 = arith.constant 0 : index
    %3 = vector.load %arg3[%c0_3, %c0_4] : memref<1x128xf32, #tpu.memory_space<vmem>>, vector<1x128xf32>
    %4 = vector.broadcast %3 : vector<1x128xf32> to vector<128x128xf32>
    %5 = arith.addf %2, %4 : vector<128x128xf32>
    %cst_5 = arith.constant 1.000000e-01 : f32
    %6 = vector.broadcast %cst_5 : f32 to vector<128x128xf32>
    %7 = arith.mulf %6, %5 : vector<128x128xf32>
    %8 = arith.maximumf %5, %7 : vector<128x128xf32>
    %9 = arith.truncf %8 : vector<128x128xf32> to vector<128x128xbf16>
    %c0_6 = arith.constant 0 : index
    %c0_7 = arith.constant 0 : index
    %10 = vector.load %arg4[%c0_6, %c0_7] : memref<128x128xbf16, #tpu.memory_space<vmem>>, vector<128x128xbf16>
    tpu.vector_store %arg4[%c0_6, %c0_7], %9 {strides = array<i32>} : memref<128x128xbf16, #tpu.memory_space<vmem>>, vector<128x128xbf16>,
    return
  }
  func.func @transform_0(%arg0: i32) -> (i32, i32) {
    %c0_i32 = arith.constant 0 : i32
    %c0_i32_0 = arith.constant 0 : i32
    return %arg0, %c0_i32 : i32, i32
  }
  func.func @transform_1(%arg0: i32) -> (i32, i32) {
    %c0_i32 = arith.constant 0 : i32
    %c0_i32_0 = arith.constant 0 : i32
    %c0_i32_1 = arith.constant 0 : i32
    return %c0_i32, %c0_i32_0 : i32, i32
  }
  func.func @transform_2(%arg0: i32) -> (i32, i32) {
    %c0_i32 = arith.constant 0 : i32
    %c0_i32_0 = arith.constant 0 : i32
    %c0_i32_1 = arith.constant 0 : i32
    return %c0_i32, %c0_i32_0 : i32, i32
  }
  func.func @transform_3(%arg0: i32) -> (i32, i32) {
    %c0_i32 = arith.constant 0 : i32
    %c0_i32_0 = arith.constant 0 : i32
    return %arg0, %c0_i32 : i32, i32
  }
}

module attributes {stable_mosaic.version = 11 : i64} {
  func.func @_conv_kernel(%arg0: i32, %arg1: memref<128x144xbf16, #tpu.memory_space<vmem>>, %arg2: memref<144x128xbf16, #tpu.memory_space<vmem>>, %arg3: memref<1x128xf32, #tpu.memory_space<vmem>>, %arg4: memref<128x128xbf16, #tpu.memory_space<vmem>>) attributes {dimension_semantics = [#tpu.dimension_semantics<parallel>], iteration_bounds = array<i64: 1>, scalar_prefetch = 0 : i64, scratch_operands = 0 : i64, tpu.core_type = #tpu.core_type<tc>, window_params = [{transform_indices = @transform_0, window_bounds = array<i64: 128, 144>}, {pipeline_mode = #tpu.pipeline_mode<synchronous>, transform_indices = @transform_1, window_bounds = array<i64: 144, 128>}, {pipeline_mode = #tpu.pipeline_mode<synchronous>, transform_indices = @transform_2, window_bounds = array<i64: 1, 128>}, {transform_indices = @transform_3, window_bounds = array<i64: 128, 128>}]} {
    %c0 = arith.constant 0 : index
    %c0_0 = arith.constant 0 : index
    %0 = vector.load %arg1[%c0, %c0_0] : memref<128x144xbf16, #tpu.memory_space<vmem>>, vector<128x144xbf16>
    %c0_1 = arith.constant 0 : index
    %c0_2 = arith.constant 0 : index
    %1 = vector.load %arg2[%c0_1, %c0_2] : memref<144x128xbf16, #tpu.memory_space<vmem>>, vector<144x128xbf16>
    %cst = arith.constant dense<0.000000e+00> : vector<128x128xf32>
    %2 = tpu.matmul %0, %1, %cst {dimension_numbers = #tpu.dot_dimension_numbers<[1], [0], [0], [1], [0, 0, 1, 1], [], []>} : vector<128x144xbf16>, vector<144x128xbf16>, vector<128x128xf32> -> vector<128x128xf32>
    %c0_3 = arith.constant 0 : index
    %c0_4 = arith.constant 0 : index
    %3 = vector.load %arg3[%c0_3, %c0_4] : memref<1x128xf32, #tpu.memory_space<vmem>>, vector<1x128xf32>
    %4 = vector.broadcast %3 : vector<1x128xf32> to vector<128x128xf32>
    %5 = arith.addf %2, %4 : vector<128x128xf32>
    %cst_5 = arith.constant 1.000000e-01 : f32
    %6 = vector.broadcast %cst_5 : f32 to vector<128x128xf32>
    %7 = arith.mulf %6, %5 : vector<128x128xf32>
    %8 = arith.maximumf %5, %7 : vector<128x128xf32>
    %9 = arith.truncf %8 : vector<128x128xf32> to vector<128x128xbf16>
    %c0_6 = arith.constant 0 : index
    %c0_7 = arith.constant 0 : index
    %10 = vector.load %arg4[%c0_6, %c0_7] : memref<128x128xbf16, #tpu.memory_space<vmem>>, vector<128x128xbf16>
    tpu.vector_store %arg4[%c0_6, %c0_7], %9 {strides = array<i32>} : memref<128x128xbf16, #tpu.memory_space<vmem>>, vector<128x128xbf16>,
    return
  }
  func.func @transform_0(%arg0: i32) -> (i32, i32) {
    %c0_i32 = arith.constant 0 : i32
    %c0_i32_0 = arith.constant 0 : i32
    return %arg0, %c0_i32 : i32, i32
  }
  func.func @transform_1(%arg0: i32) -> (i32, i32) {
    %c0_i32 = arith.constant 0 : i32
    %c0_i32_0 = arith.constant 0 : i32
    %c0_i32_1 = arith.constant 0 : i32
    return %c0_i32, %c0_i32_0 : i32, i32
  }
  func.func @transform_2(%arg0: i32) -> (i32, i32) {
    %c0_i32 = arith.constant 0 : i32
    %c0_i32_0 = arith.constant 0 : i32
    %c0_i32_1 = arith.constant 0 : i32
    return %c0_i32, %c0_i32_0 : i32, i32
  }
  func.func @transform_3(%arg0: i32) -> (i32, i32) {
    %c0_i32 = arith.constant 0 : i32
    %c0_i32_0 = arith.constant 0 : i32
    return %arg0, %c0_i32 : i32, i32
  }
}

module attributes {stable_mosaic.version = 11 : i64} {
  func.func @_conv_kernel(%arg0: i32, %arg1: memref<128x144xbf16, #tpu.memory_space<vmem>>, %arg2: memref<144x128xbf16, #tpu.memory_space<vmem>>, %arg3: memref<1x128xf32, #tpu.memory_space<vmem>>, %arg4: memref<128x128xbf16, #tpu.memory_space<vmem>>, %arg5: memref<128x128xbf16, #tpu.memory_space<vmem>>) attributes {dimension_semantics = [#tpu.dimension_semantics<parallel>], iteration_bounds = array<i64: 1>, scalar_prefetch = 0 : i64, scratch_operands = 0 : i64, tpu.core_type = #tpu.core_type<tc>, window_params = [{transform_indices = @transform_0, window_bounds = array<i64: 128, 144>}, {pipeline_mode = #tpu.pipeline_mode<synchronous>, transform_indices = @transform_1, window_bounds = array<i64: 144, 128>}, {pipeline_mode = #tpu.pipeline_mode<synchronous>, transform_indices = @transform_2, window_bounds = array<i64: 1, 128>}, {transform_indices = @transform_3, window_bounds = array<i64: 128, 128>}, {transform_indices = @transform_4, window_bounds = array<i64: 128, 128>}]} {
    %c0 = arith.constant 0 : index
    %c0_0 = arith.constant 0 : index
    %0 = vector.load %arg1[%c0, %c0_0] : memref<128x144xbf16, #tpu.memory_space<vmem>>, vector<128x144xbf16>
    %c0_1 = arith.constant 0 : index
    %c0_2 = arith.constant 0 : index
    %1 = vector.load %arg2[%c0_1, %c0_2] : memref<144x128xbf16, #tpu.memory_space<vmem>>, vector<144x128xbf16>
    %cst = arith.constant dense<0.000000e+00> : vector<128x128xf32>
    %2 = tpu.matmul %0, %1, %cst {dimension_numbers = #tpu.dot_dimension_numbers<[1], [0], [0], [1], [0, 0, 1, 1], [], []>} : vector<128x144xbf16>, vector<144x128xbf16>, vector<128x128xf32> -> vector<128x128xf32>
    %c0_3 = arith.constant 0 : index
    %c0_4 = arith.constant 0 : index
    %3 = vector.load %arg3[%c0_3, %c0_4] : memref<1x128xf32, #tpu.memory_space<vmem>>, vector<1x128xf32>
    %4 = vector.broadcast %3 : vector<1x128xf32> to vector<128x128xf32>
    %5 = arith.addf %2, %4 : vector<128x128xf32>
    %cst_5 = arith.constant 1.000000e-01 : f32
    %6 = vector.broadcast %cst_5 : f32 to vector<128x128xf32>
    %7 = arith.mulf %6, %5 : vector<128x128xf32>
    %8 = arith.maximumf %5, %7 : vector<128x128xf32>
    %c0_6 = arith.constant 0 : index
    %c0_7 = arith.constant 0 : index
    %9 = vector.load %arg4[%c0_6, %c0_7] : memref<128x128xbf16, #tpu.memory_space<vmem>>, vector<128x128xbf16>
    %10 = arith.extf %9 : vector<128x128xbf16> to vector<128x128xf32>
    %11 = arith.addf %8, %10 : vector<128x128xf32>
    %12 = arith.truncf %11 : vector<128x128xf32> to vector<128x128xbf16>
    %c0_8 = arith.constant 0 : index
    %c0_9 = arith.constant 0 : index
    %13 = vector.load %arg5[%c0_8, %c0_9] : memref<128x128xbf16, #tpu.memory_space<vmem>>, vector<128x128xbf16>
    tpu.vector_store %arg5[%c0_8, %c0_9], %12 {strides = array<i32>} : memref<128x128xbf16, #tpu.memory_space<vmem>>, vector<128x128xbf16>,
    return
  }
  func.func @transform_0(%arg0: i32) -> (i32, i32) {
    %c0_i32 = arith.constant 0 : i32
    %c0_i32_0 = arith.constant 0 : i32
    return %arg0, %c0_i32 : i32, i32
  }
  func.func @transform_1(%arg0: i32) -> (i32, i32) {
    %c0_i32 = arith.constant 0 : i32
    %c0_i32_0 = arith.constant 0 : i32
    %c0_i32_1 = arith.constant 0 : i32
    return %c0_i32, %c0_i32_0 : i32, i32
  }
  func.func @transform_2(%arg0: i32) -> (i32, i32) {
    %c0_i32 = arith.constant 0 : i32
    %c0_i32_0 = arith.constant 0 : i32
    %c0_i32_1 = arith.constant 0 : i32
    return %c0_i32, %c0_i32_0 : i32, i32
  }
  func.func @transform_3(%arg0: i32) -> (i32, i32) {
    %c0_i32 = arith.constant 0 : i32
    %c0_i32_0 = arith.constant 0 : i32
    return %arg0, %c0_i32 : i32, i32
  }
  func.func @transform_4(%arg0: i32) -> (i32, i32) {
    %c0_i32 = arith.constant 0 : i32
    %c0_i32_0 = arith.constant 0 : i32
    return %arg0, %c0_i32 : i32, i32
  }
}

module attributes {stable_mosaic.version = 11 : i64} {
  func.func @_conv_kernel(%arg0: i32, %arg1: memref<32x288xbf16, #tpu.memory_space<vmem>>, %arg2: memref<288x128xbf16, #tpu.memory_space<vmem>>, %arg3: memref<1x128xf32, #tpu.memory_space<vmem>>, %arg4: memref<32x128xbf16, #tpu.memory_space<vmem>>) attributes {dimension_semantics = [#tpu.dimension_semantics<parallel>], iteration_bounds = array<i64: 1>, scalar_prefetch = 0 : i64, scratch_operands = 0 : i64, tpu.core_type = #tpu.core_type<tc>, window_params = [{transform_indices = @transform_0, window_bounds = array<i64: 32, 288>}, {pipeline_mode = #tpu.pipeline_mode<synchronous>, transform_indices = @transform_1, window_bounds = array<i64: 288, 128>}, {pipeline_mode = #tpu.pipeline_mode<synchronous>, transform_indices = @transform_2, window_bounds = array<i64: 1, 128>}, {transform_indices = @transform_3, window_bounds = array<i64: 32, 128>}]} {
    %c0 = arith.constant 0 : index
    %c0_0 = arith.constant 0 : index
    %0 = vector.load %arg1[%c0, %c0_0] : memref<32x288xbf16, #tpu.memory_space<vmem>>, vector<32x288xbf16>
    %c0_1 = arith.constant 0 : index
    %c0_2 = arith.constant 0 : index
    %1 = vector.load %arg2[%c0_1, %c0_2] : memref<288x128xbf16, #tpu.memory_space<vmem>>, vector<288x128xbf16>
    %cst = arith.constant dense<0.000000e+00> : vector<32x128xf32>
    %2 = tpu.matmul %0, %1, %cst {dimension_numbers = #tpu.dot_dimension_numbers<[1], [0], [0], [1], [0, 0, 1, 1], [], []>} : vector<32x288xbf16>, vector<288x128xbf16>, vector<32x128xf32> -> vector<32x128xf32>
    %c0_3 = arith.constant 0 : index
    %c0_4 = arith.constant 0 : index
    %3 = vector.load %arg3[%c0_3, %c0_4] : memref<1x128xf32, #tpu.memory_space<vmem>>, vector<1x128xf32>
    %4 = vector.broadcast %3 : vector<1x128xf32> to vector<32x128xf32>
    %5 = arith.addf %2, %4 : vector<32x128xf32>
    %cst_5 = arith.constant 1.000000e-01 : f32
    %6 = vector.broadcast %cst_5 : f32 to vector<32x128xf32>
    %7 = arith.mulf %6, %5 : vector<32x128xf32>
    %8 = arith.maximumf %5, %7 : vector<32x128xf32>
    %9 = arith.truncf %8 : vector<32x128xf32> to vector<32x128xbf16>
    %c0_6 = arith.constant 0 : index
    %c0_7 = arith.constant 0 : index
    %10 = vector.load %arg4[%c0_6, %c0_7] : memref<32x128xbf16, #tpu.memory_space<vmem>>, vector<32x128xbf16>
    tpu.vector_store %arg4[%c0_6, %c0_7], %9 {strides = array<i32>} : memref<32x128xbf16, #tpu.memory_space<vmem>>, vector<32x128xbf16>,
    return
  }
  func.func @transform_0(%arg0: i32) -> (i32, i32) {
    %c0_i32 = arith.constant 0 : i32
    %c0_i32_0 = arith.constant 0 : i32
    return %arg0, %c0_i32 : i32, i32
  }
  func.func @transform_1(%arg0: i32) -> (i32, i32) {
    %c0_i32 = arith.constant 0 : i32
    %c0_i32_0 = arith.constant 0 : i32
    %c0_i32_1 = arith.constant 0 : i32
    return %c0_i32, %c0_i32_0 : i32, i32
  }
  func.func @transform_2(%arg0: i32) -> (i32, i32) {
    %c0_i32 = arith.constant 0 : i32
    %c0_i32_0 = arith.constant 0 : i32
    %c0_i32_1 = arith.constant 0 : i32
    return %c0_i32, %c0_i32_0 : i32, i32
  }
  func.func @transform_3(%arg0: i32) -> (i32, i32) {
    %c0_i32 = arith.constant 0 : i32
    %c0_i32_0 = arith.constant 0 : i32
    return %arg0, %c0_i32 : i32, i32
  }
}

module attributes {stable_mosaic.version = 11 : i64} {
  func.func @_conv_kernel(%arg0: i32, %arg1: memref<8x64xbf16, #tpu.memory_space<vmem>>, %arg2: memref<64x128xbf16, #tpu.memory_space<vmem>>, %arg3: memref<1x128xf32, #tpu.memory_space<vmem>>, %arg4: memref<8x128xbf16, #tpu.memory_space<vmem>>) attributes {dimension_semantics = [#tpu.dimension_semantics<parallel>], iteration_bounds = array<i64: 1>, scalar_prefetch = 0 : i64, scratch_operands = 0 : i64, tpu.core_type = #tpu.core_type<tc>, window_params = [{transform_indices = @transform_0, window_bounds = array<i64: 8, 64>}, {pipeline_mode = #tpu.pipeline_mode<synchronous>, transform_indices = @transform_1, window_bounds = array<i64: 64, 128>}, {pipeline_mode = #tpu.pipeline_mode<synchronous>, transform_indices = @transform_2, window_bounds = array<i64: 1, 128>}, {transform_indices = @transform_3, window_bounds = array<i64: 8, 128>}]} {
    %c0 = arith.constant 0 : index
    %c0_0 = arith.constant 0 : index
    %0 = vector.load %arg1[%c0, %c0_0] : memref<8x64xbf16, #tpu.memory_space<vmem>>, vector<8x64xbf16>
    %c0_1 = arith.constant 0 : index
    %c0_2 = arith.constant 0 : index
    %1 = vector.load %arg2[%c0_1, %c0_2] : memref<64x128xbf16, #tpu.memory_space<vmem>>, vector<64x128xbf16>
    %cst = arith.constant dense<0.000000e+00> : vector<8x128xf32>
    %2 = tpu.matmul %0, %1, %cst {dimension_numbers = #tpu.dot_dimension_numbers<[1], [0], [0], [1], [0, 0, 1, 1], [], []>} : vector<8x64xbf16>, vector<64x128xbf16>, vector<8x128xf32> -> vector<8x128xf32>
    %c0_3 = arith.constant 0 : index
    %c0_4 = arith.constant 0 : index
    %3 = vector.load %arg3[%c0_3, %c0_4] : memref<1x128xf32, #tpu.memory_space<vmem>>, vector<1x128xf32>
    %4 = vector.broadcast %3 : vector<1x128xf32> to vector<8x128xf32>
    %5 = arith.addf %2, %4 : vector<8x128xf32>
    %cst_5 = arith.constant 1.000000e-01 : f32
    %6 = vector.broadcast %cst_5 : f32 to vector<8x128xf32>
    %7 = arith.mulf %6, %5 : vector<8x128xf32>
    %8 = arith.maximumf %5, %7 : vector<8x128xf32>
    %9 = arith.truncf %8 : vector<8x128xf32> to vector<8x128xbf16>
    %c0_6 = arith.constant 0 : index
    %c0_7 = arith.constant 0 : index
    %10 = vector.load %arg4[%c0_6, %c0_7] : memref<8x128xbf16, #tpu.memory_space<vmem>>, vector<8x128xbf16>
    tpu.vector_store %arg4[%c0_6, %c0_7], %9 {strides = array<i32>} : memref<8x128xbf16, #tpu.memory_space<vmem>>, vector<8x128xbf16>,
    return
  }
  func.func @transform_0(%arg0: i32) -> (i32, i32) {
    %c0_i32 = arith.constant 0 : i32
    %c0_i32_0 = arith.constant 0 : i32
    return %arg0, %c0_i32 : i32, i32
  }
  func.func @transform_1(%arg0: i32) -> (i32, i32) {
    %c0_i32 = arith.constant 0 : i32
    %c0_i32_0 = arith.constant 0 : i32
    %c0_i32_1 = arith.constant 0 : i32
    return %c0_i32, %c0_i32_0 : i32, i32
  }
  func.func @transform_2(%arg0: i32) -> (i32, i32) {
    %c0_i32 = arith.constant 0 : i32
    %c0_i32_0 = arith.constant 0 : i32
    %c0_i32_1 = arith.constant 0 : i32
    return %c0_i32, %c0_i32_0 : i32, i32
  }
  func.func @transform_3(%arg0: i32) -> (i32, i32) {
    %c0_i32 = arith.constant 0 : i32
    %c0_i32_0 = arith.constant 0 : i32
    return %arg0, %c0_i32 : i32, i32
  }
}

module attributes {stable_mosaic.version = 11 : i64} {
  func.func @_conv_kernel(%arg0: i32, %arg1: memref<8x288xbf16, #tpu.memory_space<vmem>>, %arg2: memref<288x128xbf16, #tpu.memory_space<vmem>>, %arg3: memref<1x128xf32, #tpu.memory_space<vmem>>, %arg4: memref<8x128xbf16, #tpu.memory_space<vmem>>) attributes {dimension_semantics = [#tpu.dimension_semantics<parallel>], iteration_bounds = array<i64: 1>, scalar_prefetch = 0 : i64, scratch_operands = 0 : i64, tpu.core_type = #tpu.core_type<tc>, window_params = [{transform_indices = @transform_0, window_bounds = array<i64: 8, 288>}, {pipeline_mode = #tpu.pipeline_mode<synchronous>, transform_indices = @transform_1, window_bounds = array<i64: 288, 128>}, {pipeline_mode = #tpu.pipeline_mode<synchronous>, transform_indices = @transform_2, window_bounds = array<i64: 1, 128>}, {transform_indices = @transform_3, window_bounds = array<i64: 8, 128>}]} {
    %c0 = arith.constant 0 : index
    %c0_0 = arith.constant 0 : index
    %0 = vector.load %arg1[%c0, %c0_0] : memref<8x288xbf16, #tpu.memory_space<vmem>>, vector<8x288xbf16>
    %c0_1 = arith.constant 0 : index
    %c0_2 = arith.constant 0 : index
    %1 = vector.load %arg2[%c0_1, %c0_2] : memref<288x128xbf16, #tpu.memory_space<vmem>>, vector<288x128xbf16>
    %cst = arith.constant dense<0.000000e+00> : vector<8x128xf32>
    %2 = tpu.matmul %0, %1, %cst {dimension_numbers = #tpu.dot_dimension_numbers<[1], [0], [0], [1], [0, 0, 1, 1], [], []>} : vector<8x288xbf16>, vector<288x128xbf16>, vector<8x128xf32> -> vector<8x128xf32>
    %c0_3 = arith.constant 0 : index
    %c0_4 = arith.constant 0 : index
    %3 = vector.load %arg3[%c0_3, %c0_4] : memref<1x128xf32, #tpu.memory_space<vmem>>, vector<1x128xf32>
    %4 = vector.broadcast %3 : vector<1x128xf32> to vector<8x128xf32>
    %5 = arith.addf %2, %4 : vector<8x128xf32>
    %cst_5 = arith.constant 1.000000e-01 : f32
    %6 = vector.broadcast %cst_5 : f32 to vector<8x128xf32>
    %7 = arith.mulf %6, %5 : vector<8x128xf32>
    %8 = arith.maximumf %5, %7 : vector<8x128xf32>
    %9 = arith.truncf %8 : vector<8x128xf32> to vector<8x128xbf16>
    %c0_6 = arith.constant 0 : index
    %c0_7 = arith.constant 0 : index
    %10 = vector.load %arg4[%c0_6, %c0_7] : memref<8x128xbf16, #tpu.memory_space<vmem>>, vector<8x128xbf16>
    tpu.vector_store %arg4[%c0_6, %c0_7], %9 {strides = array<i32>} : memref<8x128xbf16, #tpu.memory_space<vmem>>, vector<8x128xbf16>,
    return
  }
  func.func @transform_0(%arg0: i32) -> (i32, i32) {
    %c0_i32 = arith.constant 0 : i32
    %c0_i32_0 = arith.constant 0 : i32
    return %arg0, %c0_i32 : i32, i32
  }
  func.func @transform_1(%arg0: i32) -> (i32, i32) {
    %c0_i32 = arith.constant 0 : i32
    %c0_i32_0 = arith.constant 0 : i32
    %c0_i32_1 = arith.constant 0 : i32
    return %c0_i32, %c0_i32_0 : i32, i32
  }
  func.func @transform_2(%arg0: i32) -> (i32, i32) {
    %c0_i32 = arith.constant 0 : i32
    %c0_i32_0 = arith.constant 0 : i32
    %c0_i32_1 = arith.constant 0 : i32
    return %c0_i32, %c0_i32_0 : i32, i32
  }
  func.func @transform_3(%arg0: i32) -> (i32, i32) {
    %c0_i32 = arith.constant 0 : i32
    %c0_i32_0 = arith.constant 0 : i32
    return %arg0, %c0_i32 : i32, i32
  }
}

module attributes {stable_mosaic.version = 11 : i64} {
  func.func @_conv_kernel(%arg0: i32, %arg1: memref<8x64xbf16, #tpu.memory_space<vmem>>, %arg2: memref<64x128xbf16, #tpu.memory_space<vmem>>, %arg3: memref<1x128xf32, #tpu.memory_space<vmem>>, %arg4: memref<8x128xbf16, #tpu.memory_space<vmem>>) attributes {dimension_semantics = [#tpu.dimension_semantics<parallel>], iteration_bounds = array<i64: 1>, scalar_prefetch = 0 : i64, scratch_operands = 0 : i64, tpu.core_type = #tpu.core_type<tc>, window_params = [{transform_indices = @transform_0, window_bounds = array<i64: 8, 64>}, {pipeline_mode = #tpu.pipeline_mode<synchronous>, transform_indices = @transform_1, window_bounds = array<i64: 64, 128>}, {pipeline_mode = #tpu.pipeline_mode<synchronous>, transform_indices = @transform_2, window_bounds = array<i64: 1, 128>}, {transform_indices = @transform_3, window_bounds = array<i64: 8, 128>}]} {
    %c0 = arith.constant 0 : index
    %c0_0 = arith.constant 0 : index
    %0 = vector.load %arg1[%c0, %c0_0] : memref<8x64xbf16, #tpu.memory_space<vmem>>, vector<8x64xbf16>
    %c0_1 = arith.constant 0 : index
    %c0_2 = arith.constant 0 : index
    %1 = vector.load %arg2[%c0_1, %c0_2] : memref<64x128xbf16, #tpu.memory_space<vmem>>, vector<64x128xbf16>
    %cst = arith.constant dense<0.000000e+00> : vector<8x128xf32>
    %2 = tpu.matmul %0, %1, %cst {dimension_numbers = #tpu.dot_dimension_numbers<[1], [0], [0], [1], [0, 0, 1, 1], [], []>} : vector<8x64xbf16>, vector<64x128xbf16>, vector<8x128xf32> -> vector<8x128xf32>
    %c0_3 = arith.constant 0 : index
    %c0_4 = arith.constant 0 : index
    %3 = vector.load %arg3[%c0_3, %c0_4] : memref<1x128xf32, #tpu.memory_space<vmem>>, vector<1x128xf32>
    %4 = vector.broadcast %3 : vector<1x128xf32> to vector<8x128xf32>
    %5 = arith.addf %2, %4 : vector<8x128xf32>
    %6 = arith.truncf %5 : vector<8x128xf32> to vector<8x128xbf16>
    %c0_5 = arith.constant 0 : index
    %c0_6 = arith.constant 0 : index
    %7 = vector.load %arg4[%c0_5, %c0_6] : memref<8x128xbf16, #tpu.memory_space<vmem>>, vector<8x128xbf16>
    tpu.vector_store %arg4[%c0_5, %c0_6], %6 {strides = array<i32>} : memref<8x128xbf16, #tpu.memory_space<vmem>>, vector<8x128xbf16>,
    return
  }
  func.func @transform_0(%arg0: i32) -> (i32, i32) {
    %c0_i32 = arith.constant 0 : i32
    %c0_i32_0 = arith.constant 0 : i32
    return %arg0, %c0_i32 : i32, i32
  }
  func.func @transform_1(%arg0: i32) -> (i32, i32) {
    %c0_i32 = arith.constant 0 : i32
    %c0_i32_0 = arith.constant 0 : i32
    %c0_i32_1 = arith.constant 0 : i32
    return %c0_i32, %c0_i32_0 : i32, i32
  }
  func.func @transform_2(%arg0: i32) -> (i32, i32) {
    %c0_i32 = arith.constant 0 : i32
    %c0_i32_0 = arith.constant 0 : i32
    %c0_i32_1 = arith.constant 0 : i32
    return %c0_i32, %c0_i32_0 : i32, i32
  }
  func.func @transform_3(%arg0: i32) -> (i32, i32) {
    %c0_i32 = arith.constant 0 : i32
    %c0_i32_0 = arith.constant 0 : i32
    return %arg0, %c0_i32 : i32, i32
  }
}

module attributes {stable_mosaic.version = 11 : i64} {
  func.func @_conv_kernel(%arg0: i32, %arg1: memref<32x576xbf16, #tpu.memory_space<vmem>>, %arg2: memref<576x128xbf16, #tpu.memory_space<vmem>>, %arg3: memref<1x128xf32, #tpu.memory_space<vmem>>, %arg4: memref<32x128xbf16, #tpu.memory_space<vmem>>) attributes {dimension_semantics = [#tpu.dimension_semantics<parallel>], iteration_bounds = array<i64: 1>, scalar_prefetch = 0 : i64, scratch_operands = 0 : i64, tpu.core_type = #tpu.core_type<tc>, window_params = [{transform_indices = @transform_0, window_bounds = array<i64: 32, 576>}, {pipeline_mode = #tpu.pipeline_mode<synchronous>, transform_indices = @transform_1, window_bounds = array<i64: 576, 128>}, {pipeline_mode = #tpu.pipeline_mode<synchronous>, transform_indices = @transform_2, window_bounds = array<i64: 1, 128>}, {transform_indices = @transform_3, window_bounds = array<i64: 32, 128>}]} {
    %c0 = arith.constant 0 : index
    %c0_0 = arith.constant 0 : index
    %0 = vector.load %arg1[%c0, %c0_0] : memref<32x576xbf16, #tpu.memory_space<vmem>>, vector<32x576xbf16>
    %c0_1 = arith.constant 0 : index
    %c0_2 = arith.constant 0 : index
    %1 = vector.load %arg2[%c0_1, %c0_2] : memref<576x128xbf16, #tpu.memory_space<vmem>>, vector<576x128xbf16>
    %cst = arith.constant dense<0.000000e+00> : vector<32x128xf32>
    %2 = tpu.matmul %0, %1, %cst {dimension_numbers = #tpu.dot_dimension_numbers<[1], [0], [0], [1], [0, 0, 1, 1], [], []>} : vector<32x576xbf16>, vector<576x128xbf16>, vector<32x128xf32> -> vector<32x128xf32>
    %c0_3 = arith.constant 0 : index
    %c0_4 = arith.constant 0 : index
    %3 = vector.load %arg3[%c0_3, %c0_4] : memref<1x128xf32, #tpu.memory_space<vmem>>, vector<1x128xf32>
    %4 = vector.broadcast %3 : vector<1x128xf32> to vector<32x128xf32>
    %5 = arith.addf %2, %4 : vector<32x128xf32>
    %cst_5 = arith.constant 1.000000e-01 : f32
    %6 = vector.broadcast %cst_5 : f32 to vector<32x128xf32>
    %7 = arith.mulf %6, %5 : vector<32x128xf32>
    %8 = arith.maximumf %5, %7 : vector<32x128xf32>
    %9 = arith.truncf %8 : vector<32x128xf32> to vector<32x128xbf16>
    %c0_6 = arith.constant 0 : index
    %c0_7 = arith.constant 0 : index
    %10 = vector.load %arg4[%c0_6, %c0_7] : memref<32x128xbf16, #tpu.memory_space<vmem>>, vector<32x128xbf16>
    tpu.vector_store %arg4[%c0_6, %c0_7], %9 {strides = array<i32>} : memref<32x128xbf16, #tpu.memory_space<vmem>>, vector<32x128xbf16>,
    return
  }
  func.func @transform_0(%arg0: i32) -> (i32, i32) {
    %c0_i32 = arith.constant 0 : i32
    %c0_i32_0 = arith.constant 0 : i32
    return %arg0, %c0_i32 : i32, i32
  }
  func.func @transform_1(%arg0: i32) -> (i32, i32) {
    %c0_i32 = arith.constant 0 : i32
    %c0_i32_0 = arith.constant 0 : i32
    %c0_i32_1 = arith.constant 0 : i32
    return %c0_i32, %c0_i32_0 : i32, i32
  }
  func.func @transform_2(%arg0: i32) -> (i32, i32) {
    %c0_i32 = arith.constant 0 : i32
    %c0_i32_0 = arith.constant 0 : i32
    %c0_i32_1 = arith.constant 0 : i32
    return %c0_i32, %c0_i32_0 : i32, i32
  }
  func.func @transform_3(%arg0: i32) -> (i32, i32) {
    %c0_i32 = arith.constant 0 : i32
    %c0_i32_0 = arith.constant 0 : i32
    return %arg0, %c0_i32 : i32, i32
  }
}

module attributes {stable_mosaic.version = 11 : i64} {
  func.func @_conv_kernel(%arg0: i32, %arg1: memref<32x32xbf16, #tpu.memory_space<vmem>>, %arg2: memref<32x128xbf16, #tpu.memory_space<vmem>>, %arg3: memref<1x128xf32, #tpu.memory_space<vmem>>, %arg4: memref<32x128xbf16, #tpu.memory_space<vmem>>) attributes {dimension_semantics = [#tpu.dimension_semantics<parallel>], iteration_bounds = array<i64: 1>, scalar_prefetch = 0 : i64, scratch_operands = 0 : i64, tpu.core_type = #tpu.core_type<tc>, window_params = [{transform_indices = @transform_0, window_bounds = array<i64: 32, 32>}, {pipeline_mode = #tpu.pipeline_mode<synchronous>, transform_indices = @transform_1, window_bounds = array<i64: 32, 128>}, {pipeline_mode = #tpu.pipeline_mode<synchronous>, transform_indices = @transform_2, window_bounds = array<i64: 1, 128>}, {transform_indices = @transform_3, window_bounds = array<i64: 32, 128>}]} {
    %c0 = arith.constant 0 : index
    %c0_0 = arith.constant 0 : index
    %0 = vector.load %arg1[%c0, %c0_0] : memref<32x32xbf16, #tpu.memory_space<vmem>>, vector<32x32xbf16>
    %c0_1 = arith.constant 0 : index
    %c0_2 = arith.constant 0 : index
    %1 = vector.load %arg2[%c0_1, %c0_2] : memref<32x128xbf16, #tpu.memory_space<vmem>>, vector<32x128xbf16>
    %cst = arith.constant dense<0.000000e+00> : vector<32x128xf32>
    %2 = tpu.matmul %0, %1, %cst {dimension_numbers = #tpu.dot_dimension_numbers<[1], [0], [0], [1], [0, 0, 1, 1], [], []>} : vector<32x32xbf16>, vector<32x128xbf16>, vector<32x128xf32> -> vector<32x128xf32>
    %c0_3 = arith.constant 0 : index
    %c0_4 = arith.constant 0 : index
    %3 = vector.load %arg3[%c0_3, %c0_4] : memref<1x128xf32, #tpu.memory_space<vmem>>, vector<1x128xf32>
    %4 = vector.broadcast %3 : vector<1x128xf32> to vector<32x128xf32>
    %5 = arith.addf %2, %4 : vector<32x128xf32>
    %6 = arith.truncf %5 : vector<32x128xf32> to vector<32x128xbf16>
    %c0_5 = arith.constant 0 : index
    %c0_6 = arith.constant 0 : index
    %7 = vector.load %arg4[%c0_5, %c0_6] : memref<32x128xbf16, #tpu.memory_space<vmem>>, vector<32x128xbf16>
    tpu.vector_store %arg4[%c0_5, %c0_6], %6 {strides = array<i32>} : memref<32x128xbf16, #tpu.memory_space<vmem>>, vector<32x128xbf16>,
    return
  }
  func.func @transform_0(%arg0: i32) -> (i32, i32) {
    %c0_i32 = arith.constant 0 : i32
    %c0_i32_0 = arith.constant 0 : i32
    return %arg0, %c0_i32 : i32, i32
  }
  func.func @transform_1(%arg0: i32) -> (i32, i32) {
    %c0_i32 = arith.constant 0 : i32
    %c0_i32_0 = arith.constant 0 : i32
    %c0_i32_1 = arith.constant 0 : i32
    return %c0_i32, %c0_i32_0 : i32, i32
  }
  func.func @transform_2(%arg0: i32) -> (i32, i32) {
    %c0_i32 = arith.constant 0 : i32
    %c0_i32_0 = arith.constant 0 : i32
    %c0_i32_1 = arith.constant 0 : i32
    return %c0_i32, %c0_i32_0 : i32, i32
  }
  func.func @transform_3(%arg0: i32) -> (i32, i32) {
    %c0_i32 = arith.constant 0 : i32
    %c0_i32_0 = arith.constant 0 : i32
    return %arg0, %c0_i32 : i32, i32
  }
}

</mosaic_0001>

<bundles_post_ra>
// kernel: darknet_forward.11
= control target key start
LH: loop header
LB: loop body
LE: loop exit
PB: predicated region body
PF: predicated region fallthrough
CT: control target
= control target key end

     0   :  { %s2581_s12 = smov 0   ;;  %s2948_s0 = inlined_call_operand.vmem [shape: bf16[2048,48], index: 0, kind: input, shape index: {}]   ;;  %s2949_s1 = inlined_call_operand.vmem [shape: bf16[48,128], index: 1, kind: input, shape index: {}]   ;;  %s2950_s2 = inlined_call_operand.vmem [shape: f32[1,128], index: 2, kind: input, shape index: {}]   ;;  %s2951_s3 = inlined_call_operand.vmem [shape: bf16[2048,128], index: 3, kind: output, shape index: {}]  }
   0x1 LB: > { %s1741_s13 = sadd.s32 4294967295, %s2559_s12   ;;  %p1745_p0 = scmp.ge.s32.totalorder %s2559_s12, 1  ;;  %s2559_s12 = sphi %s2581_s12, %s13_s12  }
   0x2   : > { %p138_p1 = scmp.lt.s32.totalorder %s2559_s12, 3 }
   0x4   : > { %p139_p2 = pnand %p1745_p0, %p138_p1 }
   0x5   : > { %s1746_s16 = sshll.u32 (!%p139_p2), %s1741_s13, 7 }
   0x6   : > { %142 = sbr.rel (%p139_p2) target bundleno = 414 (0x19e), region = 32  ;;  %p163_p3 = scmp.lt.s32.totalorder (!%p139_p2), %s1746_s16, 255 }
   0xb   : > { %v2150_v0 = vld [vmem:[%s2949_s1 + $0x10] sm:$0xff]  ;;  %v2149_v1 = vld [vmem:[%s2949_s1 + $0x8] sm:$0xff]  ;;  %s2953_s16 = smov (!%p163_p3, %s1746_s16), 255  ;;  %v2148_v2 = vld [vmem:[%s2949_s1] sm:$0xff]  ;;  %vm651_vm0 = vcmask 392192  }
   0xc   : > { %849 = vmatpush.bf16.msra.mxu0 %v2150_v0  ;;  %2534 = vmatpush.bf16.msra.mxu1 %v2150_v0  ;;  %s1747_s19 = sshll.u32 %s2953_s16, 2  ;;  %v2679_v41 = vld [vmem:[%s2950_s2] ss:$0 sm:$0xff] }
   0xd   : > { %2535 = vmatpush.bf16.msra.mxu2 %v2150_v0  ;;  %2536 = vmatpush.bf16.msra.mxu3 %v2150_v0  ;;  %s2606_s24 = scalar_lea.vmem %s2948_s0, %s1747_s19  ;;  %s2696_s29 = scalar_lea.vmem %s2951_s3, %s1747_s19 }
   0xe   : > { %v2084_v3 = vld [vmem:[%s2606_s24] sm:$0xff]  ;;  %v2085_v7 = vld [vmem:[%s2606_s24 + $0x8] sm:$0xff]  ;;  %v2086_v11 = vld [vmem:[%s2606_s24 + $0x10] sm:$0xff] }
   0xf   : > { %v2100_v4 = vld [vmem:[%s2606_s24 + $0x80] sm:$0xff]  ;;  %v2101_v8 = vld [vmem:[%s2606_s24 + $0x88] sm:$0xff]  ;;  %v2102_v12 = vld [vmem:[%s2606_s24 + $0x90] sm:$0xff] }
  0x10   : > { %850 = vmatpush.bf16.msra.mxu0 %v2149_v1  ;;  %2537 = vmatpush.bf16.msra.mxu1 %v2149_v1  ;;  %v2116_v5 = vld [vmem:[%s2606_s24 + $0x100] sm:$0xff]  ;;  %v2117_v9 = vld [vmem:[%s2606_s24 + $0x108] sm:$0xff]  ;;  %v2118_v13 = vld [vmem:[%s2606_s24 + $0x110] sm:$0xff] }
  0x11   : > { %2538 = vmatpush.bf16.msra.mxu2 %v2149_v1  ;;  %2539 = vmatpush.bf16.msra.mxu3 %v2149_v1  ;;  %v2132_v6 = vld [vmem:[%s2606_s24 + $0x180] sm:$0xff]  ;;  %v2133_v10 = vld [vmem:[%s2606_s24 + $0x188] sm:$0xff]  ;;  %v2134_v14 = vld [vmem:[%s2606_s24 + $0x190] sm:$0xff] }
  0x12   : > { %v2087_v15 = vld [vmem:[%s2606_s24 + $0x18] sm:$0xff]  ;;  %v2088_v19 = vld [vmem:[%s2606_s24 + $0x20] sm:$0xff]  ;;  %v2089_v23 = vld [vmem:[%s2606_s24 + $0x28] sm:$0xff] }
  0x13   : > { %v2103_v16 = vld [vmem:[%s2606_s24 + $0x98] sm:$0xff]  ;;  %v2104_v20 = vld [vmem:[%s2606_s24 + $0xa0] sm:$0xff]  ;;  %v2105_v24 = vld [vmem:[%s2606_s24 + $0xa8] sm:$0xff] }
  0x14   : > { %851 = vmatpush.bf16.msra.mxu0 %v2148_v2  ;;  %2540 = vmatpush.bf16.msra.mxu1 %v2148_v2  ;;  %v2119_v17 = vld [vmem:[%s2606_s24 + $0x118] sm:$0xff]  ;;  %v2120_v21 = vld [vmem:[%s2606_s24 + $0x120] sm:$0xff]  ;;  %v2121_v25 = vld [vmem:[%s2606_s24 + $0x128] sm:$0xff] }
  0x15   : > { %2541 = vmatpush.bf16.msra.mxu2 %v2148_v2  ;;  %2542 = vmatpush.bf16.msra.mxu3 %v2148_v2  ;;  %v2135_v18 = vld [vmem:[%s2606_s24 + $0x198] sm:$0xff]  ;;  %v2136_v22 = vld [vmem:[%s2606_s24 + $0x1a0] sm:$0xff]  ;;  %v2137_v26 = vld [vmem:[%s2606_s24 + $0x1a8] sm:$0xff] }
  0x16   : > { %v2090_v27 = vld [vmem:[%s2606_s24 + $0x30] sm:$0xff]  ;;  %v2091_v31 = vld [vmem:[%s2606_s24 + $0x38] sm:$0xff]  ;;  %v2092_v35 = vld [vmem:[%s2606_s24 + $0x40] sm:$0xff] }
  0x17   : > { %2018 = vmatmul.msk.bf16.vlgmr.msra.gmra.mxu0 %vm651_vm0, %v2084_v3  ;;  %2034 = vmatmul.msk.bf16.vlgmr.msra.gmra.mxu1 %vm651_vm0, %v2100_v4  ;;  %v2106_v28 = vld [vmem:[%s2606_s24 + $0xb0] sm:$0xff]  ;;  %v2107_v32 = vld [vmem:[%s2606_s24 + $0xb8] sm:$0xff]  ;;  %v2108_v36 = vld [vmem:[%s2606_s24 + $0xc0] sm:$0xff] }
  0x18   : > { %2050 = vmatmul.msk.bf16.vlgmr.msra.gmra.mxu2 %vm651_vm0, %v2116_v5  ;;  %2066 = vmatmul.msk.bf16.vlgmr.msra.gmra.mxu3 %vm651_vm0, %v2132_v6  ;;  %v2122_v29 = vld [vmem:[%s2606_s24 + $0x130] sm:$0xff]  ;;  %v2123_v33 = vld [vmem:[%s2606_s24 + $0x138] sm:$0xff]  ;;  %v2124_v39 = vld [vmem:[%s2606_s24 + $0x140] sm:$0xff] }
  0x19   : > { %v2138_v30 = vld [vmem:[%s2606_s24 + $0x1b0] sm:$0xff]  ;;  %v2139_v34 = vld [vmem:[%s2606_s24 + $0x1b8] sm:$0xff]  ;;  %v2140_v40 = vld [vmem:[%s2606_s24 + $0x1c0] sm:$0xff] }
  0x1a   : > { %v2093_v1 = vld [vmem:[%s2606_s24 + $0x48] sm:$0xff] }
  0x1b   : > { %v2109_v2 = vld [vmem:[%s2606_s24 + $0xc8] sm:$0xff] }
  0x27   : > { %2019 = vmatmul.msk.bf16.gmra.mxu0 %vm651_vm0, %v2085_v7  ;;  %2035 = vmatmul.msk.bf16.gmra.mxu1 %vm651_vm0, %v2101_v8  ;;  %v2125_v8 = vld [vmem:[%s2606_s24 + $0x148] sm:$0xff] }
  0x28   : > { %2051 = vmatmul.msk.bf16.gmra.mxu2 %vm651_vm0, %v2117_v9  ;;  %2067 = vmatmul.msk.bf16.gmra.mxu3 %vm651_vm0, %v2133_v10  ;;  %v2141_v9 = vld [vmem:[%s2606_s24 + $0x1c8] sm:$0xff] }
  0x37   : > { %2020 = vmatmul.msk.bf16.gmra.mxu0 %vm651_vm0, %v2086_v11  ;;  %2036 = vmatmul.msk.bf16.gmra.mxu1 %vm651_vm0, %v2102_v12 }
  0x38   : > { %2052 = vmatmul.msk.bf16.gmra.mxu2 %vm651_vm0, %v2118_v13  ;;  %2068 = vmatmul.msk.bf16.gmra.mxu3 %vm651_vm0, %v2134_v14 }
  0x47   : > { %2021 = vmatmul.msk.bf16.gmra.mxu0 %vm651_vm0, %v2087_v15  ;;  %2037 = vmatmul.msk.bf16.gmra.mxu1 %vm651_vm0, %v2103_v16 }
  0x48   : > { %2053 = vmatmul.msk.bf16.gmra.mxu2 %vm651_vm0, %v2119_v17  ;;  %2069 = vmatmul.msk.bf16.gmra.mxu3 %vm651_vm0, %v2135_v18 }
  0x57   : > { %2022 = vmatmul.msk.bf16.gmra.mxu0 %vm651_vm0, %v2088_v19  ;;  %2038 = vmatmul.msk.bf16.gmra.mxu1 %vm651_vm0, %v2104_v20 }
  0x58   : > { %2054 = vmatmul.msk.bf16.gmra.mxu2 %vm651_vm0, %v2120_v21  ;;  %2070 = vmatmul.msk.bf16.gmra.mxu3 %vm651_vm0, %v2136_v22 }
  0x67   : > { %2023 = vmatmul.msk.bf16.gmra.mxu0 %vm651_vm0, %v2089_v23  ;;  %2039 = vmatmul.msk.bf16.gmra.mxu1 %vm651_vm0, %v2105_v24 }
  0x68   : > { %2055 = vmatmul.msk.bf16.gmra.mxu2 %vm651_vm0, %v2121_v25  ;;  %2071 = vmatmul.msk.bf16.gmra.mxu3 %vm651_vm0, %v2137_v26 }
  0x77   : > { %2024 = vmatmul.msk.bf16.gmra.mxu0 %vm651_vm0, %v2090_v27  ;;  %2040 = vmatmul.msk.bf16.gmra.mxu1 %vm651_vm0, %v2106_v28 }
  0x78   : > { %2056 = vmatmul.msk.bf16.gmra.mxu2 %vm651_vm0, %v2122_v29  ;;  %2072 = vmatmul.msk.bf16.gmra.mxu3 %vm651_vm0, %v2138_v30 }
  0x87   : > { %2025 = vmatmul.msk.bf16.gmra.mxu0 %vm651_vm0, %v2091_v31  ;;  %2041 = vmatmul.msk.bf16.gmra.mxu1 %vm651_vm0, %v2107_v32 }
  0x88   : > { %2057 = vmatmul.msk.bf16.gmra.mxu2 %vm651_vm0, %v2123_v33  ;;  %2073 = vmatmul.msk.bf16.gmra.mxu3 %vm651_vm0, %v2139_v34 }
  0x94   : > { %v853_v37 = vpop.f32.mrf.mxu0  ;;  %v933_v38 = vpop.f32.mrf.mxu1 }
  0x95   : > { %v854_v42 = vadd.f32 %v2679_v41, %v853_v37  ;;  %v934_v43 = vadd.f32 %v2679_v41, %v933_v38 }
  0x97   : > { %2026 = vmatmul.msk.bf16.gmra.mxu0 %vm651_vm0, %v2092_v35  ;;  %2042 = vmatmul.msk.bf16.gmra.mxu1 %vm651_vm0, %v2108_v36  ;;  %v1173_v48 = vmul.f32 0.1, %v854_v42  ;;  %v1205_v49 = vmul.f32 0.1, %v934_v43 }
  0x98   : > { %2058 = vmatmul.msk.bf16.gmra.mxu2 %vm651_vm0, %v2124_v39  ;;  %2074 = vmatmul.msk.bf16.gmra.mxu3 %vm651_vm0, %v2140_v40 }
  0x99   : > { %v1301_v56 = vmax.f32 %v854_v42, %v1173_v48  ;;  %v1333_v57 = vmax.f32 %v934_v43, %v1205_v49  ;;  %v2094_v42 = vld [vmem:[%s2606_s24 + $0x50] sm:$0xff] }
  0x9a   : > { %v2110_v43 = vld [vmem:[%s2606_s24 + $0xd0] sm:$0xff] }
  0x9b   : > { %v1013_v44 = vpop.f32.mrf.mxu2  ;;  %v1093_v45 = vpop.f32.mrf.mxu3  ;;  %v2126_v49 = vld [vmem:[%s2606_s24 + $0x150] sm:$0xff] }
  0x9c   : > { %v855_v46 = vpop.f32.mrf.mxu0  ;;  %v935_v47 = vpop.f32.mrf.mxu1  ;;  %v1014_v52 = vadd.f32 %v2679_v41, %v1013_v44  ;;  %v1094_v55 = vadd.f32 %v2679_v41, %v1093_v45 }
  0x9d   : > { %v856_v50 = vadd.f32 %v2679_v41, %v855_v46  ;;  %v936_v51 = vadd.f32 %v2679_v41, %v935_v47 }
  0x9e   : > { %v1237_v60 = vmul.f32 0.1, %v1014_v52  ;;  %v1269_v3 = vmul.f32 0.1, %v1094_v55 }
  0x9f   : > { %v1174_v53 = vmul.f32 0.1, %v856_v50  ;;  %v1206_v54 = vmul.f32 0.1, %v936_v51 }
  0xa0   : > { %v1365_v12 = vmax.f32 %v1014_v52, %v1237_v60  ;;  %v1397_v13 = vmax.f32 %v1094_v55, %v1269_v3 }
  0xa1   : > { %v1302_v58 = vmax.f32 %v856_v50, %v1174_v53  ;;  %v1334_v59 = vmax.f32 %v936_v51, %v1206_v54  ;;  %v2142_v50 = vld [vmem:[%s2606_s24 + $0x1d0] sm:$0xff] }
  0xa3   : > { %v2154_v61 = vpack.c.bf16 %v1302_v58, %v1301_v56  ;;  %v2234_v62 = vpack.c.bf16 %v1334_v59, %v1333_v57  ;;  %v1015_v63 = vpop.f32.mrf.mxu2  ;;  %v1095_v0 = vpop.f32.mrf.mxu3 }
  0xa4   : > { %v1016_v4 = vadd.f32 %v2679_v41, %v1015_v63  ;;  %v1096_v5 = vadd.f32 %v2679_v41, %v1095_v0  ;;  %v858_v6 = vpop.f32.mrf.mxu0  ;;  %v938_v7 = vpop.f32.mrf.mxu1 }
  0xa5   : > { %2155 = vst [vmem:[%s2696_s29] sm:$0xff] %v2154_v61   ;;  %v859_v16 = vadd.f32 %v2679_v41, %v858_v6  ;;  %v939_v17 = vadd.f32 %v2679_v41, %v938_v7 }
  0xa6   : > { %2486 = vst [vmem:[%s2696_s29 + $0x80] sm:$0xff] %v2234_v62   ;;  %v1238_v10 = vmul.f32 0.1, %v1016_v4  ;;  %v1270_v11 = vmul.f32 0.1, %v1096_v5 }
  0xa7   : > { %2027 = vmatmul.msk.bf16.gmra.mxu0 %vm651_vm0, %v2093_v1  ;;  %2043 = vmatmul.msk.bf16.gmra.mxu1 %vm651_vm0, %v2109_v2  ;;  %v1175_v24 = vmul.f32 0.1, %v859_v16  ;;  %v1207_v25 = vmul.f32 0.1, %v939_v17 }
  0xa8   : > { %v1366_v14 = vmax.f32 %v1016_v4, %v1238_v10  ;;  %v1398_v15 = vmax.f32 %v1096_v5, %v1270_v11  ;;  %2059 = vmatmul.msk.bf16.gmra.mxu2 %vm651_vm0, %v2125_v8  ;;  %2075 = vmatmul.msk.bf16.gmra.mxu3 %vm651_vm0, %v2141_v9 }
  0xa9   : > { %v1303_v32 = vmax.f32 %v859_v16, %v1175_v24  ;;  %v1335_v33 = vmax.f32 %v939_v17, %v1207_v25  ;;  %v2127_v25 = vld [vmem:[%s2606_s24 + $0x158] sm:$0xff] }
  0xaa   : > { %v2314_v18 = vpack.c.bf16 %v1366_v14, %v1365_v12  ;;  %v2394_v19 = vpack.c.bf16 %v1398_v15, %v1397_v13 }
  0xab   : > { %v1018_v20 = vpop.f32.mrf.mxu2  ;;  %v1098_v21 = vpop.f32.mrf.mxu3 }
  0xac   : > { %2502 = vst [vmem:[%s2696_s29 + $0x100] sm:$0xff] %v2314_v18   ;;  %v860_v22 = vpop.f32.mrf.mxu0  ;;  %v940_v23 = vpop.f32.mrf.mxu1  ;;  %v1019_v28 = vadd.f32 %v2679_v41, %v1018_v20  ;;  %v1099_v31 = vadd.f32 %v2679_v41, %v1098_v21  ;;  %v2095_v18 = vld [vmem:[%s2606_s24 + $0x58] sm:$0xff] }
  0xad   : > { %2518 = vst [vmem:[%s2696_s29 + $0x180] sm:$0xff] %v2394_v19   ;;  %v861_v26 = vadd.f32 %v2679_v41, %v860_v22  ;;  %v941_v27 = vadd.f32 %v2679_v41, %v940_v23  ;;  %v2111_v19 = vld [vmem:[%s2606_s24 + $0xd8] sm:$0xff] }
  0xae   : > { %v1239_v36 = vmul.f32 0.1, %v1019_v28  ;;  %v1271_v44 = vmul.f32 0.1, %v1099_v31 }
  0xaf   : > { %v1176_v29 = vmul.f32 0.1, %v861_v26  ;;  %v1208_v30 = vmul.f32 0.1, %v941_v27 }
  0xb0   : > { %v1367_v53 = vmax.f32 %v1019_v28, %v1239_v36  ;;  %v1399_v54 = vmax.f32 %v1099_v31, %v1271_v44 }
  0xb1   : > { %v1304_v34 = vmax.f32 %v861_v26, %v1176_v29  ;;  %v1336_v35 = vmax.f32 %v941_v27, %v1208_v30  ;;  %v2143_v26 = vld [vmem:[%s2606_s24 + $0x1d8] sm:$0xff] }
  0xb3   : > { %v2159_v37 = vpack.c.bf16 %v1304_v34, %v1303_v32  ;;  %v2239_v38 = vpack.c.bf16 %v1336_v35, %v1335_v33  ;;  %v1020_v39 = vpop.f32.mrf.mxu2  ;;  %v1100_v40 = vpop.f32.mrf.mxu3 }
  0xb4   : > { %v1021_v45 = vadd.f32 %v2679_v41, %v1020_v39  ;;  %v1101_v46 = vadd.f32 %v2679_v41, %v1100_v40  ;;  %v863_v47 = vpop.f32.mrf.mxu0  ;;  %v943_v48 = vpop.f32.mrf.mxu1 }
  0xb5   : > { %2471 = vst [vmem:[%s2696_s29 + $0x8] sm:$0xff] %v2159_v37   ;;  %v864_v57 = vadd.f32 %v2679_v41, %v863_v47  ;;  %v944_v58 = vadd.f32 %v2679_v41, %v943_v48 }
  0xb6   : > { %2487 = vst [vmem:[%s2696_s29 + $0x88] sm:$0xff] %v2239_v38   ;;  %v1240_v51 = vmul.f32 0.1, %v1021_v45  ;;  %v1272_v52 = vmul.f32 0.1, %v1101_v46 }
  0xb7   : > { %2028 = vmatmul.msk.bf16.gmra.mxu0 %vm651_vm0, %v2094_v42  ;;  %2044 = vmatmul.msk.bf16.gmra.mxu1 %vm651_vm0, %v2110_v43  ;;  %v1177_v1 = vmul.f32 0.1, %v864_v57  ;;  %v1209_v2 = vmul.f32 0.1, %v944_v58 }
  0xb8   : > { %v1368_v55 = vmax.f32 %v1021_v45, %v1240_v51  ;;  %v1400_v56 = vmax.f32 %v1101_v46, %v1272_v52  ;;  %2060 = vmatmul.msk.bf16.gmra.mxu2 %vm651_vm0, %v2126_v49  ;;  %2076 = vmatmul.msk.bf16.gmra.mxu3 %vm651_vm0, %v2142_v50 }
  0xb9   : > { %v1305_v9 = vmax.f32 %v864_v57, %v1177_v1  ;;  %v1337_v10 = vmax.f32 %v944_v58, %v1209_v2  ;;  %v2128_v2 = vld [vmem:[%s2606_s24 + $0x160] sm:$0xff] }
  0xba   : > { %v2319_v59 = vpack.c.bf16 %v1368_v55, %v1367_v53  ;;  %v2399_v60 = vpack.c.bf16 %v1400_v56, %v1399_v54 }
  0xbb   : > { %v1023_v61 = vpop.f32.mrf.mxu2  ;;  %v1103_v62 = vpop.f32.mrf.mxu3 }
  0xbc   : > { %2503 = vst [vmem:[%s2696_s29 + $0x108] sm:$0xff] %v2319_v59   ;;  %v865_v63 = vpop.f32.mrf.mxu0  ;;  %v945_v0 = vpop.f32.mrf.mxu1  ;;  %v1024_v5 = vadd.f32 %v2679_v41, %v1023_v61  ;;  %v1104_v8 = vadd.f32 %v2679_v41, %v1103_v62  ;;  %v2096_v59 = vld [vmem:[%s2606_s24 + $0x60] sm:$0xff] }
  0xbd   : > { %2519 = vst [vmem:[%s2696_s29 + $0x188] sm:$0xff] %v2399_v60   ;;  %v866_v3 = vadd.f32 %v2679_v41, %v865_v63  ;;  %v946_v4 = vadd.f32 %v2679_v41, %v945_v0  ;;  %v2112_v60 = vld [vmem:[%s2606_s24 + $0xe0] sm:$0xff] }
  0xbe   : > { %v1241_v13 = vmul.f32 0.1, %v1024_v5  ;;  %v1273_v20 = vmul.f32 0.1, %v1104_v8 }
  0xbf   : > { %v1178_v6 = vmul.f32 0.1, %v866_v3  ;;  %v1210_v7 = vmul.f32 0.1, %v946_v4 }
  0xc0   : > { %v1369_v29 = vmax.f32 %v1024_v5, %v1241_v13  ;;  %v1401_v30 = vmax.f32 %v1104_v8, %v1273_v20 }
  0xc1   : > { %v1306_v11 = vmax.f32 %v866_v3, %v1178_v6  ;;  %v1338_v12 = vmax.f32 %v946_v4, %v1210_v7  ;;  %v2144_v3 = vld [vmem:[%s2606_s24 + $0x1e0] sm:$0xff] }
  0xc3   : > { %v2164_v14 = vpack.c.bf16 %v1306_v11, %v1305_v9  ;;  %v2244_v15 = vpack.c.bf16 %v1338_v12, %v1337_v10  ;;  %v1025_v16 = vpop.f32.mrf.mxu2  ;;  %v1105_v17 = vpop.f32.mrf.mxu3 }
  0xc4   : > { %v1026_v21 = vadd.f32 %v2679_v41, %v1025_v16  ;;  %v1106_v22 = vadd.f32 %v2679_v41, %v1105_v17  ;;  %v868_v23 = vpop.f32.mrf.mxu0  ;;  %v948_v24 = vpop.f32.mrf.mxu1 }
  0xc5   : > { %2472 = vst [vmem:[%s2696_s29 + $0x10] sm:$0xff] %v2164_v14   ;;  %v869_v33 = vadd.f32 %v2679_v41, %v868_v23  ;;  %v949_v34 = vadd.f32 %v2679_v41, %v948_v24 }
  0xc6   : > { %2488 = vst [vmem:[%s2696_s29 + $0x90] sm:$0xff] %v2244_v15   ;;  %v1242_v27 = vmul.f32 0.1, %v1026_v21  ;;  %v1274_v28 = vmul.f32 0.1, %v1106_v22 }
  0xc7   : > { %2029 = vmatmul.msk.bf16.gmra.mxu0 %vm651_vm0, %v2095_v18  ;;  %2045 = vmatmul.msk.bf16.gmra.mxu1 %vm651_vm0, %v2111_v19  ;;  %v1179_v42 = vmul.f32 0.1, %v869_v33  ;;  %v1211_v43 = vmul.f32 0.1, %v949_v34 }
  0xc8   : > { %v1370_v31 = vmax.f32 %v1026_v21, %v1242_v27  ;;  %v1402_v32 = vmax.f32 %v1106_v22, %v1274_v28  ;;  %2061 = vmatmul.msk.bf16.gmra.mxu2 %vm651_vm0, %v2127_v25  ;;  %2077 = vmatmul.msk.bf16.gmra.mxu3 %vm651_vm0, %v2143_v26 }
  0xc9   : > { %v1307_v50 = vmax.f32 %v869_v33, %v1179_v42  ;;  %v1339_v51 = vmax.f32 %v949_v34, %v1211_v43  ;;  %v2129_v43 = vld [vmem:[%s2606_s24 + $0x168] sm:$0xff] }
  0xca   : > { %v2324_v35 = vpack.c.bf16 %v1370_v31, %v1369_v29  ;;  %v2404_v36 = vpack.c.bf16 %v1402_v32, %v1401_v30 }
  0xcb   : > { %v1028_v37 = vpop.f32.mrf.mxu2  ;;  %v1108_v38 = vpop.f32.mrf.mxu3 }
  0xcc   : > { %2504 = vst [vmem:[%s2696_s29 + $0x110] sm:$0xff] %v2324_v35   ;;  %v870_v39 = vpop.f32.mrf.mxu0  ;;  %v950_v40 = vpop.f32.mrf.mxu1  ;;  %v1029_v46 = vadd.f32 %v2679_v41, %v1028_v37  ;;  %v1109_v49 = vadd.f32 %v2679_v41, %v1108_v38  ;;  %v2097_v35 = vld [vmem:[%s2606_s24 + $0x68] sm:$0xff] }
  0xcd   : > { %2520 = vst [vmem:[%s2696_s29 + $0x190] sm:$0xff] %v2404_v36   ;;  %v871_v44 = vadd.f32 %v2679_v41, %v870_v39  ;;  %v951_v45 = vadd.f32 %v2679_v41, %v950_v40  ;;  %v2113_v36 = vld [vmem:[%s2606_s24 + $0xe8] sm:$0xff] }
  0xce   : > { %v1243_v54 = vmul.f32 0.1, %v1029_v46  ;;  %v1275_v61 = vmul.f32 0.1, %v1109_v49 }
  0xcf   : > { %v1180_v47 = vmul.f32 0.1, %v871_v44  ;;  %v1212_v48 = vmul.f32 0.1, %v951_v45 }
  0xd0   : > { %v1371_v6 = vmax.f32 %v1029_v46, %v1243_v54  ;;  %v1403_v7 = vmax.f32 %v1109_v49, %v1275_v61 }
  0xd1   : > { %v1308_v52 = vmax.f32 %v871_v44, %v1180_v47  ;;  %v1340_v53 = vmax.f32 %v951_v45, %v1212_v48  ;;  %v2145_v44 = vld [vmem:[%s2606_s24 + $0x1e8] sm:$0xff] }
  0xd3   : > { %v2169_v55 = vpack.c.bf16 %v1308_v52, %v1307_v50  ;;  %v2249_v56 = vpack.c.bf16 %v1340_v53, %v1339_v51  ;;  %v1030_v57 = vpop.f32.mrf.mxu2  ;;  %v1110_v58 = vpop.f32.mrf.mxu3 }
  0xd4   : > { %v1031_v62 = vadd.f32 %v2679_v41, %v1030_v57  ;;  %v1111_v63 = vadd.f32 %v2679_v41, %v1110_v58  ;;  %v873_v0 = vpop.f32.mrf.mxu0  ;;  %v953_v1 = vpop.f32.mrf.mxu1 }
  0xd5   : > { %2473 = vst [vmem:[%s2696_s29 + $0x18] sm:$0xff] %v2169_v55   ;;  %v874_v10 = vadd.f32 %v2679_v41, %v873_v0  ;;  %v954_v11 = vadd.f32 %v2679_v41, %v953_v1 }
  0xd6   : > { %2489 = vst [vmem:[%s2696_s29 + $0x98] sm:$0xff] %v2249_v56   ;;  %v1244_v4 = vmul.f32 0.1, %v1031_v62  ;;  %v1276_v5 = vmul.f32 0.1, %v1111_v63 }
  0xd7   : > { %2030 = vmatmul.msk.bf16.gmra.mxu0 %vm651_vm0, %v2096_v59  ;;  %2046 = vmatmul.msk.bf16.gmra.mxu1 %vm651_vm0, %v2112_v60  ;;  %v1181_v18 = vmul.f32 0.1, %v874_v10  ;;  %v1213_v19 = vmul.f32 0.1, %v954_v11 }
  0xd8   : > { %v1372_v8 = vmax.f32 %v1031_v62, %v1244_v4  ;;  %v1404_v9 = vmax.f32 %v1111_v63, %v1276_v5  ;;  %2062 = vmatmul.msk.bf16.gmra.mxu2 %vm651_vm0, %v2128_v2  ;;  %2078 = vmatmul.msk.bf16.gmra.mxu3 %vm651_vm0, %v2144_v3 }
  0xd9   : > { %v1309_v26 = vmax.f32 %v874_v10, %v1181_v18  ;;  %v1341_v27 = vmax.f32 %v954_v11, %v1213_v19  ;;  %v2130_v19 = vld [vmem:[%s2606_s24 + $0x170] sm:$0xff] }
  0xda   : > { %v2329_v12 = vpack.c.bf16 %v1372_v8, %v1371_v6  ;;  %v2409_v13 = vpack.c.bf16 %v1404_v9, %v1403_v7 }
  0xdb   : > { %v1033_v14 = vpop.f32.mrf.mxu2  ;;  %v1113_v15 = vpop.f32.mrf.mxu3 }
  0xdc   : > { %2505 = vst [vmem:[%s2696_s29 + $0x118] sm:$0xff] %v2329_v12   ;;  %v875_v16 = vpop.f32.mrf.mxu0  ;;  %v955_v17 = vpop.f32.mrf.mxu1  ;;  %v1034_v22 = vadd.f32 %v2679_v41, %v1033_v14  ;;  %v1114_v25 = vadd.f32 %v2679_v41, %v1113_v15  ;;  %v2098_v12 = vld [vmem:[%s2606_s24 + $0x70] sm:$0xff] }
  0xdd   : > { %2521 = vst [vmem:[%s2696_s29 + $0x198] sm:$0xff] %v2409_v13   ;;  %v876_v20 = vadd.f32 %v2679_v41, %v875_v16  ;;  %v956_v21 = vadd.f32 %v2679_v41, %v955_v17  ;;  %v2114_v13 = vld [vmem:[%s2606_s24 + $0xf0] sm:$0xff] }
  0xde   : > { %v1245_v30 = vmul.f32 0.1, %v1034_v22  ;;  %v1277_v37 = vmul.f32 0.1, %v1114_v25 }
  0xdf   : > { %v1182_v23 = vmul.f32 0.1, %v876_v20  ;;  %v1214_v24 = vmul.f32 0.1, %v956_v21 }
  0xe0   : > { %v1373_v47 = vmax.f32 %v1034_v22, %v1245_v30  ;;  %v1405_v48 = vmax.f32 %v1114_v25, %v1277_v37 }
  0xe1   : > { %v1310_v28 = vmax.f32 %v876_v20, %v1182_v23  ;;  %v1342_v29 = vmax.f32 %v956_v21, %v1214_v24  ;;  %v2146_v20 = vld [vmem:[%s2606_s24 + $0x1f0] sm:$0xff] }
  0xe3   : > { %v2174_v31 = vpack.c.bf16 %v1310_v28, %v1309_v26  ;;  %v2254_v32 = vpack.c.bf16 %v1342_v29, %v1341_v27  ;;  %v1035_v33 = vpop.f32.mrf.mxu2  ;;  %v1115_v34 = vpop.f32.mrf.mxu3 }
  0xe4   : > { %v1036_v38 = vadd.f32 %v2679_v41, %v1035_v33  ;;  %v1116_v39 = vadd.f32 %v2679_v41, %v1115_v34  ;;  %v878_v40 = vpop.f32.mrf.mxu0  ;;  %v958_v42 = vpop.f32.mrf.mxu1 }
  0xe5   : > { %2474 = vst [vmem:[%s2696_s29 + $0x20] sm:$0xff] %v2174_v31   ;;  %v879_v51 = vadd.f32 %v2679_v41, %v878_v40  ;;  %v959_v52 = vadd.f32 %v2679_v41, %v958_v42 }
  0xe6   : > { %2490 = vst [vmem:[%s2696_s29 + $0xa0] sm:$0xff] %v2254_v32   ;;  %v1246_v45 = vmul.f32 0.1, %v1036_v38  ;;  %v1278_v46 = vmul.f32 0.1, %v1116_v39 }
  0xe7   : > { %2031 = vmatmul.msk.bf16.gmra.mxu0 %vm651_vm0, %v2097_v35  ;;  %2047 = vmatmul.msk.bf16.gmra.mxu1 %vm651_vm0, %v2113_v36  ;;  %v1183_v59 = vmul.f32 0.1, %v879_v51  ;;  %v1215_v60 = vmul.f32 0.1, %v959_v52 }
  0xe8   : > { %v1374_v49 = vmax.f32 %v1036_v38, %v1246_v45  ;;  %v1406_v50 = vmax.f32 %v1116_v39, %v1278_v46  ;;  %2063 = vmatmul.msk.bf16.gmra.mxu2 %vm651_vm0, %v2129_v43  ;;  %2079 = vmatmul.msk.bf16.gmra.mxu3 %vm651_vm0, %v2145_v44 }
  0xe9   : > { %v1311_v3 = vmax.f32 %v879_v51, %v1183_v59  ;;  %v1343_v4 = vmax.f32 %v959_v52, %v1215_v60  ;;  %v2131_v60 = vld [vmem:[%s2606_s24 + $0x178] sm:$0xff] }
  0xea   : > { %v2334_v53 = vpack.c.bf16 %v1374_v49, %v1373_v47  ;;  %v2414_v54 = vpack.c.bf16 %v1406_v50, %v1405_v48 }
  0xeb   : > { %v1038_v55 = vpop.f32.mrf.mxu2  ;;  %v1118_v56 = vpop.f32.mrf.mxu3 }
  0xec   : > { %2506 = vst [vmem:[%s2696_s29 + $0x120] sm:$0xff] %v2334_v53   ;;  %v880_v57 = vpop.f32.mrf.mxu0  ;;  %v960_v58 = vpop.f32.mrf.mxu1  ;;  %v1039_v63 = vadd.f32 %v2679_v41, %v1038_v55  ;;  %v1119_v2 = vadd.f32 %v2679_v41, %v1118_v56  ;;  %v2099_v53 = vld [vmem:[%s2606_s24 + $0x78] sm:$0xff] }
  0xed   : > { %2522 = vst [vmem:[%s2696_s29 + $0x1a0] sm:$0xff] %v2414_v54   ;;  %v881_v61 = vadd.f32 %v2679_v41, %v880_v57  ;;  %v961_v62 = vadd.f32 %v2679_v41, %v960_v58  ;;  %v2115_v54 = vld [vmem:[%s2606_s24 + $0xf8] sm:$0xff] }
  0xee   : > { %v1247_v7 = vmul.f32 0.1, %v1039_v63  ;;  %v1279_v14 = vmul.f32 0.1, %v1119_v2 }
  0xef   : > { %v1184_v0 = vmul.f32 0.1, %v881_v61  ;;  %v1216_v1 = vmul.f32 0.1, %v961_v62 }
  0xf0   : > { %v1375_v23 = vmax.f32 %v1039_v63, %v1247_v7  ;;  %v1407_v24 = vmax.f32 %v1119_v2, %v1279_v14 }
  0xf1   : > { %v1312_v5 = vmax.f32 %v881_v61, %v1184_v0  ;;  %v1344_v6 = vmax.f32 %v961_v62, %v1216_v1  ;;  %v2147_v61 = vld [vmem:[%s2606_s24 + $0x1f8] sm:$0xff] }
  0xf3   : > { %v2179_v8 = vpack.c.bf16 %v1312_v5, %v1311_v3  ;;  %v2259_v9 = vpack.c.bf16 %v1344_v6, %v1343_v4  ;;  %v1040_v10 = vpop.f32.mrf.mxu2  ;;  %v1120_v11 = vpop.f32.mrf.mxu3 }
  0xf4   : > { %v1041_v15 = vadd.f32 %v2679_v41, %v1040_v10  ;;  %v1121_v16 = vadd.f32 %v2679_v41, %v1120_v11  ;;  %v883_v17 = vpop.f32.mrf.mxu0  ;;  %v963_v18 = vpop.f32.mrf.mxu1 }
  0xf5   : > { %2475 = vst [vmem:[%s2696_s29 + $0x28] sm:$0xff] %v2179_v8   ;;  %v884_v27 = vadd.f32 %v2679_v41, %v883_v17  ;;  %v964_v28 = vadd.f32 %v2679_v41, %v963_v18 }
  0xf6   : > { %2491 = vst [vmem:[%s2696_s29 + $0xa8] sm:$0xff] %v2259_v9   ;;  %v1248_v21 = vmul.f32 0.1, %v1041_v15  ;;  %v1280_v22 = vmul.f32 0.1, %v1121_v16 }
  0xf7   : > { %2032 = vmatmul.msk.bf16.gmra.mxu0 %vm651_vm0, %v2098_v12  ;;  %2048 = vmatmul.msk.bf16.gmra.mxu1 %vm651_vm0, %v2114_v13  ;;  %v1185_v35 = vmul.f32 0.1, %v884_v27  ;;  %v1217_v36 = vmul.f32 0.1, %v964_v28 }
  0xf8   : > { %v1376_v25 = vmax.f32 %v1041_v15, %v1248_v21  ;;  %v1408_v26 = vmax.f32 %v1121_v16, %v1280_v22  ;;  %2064 = vmatmul.msk.bf16.gmra.mxu2 %vm651_vm0, %v2130_v19  ;;  %2080 = vmatmul.msk.bf16.gmra.mxu3 %vm651_vm0, %v2146_v20 }
  0xf9   : > { %v1313_v44 = vmax.f32 %v884_v27, %v1185_v35  ;;  %v1345_v45 = vmax.f32 %v964_v28, %v1217_v36 }
  0xfa   : > { %v2339_v29 = vpack.c.bf16 %v1376_v25, %v1375_v23  ;;  %v2419_v30 = vpack.c.bf16 %v1408_v26, %v1407_v24 }
  0xfb   : > { %v1043_v31 = vpop.f32.mrf.mxu2  ;;  %v1123_v32 = vpop.f32.mrf.mxu3 }
  0xfc   : > { %2507 = vst [vmem:[%s2696_s29 + $0x128] sm:$0xff] %v2339_v29   ;;  %v885_v33 = vpop.f32.mrf.mxu0  ;;  %v965_v34 = vpop.f32.mrf.mxu1  ;;  %v1044_v39 = vadd.f32 %v2679_v41, %v1043_v31  ;;  %v1124_v43 = vadd.f32 %v2679_v41, %v1123_v32 }
  0xfd   : > { %2523 = vst [vmem:[%s2696_s29 + $0x1a8] sm:$0xff] %v2419_v30   ;;  %v886_v37 = vadd.f32 %v2679_v41, %v885_v33  ;;  %v966_v38 = vadd.f32 %v2679_v41, %v965_v34 }
  0xfe   : > { %v1249_v48 = vmul.f32 0.1, %v1044_v39  ;;  %v1281_v55 = vmul.f32 0.1, %v1124_v43 }
  0xff   : > { %v1186_v40 = vmul.f32 0.1, %v886_v37  ;;  %v1218_v42 = vmul.f32 0.1, %v966_v38 }
 0x100   : > { %v1377_v0 = vmax.f32 %v1044_v39, %v1249_v48  ;;  %v1409_v1 = vmax.f32 %v1124_v43, %v1281_v55 }
 0x101   : > { %v1314_v46 = vmax.f32 %v886_v37, %v1186_v40  ;;  %v1346_v47 = vmax.f32 %v966_v38, %v1218_v42 }
 0x103   : > { %v2184_v49 = vpack.c.bf16 %v1314_v46, %v1313_v44  ;;  %v2264_v50 = vpack.c.bf16 %v1346_v47, %v1345_v45  ;;  %v1045_v51 = vpop.f32.mrf.mxu2  ;;  %v1125_v52 = vpop.f32.mrf.mxu3 }
 0x104   : > { %v1046_v56 = vadd.f32 %v2679_v41, %v1045_v51  ;;  %v1126_v57 = vadd.f32 %v2679_v41, %v1125_v52  ;;  %v888_v58 = vpop.f32.mrf.mxu0  ;;  %v968_v59 = vpop.f32.mrf.mxu1 }
 0x105   : > { %2476 = vst [vmem:[%s2696_s29 + $0x30] sm:$0xff] %v2184_v49   ;;  %v889_v4 = vadd.f32 %v2679_v41, %v888_v58  ;;  %v969_v5 = vadd.f32 %v2679_v41, %v968_v59 }
 0x106   : > { %2492 = vst [vmem:[%s2696_s29 + $0xb0] sm:$0xff] %v2264_v50   ;;  %v1250_v62 = vmul.f32 0.1, %v1046_v56  ;;  %v1282_v63 = vmul.f32 0.1, %v1126_v57 }
 0x107   : > { %2033 = vmatmul.msk.bf16.gmra.mxu0 %vm651_vm0, %v2099_v53  ;;  %2049 = vmatmul.msk.bf16.gmra.mxu1 %vm651_vm0, %v2115_v54  ;;  %v1187_v12 = vmul.f32 0.1, %v889_v4  ;;  %v1219_v13 = vmul.f32 0.1, %v969_v5 }
 0x108   : > { %v1378_v2 = vmax.f32 %v1046_v56, %v1250_v62  ;;  %v1410_v3 = vmax.f32 %v1126_v57, %v1282_v63  ;;  %2065 = vmatmul.msk.bf16.gmra.mxu2 %vm651_vm0, %v2131_v60  ;;  %2081 = vmatmul.msk.bf16.gmra.mxu3 %vm651_vm0, %v2147_v61 }
 0x109   : > { %v1315_v20 = vmax.f32 %v889_v4, %v1187_v12  ;;  %v1347_v21 = vmax.f32 %v969_v5, %v1219_v13 }
 0x10a   : > { %v2344_v6 = vpack.c.bf16 %v1378_v2, %v1377_v0  ;;  %v2424_v7 = vpack.c.bf16 %v1410_v3, %v1409_v1 }
 0x10b   : > { %v1048_v8 = vpop.f32.mrf.mxu2  ;;  %v1128_v9 = vpop.f32.mrf.mxu3 }
 0x10c   : > { %2508 = vst [vmem:[%s2696_s29 + $0x130] sm:$0xff] %v2344_v6   ;;  %v890_v10 = vpop.f32.mrf.mxu0  ;;  %v970_v11 = vpop.f32.mrf.mxu1  ;;  %v1049_v18 = vadd.f32 %v2679_v41, %v1048_v8  ;;  %v1129_v19 = vadd.f32 %v2679_v41, %v1128_v9 }
 0x10d   : > { %2524 = vst [vmem:[%s2696_s29 + $0x1b0] sm:$0xff] %v2424_v7   ;;  %v891_v14 = vadd.f32 %v2679_v41, %v890_v10  ;;  %v971_v15 = vadd.f32 %v2679_v41, %v970_v11 }
 0x10e   : > { %v1251_v28 = vmul.f32 0.1, %v1049_v18  ;;  %v1283_v29 = vmul.f32 0.1, %v1129_v19 }
 0x10f   : > { %v1188_v16 = vmul.f32 0.1, %v891_v14  ;;  %v1220_v17 = vmul.f32 0.1, %v971_v15 }
 0x110   : > { %v1379_v36 = vmax.f32 %v1049_v18, %v1251_v28  ;;  %v1411_v37 = vmax.f32 %v1129_v19, %v1283_v29 }
 0x111   : > { %v1316_v22 = vmax.f32 %v891_v14, %v1188_v16  ;;  %v1348_v23 = vmax.f32 %v971_v15, %v1220_v17 }
 0x113   : > { %v2189_v24 = vpack.c.bf16 %v1316_v22, %v1315_v20  ;;  %v2269_v25 = vpack.c.bf16 %v1348_v23, %v1347_v21  ;;  %v1050_v26 = vpop.f32.mrf.mxu2  ;;  %v1130_v27 = vpop.f32.mrf.mxu3 }
 0x114   : > { %v1051_v30 = vadd.f32 %v2679_v41, %v1050_v26  ;;  %v1131_v31 = vadd.f32 %v2679_v41, %v1130_v27  ;;  %v893_v32 = vpop.f32.mrf.mxu0  ;;  %v973_v33 = vpop.f32.mrf.mxu1 }
 0x115   : > { %2477 = vst [vmem:[%s2696_s29 + $0x38] sm:$0xff] %v2189_v24   ;;  %v894_v40 = vadd.f32 %v2679_v41, %v893_v32  ;;  %v974_v42 = vadd.f32 %v2679_v41, %v973_v33 }
 0x116   : > { %2493 = vst [vmem:[%s2696_s29 + $0xb8] sm:$0xff] %v2269_v25   ;;  %v1252_v34 = vmul.f32 0.1, %v1051_v30  ;;  %v1284_v35 = vmul.f32 0.1, %v1131_v31 }
 0x117   : > { %v1189_v49 = vmul.f32 0.1, %v894_v40  ;;  %v1221_v50 = vmul.f32 0.1, %v974_v42 }
 0x118   : > { %v1380_v38 = vmax.f32 %v1051_v30, %v1252_v34  ;;  %v1412_v39 = vmax.f32 %v1131_v31, %v1284_v35 }
 0x119   : > { %v1317_v57 = vmax.f32 %v894_v40, %v1189_v49  ;;  %v1349_v58 = vmax.f32 %v974_v42, %v1221_v50 }
 0x11a   : > { %v2349_v43 = vpack.c.bf16 %v1380_v38, %v1379_v36  ;;  %v2429_v44 = vpack.c.bf16 %v1412_v39, %v1411_v37 }
 0x11b   : > { %v1053_v45 = vpop.f32.mrf.mxu2  ;;  %v1133_v46 = vpop.f32.mrf.mxu3 }
 0x11c   : > { %2509 = vst [vmem:[%s2696_s29 + $0x138] sm:$0xff] %v2349_v43   ;;  %v895_v47 = vpop.f32.mrf.mxu0  ;;  %v975_v48 = vpop.f32.mrf.mxu1  ;;  %v1054_v55 = vadd.f32 %v2679_v41, %v1053_v45  ;;  %v1134_v56 = vadd.f32 %v2679_v41, %v1133_v46 }
 0x11d   : > { %2525 = vst [vmem:[%s2696_s29 + $0x1b8] sm:$0xff] %v2429_v44   ;;  %v896_v51 = vadd.f32 %v2679_v41, %v895_v47  ;;  %v976_v52 = vadd.f32 %v2679_v41, %v975_v48 }
 0x11e   : > { %v1253_v1 = vmul.f32 0.1, %v1054_v55  ;;  %v1285_v2 = vmul.f32 0.1, %v1134_v56 }
 0x11f   : > { %v1190_v53 = vmul.f32 0.1, %v896_v51  ;;  %v1222_v54 = vmul.f32 0.1, %v976_v52 }
 0x120   : > { %v1381_v9 = vmax.f32 %v1054_v55, %v1253_v1  ;;  %v1413_v10 = vmax.f32 %v1134_v56, %v1285_v2 }
 0x121   : > { %v1318_v59 = vmax.f32 %v896_v51, %v1190_v53  ;;  %v1350_v60 = vmax.f32 %v976_v52, %v1222_v54 }
 0x123   : > { %v2194_v61 = vpack.c.bf16 %v1318_v59, %v1317_v57  ;;  %v2274_v62 = vpack.c.bf16 %v1350_v60, %v1349_v58  ;;  %v1055_v63 = vpop.f32.mrf.mxu2  ;;  %v1135_v0 = vpop.f32.mrf.mxu3 }
 0x124   : > { %v1056_v3 = vadd.f32 %v2679_v41, %v1055_v63  ;;  %v1136_v4 = vadd.f32 %v2679_v41, %v1135_v0  ;;  %v898_v5 = vpop.f32.mrf.mxu0  ;;  %v978_v6 = vpop.f32.mrf.mxu1 }
 0x125   : > { %2478 = vst [vmem:[%s2696_s29 + $0x40] sm:$0xff] %v2194_v61   ;;  %v899_v13 = vadd.f32 %v2679_v41, %v898_v5  ;;  %v979_v14 = vadd.f32 %v2679_v41, %v978_v6 }
 0x126   : > { %2494 = vst [vmem:[%s2696_s29 + $0xc0] sm:$0xff] %v2274_v62   ;;  %v1254_v7 = vmul.f32 0.1, %v1056_v3  ;;  %v1286_v8 = vmul.f32 0.1, %v1136_v4 }
 0x127   : > { %v1191_v21 = vmul.f32 0.1, %v899_v13  ;;  %v1223_v22 = vmul.f32 0.1, %v979_v14 }
 0x128   : > { %v1382_v11 = vmax.f32 %v1056_v3, %v1254_v7  ;;  %v1414_v12 = vmax.f32 %v1136_v4, %v1286_v8 }
 0x129   : > { %v1319_v29 = vmax.f32 %v899_v13, %v1191_v21  ;;  %v1351_v30 = vmax.f32 %v979_v14, %v1223_v22 }
 0x12a   : > { %v2354_v15 = vpack.c.bf16 %v1382_v11, %v1381_v9  ;;  %v2434_v16 = vpack.c.bf16 %v1414_v12, %v1413_v10 }
 0x12b   : > { %v1058_v17 = vpop.f32.mrf.mxu2  ;;  %v1138_v18 = vpop.f32.mrf.mxu3 }
 0x12c   : > { %2510 = vst [vmem:[%s2696_s29 + $0x140] sm:$0xff] %v2354_v15   ;;  %v900_v19 = vpop.f32.mrf.mxu0  ;;  %v980_v20 = vpop.f32.mrf.mxu1  ;;  %v1059_v27 = vadd.f32 %v2679_v41, %v1058_v17  ;;  %v1139_v28 = vadd.f32 %v2679_v41, %v1138_v18 }
 0x12d   : > { %2526 = vst [vmem:[%s2696_s29 + $0x1c0] sm:$0xff] %v2434_v16   ;;  %v901_v23 = vadd.f32 %v2679_v41, %v900_v19  ;;  %v981_v24 = vadd.f32 %v2679_v41, %v980_v20 }
 0x12e   : > { %v1255_v37 = vmul.f32 0.1, %v1059_v27  ;;  %v1287_v38 = vmul.f32 0.1, %v1139_v28 }
 0x12f   : > { %v1192_v25 = vmul.f32 0.1, %v901_v23  ;;  %v1224_v26 = vmul.f32 0.1, %v981_v24 }
 0x130   : > { %v1383_v46 = vmax.f32 %v1059_v27, %v1255_v37  ;;  %v1415_v47 = vmax.f32 %v1139_v28, %v1287_v38 }
 0x131   : > { %v1320_v31 = vmax.f32 %v901_v23, %v1192_v25  ;;  %v1352_v32 = vmax.f32 %v981_v24, %v1224_v26 }
 0x133   : > { %v2199_v33 = vpack.c.bf16 %v1320_v31, %v1319_v29  ;;  %v2279_v34 = vpack.c.bf16 %v1352_v32, %v1351_v30  ;;  %v1060_v35 = vpop.f32.mrf.mxu2  ;;  %v1140_v36 = vpop.f32.mrf.mxu3 }
 0x134   : > { %v1061_v39 = vadd.f32 %v2679_v41, %v1060_v35  ;;  %v1141_v40 = vadd.f32 %v2679_v41, %v1140_v36  ;;  %v903_v42 = vpop.f32.mrf.mxu0  ;;  %v983_v43 = vpop.f32.mrf.mxu1  ;;  %v2887_v36 = vld [vmem:[%s2950_s2] ss:$0 sm:$0xff] }
 0x135   : > { %2479 = vst [vmem:[%s2696_s29 + $0x48] sm:$0xff] %v2199_v33   ;;  %v904_v50 = vadd.f32 %v2679_v41, %v903_v42  ;;  %v984_v51 = vadd.f32 %v2679_v41, %v983_v43 }
 0x136   : > { %2495 = vst [vmem:[%s2696_s29 + $0xc8] sm:$0xff] %v2279_v34   ;;  %v1256_v44 = vmul.f32 0.1, %v1061_v39  ;;  %v1288_v45 = vmul.f32 0.1, %v1141_v40 }
 0x137   : > { %v1193_v58 = vmul.f32 0.1, %v904_v50  ;;  %v1225_v59 = vmul.f32 0.1, %v984_v51 }
 0x138   : > { %v1384_v48 = vmax.f32 %v1061_v39, %v1256_v44  ;;  %v1416_v49 = vmax.f32 %v1141_v40, %v1288_v45 }
 0x139   : > { %v1321_v2 = vmax.f32 %v904_v50, %v1193_v58  ;;  %v1353_v3 = vmax.f32 %v984_v51, %v1225_v59 }
 0x13a   : > { %v2359_v52 = vpack.c.bf16 %v1384_v48, %v1383_v46  ;;  %v2439_v53 = vpack.c.bf16 %v1416_v49, %v1415_v47 }
 0x13b   : > { %v1063_v54 = vpop.f32.mrf.mxu2  ;;  %v1143_v55 = vpop.f32.mrf.mxu3 }
 0x13c   : > { %2511 = vst [vmem:[%s2696_s29 + $0x148] sm:$0xff] %v2359_v52   ;;  %v905_v56 = vpop.f32.mrf.mxu0  ;;  %v985_v57 = vpop.f32.mrf.mxu1  ;;  %v1064_v0 = vadd.f32 %v2679_v41, %v1063_v54  ;;  %v1144_v1 = vadd.f32 %v2679_v41, %v1143_v55 }
 0x13d   : > { %2527 = vst [vmem:[%s2696_s29 + $0x1c8] sm:$0xff] %v2439_v53   ;;  %v906_v60 = vadd.f32 %v2679_v41, %v905_v56  ;;  %v986_v61 = vadd.f32 %v2679_v41, %v985_v57 }
 0x13e   : > { %v1257_v10 = vmul.f32 0.1, %v1064_v0  ;;  %v1289_v11 = vmul.f32 0.1, %v1144_v1 }
 0x13f   : > { %v1194_v62 = vmul.f32 0.1, %v906_v60  ;;  %v1226_v63 = vmul.f32 0.1, %v986_v61 }
 0x140   : > { %v1385_v18 = vmax.f32 %v1064_v0, %v1257_v10  ;;  %v1417_v19 = vmax.f32 %v1144_v1, %v1289_v11 }
 0x141   : > { %v1322_v4 = vmax.f32 %v906_v60, %v1194_v62  ;;  %v1354_v5 = vmax.f32 %v986_v61, %v1226_v63 }
 0x143   : > { %v2204_v6 = vpack.c.bf16 %v1322_v4, %v1321_v2  ;;  %v2284_v7 = vpack.c.bf16 %v1354_v5, %v1353_v3  ;;  %v1065_v8 = vpop.f32.mrf.mxu2  ;;  %v1145_v9 = vpop.f32.mrf.mxu3 }
 0x144   : > { %v1066_v12 = vadd.f32 %v2679_v41, %v1065_v8  ;;  %v1146_v13 = vadd.f32 %v2679_v41, %v1145_v9  ;;  %v908_v14 = vpop.f32.mrf.mxu0  ;;  %v988_v15 = vpop.f32.mrf.mxu1 }
 0x145   : > { %2480 = vst [vmem:[%s2696_s29 + $0x50] sm:$0xff] %v2204_v6   ;;  %v909_v22 = vadd.f32 %v2679_v41, %v908_v14  ;;  %v989_v23 = vadd.f32 %v2679_v41, %v988_v15 }
 0x146   : > { %2496 = vst [vmem:[%s2696_s29 + $0xd0] sm:$0xff] %v2284_v7   ;;  %v1258_v16 = vmul.f32 0.1, %v1066_v12  ;;  %v1290_v17 = vmul.f32 0.1, %v1146_v13 }
 0x147   : > { %v1195_v30 = vmul.f32 0.1, %v909_v22  ;;  %v1227_v31 = vmul.f32 0.1, %v989_v23 }
 0x148   : > { %v1386_v20 = vmax.f32 %v1066_v12, %v1258_v16  ;;  %v1418_v21 = vmax.f32 %v1146_v13, %v1290_v17 }
 0x149   : > { %v1323_v39 = vmax.f32 %v909_v22, %v1195_v30  ;;  %v1355_v40 = vmax.f32 %v989_v23, %v1227_v31 }
 0x14a   : > { %v2364_v24 = vpack.c.bf16 %v1386_v20, %v1385_v18  ;;  %v2444_v25 = vpack.c.bf16 %v1418_v21, %v1417_v19 }
 0x14b   : > { %v1068_v26 = vpop.f32.mrf.mxu2  ;;  %v1148_v27 = vpop.f32.mrf.mxu3 }
 0x14c   : > { %2512 = vst [vmem:[%s2696_s29 + $0x150] sm:$0xff] %v2364_v24   ;;  %v910_v28 = vpop.f32.mrf.mxu0  ;;  %v990_v29 = vpop.f32.mrf.mxu1  ;;  %v1069_v37 = vadd.f32 %v2887_v36, %v1068_v26  ;;  %v1149_v38 = vadd.f32 %v2887_v36, %v1148_v27 }
 0x14d   : > { %2528 = vst [vmem:[%s2696_s29 + $0x1d0] sm:$0xff] %v2444_v25   ;;  %v911_v32 = vadd.f32 %v2679_v41, %v910_v28  ;;  %v991_v33 = vadd.f32 %v2679_v41, %v990_v29 }
 0x14e   : > { %v1259_v47 = vmul.f32 0.1, %v1069_v37  ;;  %v1291_v48 = vmul.f32 0.1, %v1149_v38 }
 0x14f   : > { %v1196_v34 = vmul.f32 0.1, %v911_v32  ;;  %v1228_v35 = vmul.f32 0.1, %v991_v33 }
 0x150   : > { %v1387_v55 = vmax.f32 %v1069_v37, %v1259_v47  ;;  %v1419_v56 = vmax.f32 %v1149_v38, %v1291_v48 }
 0x151   : > { %v1324_v42 = vmax.f32 %v911_v32, %v1196_v34  ;;  %v1356_v43 = vmax.f32 %v991_v33, %v1228_v35 }
 0x153   : > { %v2209_v44 = vpack.c.bf16 %v1324_v42, %v1323_v39  ;;  %v2289_v45 = vpack.c.bf16 %v1356_v43, %v1355_v40  ;;  %v1070_v41 = vpop.f32.mrf.mxu2  ;;  %v1150_v46 = vpop.f32.mrf.mxu3 }
 0x154   : > { %v1071_v49 = vadd.f32 %v2887_v36, %v1070_v41  ;;  %v1151_v50 = vadd.f32 %v2887_v36, %v1150_v46  ;;  %v913_v51 = vpop.f32.mrf.mxu0  ;;  %v993_v52 = vpop.f32.mrf.mxu1 }
 0x155   : > { %2481 = vst [vmem:[%s2696_s29 + $0x58] sm:$0xff] %v2209_v44   ;;  %v914_v59 = vadd.f32 %v2887_v36, %v913_v51  ;;  %v994_v60 = vadd.f32 %v2887_v36, %v993_v52 }
 0x156   : > { %2497 = vst [vmem:[%s2696_s29 + $0xd8] sm:$0xff] %v2289_v45   ;;  %v1260_v53 = vmul.f32 0.1, %v1071_v49  ;;  %v1292_v54 = vmul.f32 0.1, %v1151_v50 }
 0x157   : > { %v1197_v3 = vmul.f32 0.1, %v914_v59  ;;  %v1229_v4 = vmul.f32 0.1, %v994_v60 }
 0x158   : > { %v1388_v57 = vmax.f32 %v1071_v49, %v1260_v53  ;;  %v1420_v58 = vmax.f32 %v1151_v50, %v1292_v54 }
 0x159   : > { %v1325_v11 = vmax.f32 %v914_v59, %v1197_v3  ;;  %v1357_v12 = vmax.f32 %v994_v60, %v1229_v4 }
 0x15a   : > { %v2369_v61 = vpack.c.bf16 %v1388_v57, %v1387_v55  ;;  %v2449_v62 = vpack.c.bf16 %v1420_v58, %v1419_v56 }
 0x15b   : > { %v1073_v63 = vpop.f32.mrf.mxu2  ;;  %v1153_v0 = vpop.f32.mrf.mxu3 }
 0x15c   : > { %2513 = vst [vmem:[%s2696_s29 + $0x158] sm:$0xff] %v2369_v61   ;;  %v915_v1 = vpop.f32.mrf.mxu0  ;;  %v995_v2 = vpop.f32.mrf.mxu1  ;;  %v1074_v9 = vadd.f32 %v2887_v36, %v1073_v63  ;;  %v1154_v10 = vadd.f32 %v2887_v36, %v1153_v0 }
 0x15d   : > { %2529 = vst [vmem:[%s2696_s29 + $0x1d8] sm:$0xff] %v2449_v62   ;;  %v916_v5 = vadd.f32 %v2887_v36, %v915_v1  ;;  %v996_v6 = vadd.f32 %v2887_v36, %v995_v2 }
 0x15e   : > { %v1261_v19 = vmul.f32 0.1, %v1074_v9  ;;  %v1293_v20 = vmul.f32 0.1, %v1154_v10 }
 0x15f   : > { %v1198_v7 = vmul.f32 0.1, %v916_v5  ;;  %v1230_v8 = vmul.f32 0.1, %v996_v6 }
 0x160   : > { %v1389_v27 = vmax.f32 %v1074_v9, %v1261_v19  ;;  %v1421_v28 = vmax.f32 %v1154_v10, %v1293_v20 }
 0x161   : > { %v1326_v13 = vmax.f32 %v916_v5, %v1198_v7  ;;  %v1358_v14 = vmax.f32 %v996_v6, %v1230_v8 }
 0x163   : > { %v2214_v15 = vpack.c.bf16 %v1326_v13, %v1325_v11  ;;  %v2294_v16 = vpack.c.bf16 %v1358_v14, %v1357_v12  ;;  %v1075_v17 = vpop.f32.mrf.mxu2  ;;  %v1155_v18 = vpop.f32.mrf.mxu3 }
 0x164   : > { %v1076_v21 = vadd.f32 %v2887_v36, %v1075_v17  ;;  %v1156_v22 = vadd.f32 %v2887_v36, %v1155_v18  ;;  %v918_v23 = vpop.f32.mrf.mxu0  ;;  %v998_v24 = vpop.f32.mrf.mxu1 }
 0x165   : > { %2482 = vst [vmem:[%s2696_s29 + $0x60] sm:$0xff] %v2214_v15   ;;  %v919_v31 = vadd.f32 %v2887_v36, %v918_v23  ;;  %v999_v32 = vadd.f32 %v2887_v36, %v998_v24 }
 0x166   : > { %2498 = vst [vmem:[%s2696_s29 + $0xe0] sm:$0xff] %v2294_v16   ;;  %v1262_v25 = vmul.f32 0.1, %v1076_v21  ;;  %v1294_v26 = vmul.f32 0.1, %v1156_v22 }
 0x167   : > { %v1199_v40 = vmul.f32 0.1, %v919_v31  ;;  %v1231_v42 = vmul.f32 0.1, %v999_v32 }
 0x168   : > { %v1390_v29 = vmax.f32 %v1076_v21, %v1262_v25  ;;  %v1422_v30 = vmax.f32 %v1156_v22, %v1294_v26 }
 0x169   : > { %v1327_v48 = vmax.f32 %v919_v31, %v1199_v40  ;;  %v1359_v49 = vmax.f32 %v999_v32, %v1231_v42 }
 0x16a   : > { %v2374_v33 = vpack.c.bf16 %v1390_v29, %v1389_v27  ;;  %v2454_v34 = vpack.c.bf16 %v1422_v30, %v1421_v28 }
 0x16b   : > { %v1078_v35 = vpop.f32.mrf.mxu2  ;;  %v1158_v37 = vpop.f32.mrf.mxu3 }
 0x16c   : > { %2514 = vst [vmem:[%s2696_s29 + $0x160] sm:$0xff] %v2374_v33   ;;  %v920_v38 = vpop.f32.mrf.mxu0  ;;  %v1000_v39 = vpop.f32.mrf.mxu1  ;;  %v1079_v46 = vadd.f32 %v2887_v36, %v1078_v35  ;;  %v1159_v47 = vadd.f32 %v2887_v36, %v1158_v37 }
 0x16d   : > { %2530 = vst [vmem:[%s2696_s29 + $0x1e0] sm:$0xff] %v2454_v34   ;;  %v921_v43 = vadd.f32 %v2887_v36, %v920_v38  ;;  %v1001_v44 = vadd.f32 %v2887_v36, %v1000_v39 }
 0x16e   : > { %v1263_v56 = vmul.f32 0.1, %v1079_v46  ;;  %v1295_v57 = vmul.f32 0.1, %v1159_v47 }
 0x16f   : > { %v1200_v45 = vmul.f32 0.1, %v921_v43  ;;  %v1232_v41 = vmul.f32 0.1, %v1001_v44 }
 0x170   : > { %v1391_v0 = vmax.f32 %v1079_v46, %v1263_v56  ;;  %v1423_v1 = vmax.f32 %v1159_v47, %v1295_v57 }
 0x171   : > { %v1328_v50 = vmax.f32 %v921_v43, %v1200_v45  ;;  %v1360_v51 = vmax.f32 %v1001_v44, %v1232_v41 }
 0x173   : > { %v2219_v52 = vpack.c.bf16 %v1328_v50, %v1327_v48  ;;  %v2299_v53 = vpack.c.bf16 %v1360_v51, %v1359_v49  ;;  %v1080_v54 = vpop.f32.mrf.mxu2  ;;  %v1160_v55 = vpop.f32.mrf.mxu3 }
 0x174   : > { %v1081_v58 = vadd.f32 %v2887_v36, %v1080_v54  ;;  %v1161_v59 = vadd.f32 %v2887_v36, %v1160_v55  ;;  %v923_v60 = vpop.f32.mrf.mxu0  ;;  %v1003_v61 = vpop.f32.mrf.mxu1 }
 0x175   : > { %2483 = vst [vmem:[%s2696_s29 + $0x68] sm:$0xff] %v2219_v52   ;;  %v924_v4 = vadd.f32 %v2887_v36, %v923_v60  ;;  %v1004_v5 = vadd.f32 %v2887_v36, %v1003_v61 }
 0x176   : > { %2499 = vst [vmem:[%s2696_s29 + $0xe8] sm:$0xff] %v2299_v53   ;;  %v1264_v62 = vmul.f32 0.1, %v1081_v58  ;;  %v1296_v63 = vmul.f32 0.1, %v1161_v59 }
 0x177   : > { %v1201_v12 = vmul.f32 0.1, %v924_v4  ;;  %v1233_v13 = vmul.f32 0.1, %v1004_v5 }
 0x178   : > { %v1392_v2 = vmax.f32 %v1081_v58, %v1264_v62  ;;  %v1424_v3 = vmax.f32 %v1161_v59, %v1296_v63 }
 0x179   : > { %v1329_v20 = vmax.f32 %v924_v4, %v1201_v12  ;;  %v1361_v21 = vmax.f32 %v1004_v5, %v1233_v13 }
 0x17a   : > { %v2379_v6 = vpack.c.bf16 %v1392_v2, %v1391_v0  ;;  %v2459_v7 = vpack.c.bf16 %v1424_v3, %v1423_v1 }
 0x17b   : > { %v1083_v8 = vpop.f32.mrf.mxu2  ;;  %v1163_v9 = vpop.f32.mrf.mxu3 }
 0x17c   : > { %2515 = vst [vmem:[%s2696_s29 + $0x168] sm:$0xff] %v2379_v6   ;;  %v925_v10 = vpop.f32.mrf.mxu0  ;;  %v1005_v11 = vpop.f32.mrf.mxu1  ;;  %v1084_v18 = vadd.f32 %v2887_v36, %v1083_v8  ;;  %v1164_v19 = vadd.f32 %v2887_v36, %v1163_v9 }
 0x17d   : > { %2531 = vst [vmem:[%s2696_s29 + $0x1e8] sm:$0xff] %v2459_v7   ;;  %v926_v14 = vadd.f32 %v2887_v36, %v925_v10  ;;  %v1006_v15 = vadd.f32 %v2887_v36, %v1005_v11 }
 0x17e   : > { %v1265_v28 = vmul.f32 0.1, %v1084_v18  ;;  %v1297_v29 = vmul.f32 0.1, %v1164_v19 }
 0x17f   : > { %v1202_v16 = vmul.f32 0.1, %v926_v14  ;;  %v1234_v17 = vmul.f32 0.1, %v1006_v15 }
 0x180   : > { %v1393_v37 = vmax.f32 %v1084_v18, %v1265_v28  ;;  %v1425_v38 = vmax.f32 %v1164_v19, %v1297_v29 }
 0x181   : > { %v1330_v22 = vmax.f32 %v926_v14, %v1202_v16  ;;  %v1362_v23 = vmax.f32 %v1006_v15, %v1234_v17 }
 0x183   : > { %v2224_v24 = vpack.c.bf16 %v1330_v22, %v1329_v20  ;;  %v2304_v25 = vpack.c.bf16 %v1362_v23, %v1361_v21  ;;  %v1085_v26 = vpop.f32.mrf.mxu2  ;;  %v1165_v27 = vpop.f32.mrf.mxu3 }
 0x184   : > { %v1086_v30 = vadd.f32 %v2887_v36, %v1085_v26  ;;  %v1166_v31 = vadd.f32 %v2887_v36, %v1165_v27  ;;  %v928_v32 = vpop.f32.mrf.mxu0  ;;  %v1008_v33 = vpop.f32.mrf.mxu1 }
 0x185   : > { %2484 = vst [vmem:[%s2696_s29 + $0x70] sm:$0xff] %v2224_v24   ;;  %v929_v42 = vadd.f32 %v2887_v36, %v928_v32  ;;  %v1009_v43 = vadd.f32 %v2887_v36, %v1008_v33 }
 0x186   : > { %2500 = vst [vmem:[%s2696_s29 + $0xf0] sm:$0xff] %v2304_v25   ;;  %v1266_v34 = vmul.f32 0.1, %v1086_v30  ;;  %v1298_v35 = vmul.f32 0.1, %v1166_v31 }
 0x187   : > { %v1203_v49 = vmul.f32 0.1, %v929_v42  ;;  %v1235_v50 = vmul.f32 0.1, %v1009_v43 }
 0x188   : > { %v1394_v39 = vmax.f32 %v1086_v30, %v1266_v34  ;;  %v1426_v40 = vmax.f32 %v1166_v31, %v1298_v35 }
 0x189   : > { %v1331_v57 = vmax.f32 %v929_v42, %v1203_v49  ;;  %v1363_v58 = vmax.f32 %v1009_v43, %v1235_v50 }
 0x18a   : > { %v2384_v44 = vpack.c.bf16 %v1394_v39, %v1393_v37  ;;  %v2464_v45 = vpack.c.bf16 %v1426_v40, %v1425_v38 }
 0x18b   : > { %v1088_v41 = vpop.f32.mrf.mxu2  ;;  %v1168_v46 = vpop.f32.mrf.mxu3 }
 0x18c   : > { %2516 = vst [vmem:[%s2696_s29 + $0x170] sm:$0xff] %v2384_v44   ;;  %v930_v47 = vpop.f32.mrf.mxu0  ;;  %v1010_v48 = vpop.f32.mrf.mxu1  ;;  %v1089_v55 = vadd.f32 %v2887_v36, %v1088_v41  ;;  %v1169_v56 = vadd.f32 %v2887_v36, %v1168_v46 }
 0x18d   : > { %2532 = vst [vmem:[%s2696_s29 + $0x1f0] sm:$0xff] %v2464_v45   ;;  %v931_v51 = vadd.f32 %v2887_v36, %v930_v47  ;;  %v1011_v52 = vadd.f32 %v2887_v36, %v1010_v48 }
 0x18e   : > { %v1267_v1 = vmul.f32 0.1, %v1089_v55  ;;  %v1299_v2 = vmul.f32 0.1, %v1169_v56 }
 0x18f   : > { %v1204_v53 = vmul.f32 0.1, %v931_v51  ;;  %v1236_v54 = vmul.f32 0.1, %v1011_v52 }
 0x190   : > { %v1395_v7 = vmax.f32 %v1089_v55, %v1267_v1  ;;  %v1427_v8 = vmax.f32 %v1169_v56, %v1299_v2 }
 0x191   : > { %v1332_v59 = vmax.f32 %v931_v51, %v1204_v53  ;;  %v1364_v60 = vmax.f32 %v1011_v52, %v1236_v54 }
 0x193   : > { %v2229_v61 = vpack.c.bf16 %v1332_v59, %v1331_v57  ;;  %v2309_v62 = vpack.c.bf16 %v1364_v60, %v1363_v58  ;;  %v1090_v63 = vpop.f32.mrf.mxu2  ;;  %v1170_v0 = vpop.f32.mrf.mxu3 }
 0x194   : > { %v1091_v3 = vadd.f32 %v2887_v36, %v1090_v63  ;;  %v1171_v4 = vadd.f32 %v2887_v36, %v1170_v0 }
 0x195   : > { %2485 = vst [vmem:[%s2696_s29 + $0x78] sm:$0xff] %v2229_v61  }
 0x196   : > { %2501 = vst [vmem:[%s2696_s29 + $0xf8] sm:$0xff] %v2309_v62   ;;  %v1268_v5 = vmul.f32 0.1, %v1091_v3  ;;  %v1300_v6 = vmul.f32 0.1, %v1171_v4 }
 0x198   : > { %v1396_v9 = vmax.f32 %v1091_v3, %v1268_v5  ;;  %v1428_v10 = vmax.f32 %v1171_v4, %v1300_v6 }
 0x19a   : > { %v2389_v11 = vpack.c.bf16 %v1396_v9, %v1395_v7  ;;  %v2469_v12 = vpack.c.bf16 %v1428_v10, %v1427_v8 }
 0x19c   : > { %2517 = vst [vmem:[%s2696_s29 + $0x178] sm:$0xff] %v2389_v11  }
 0x19d   : > { %2533 = vst [vmem:[%s2696_s29 + $0x1f8] sm:$0xff] %v2469_v12  }
 0x19e PF: > { %s13_s12 = sadd.s32 1, %s2559_s12  }
 0x19f   : > { %p10_p4 = scmp.ge.s32.totalorder %s13_s12, 4  }
 0x1a1   :  { %12 = sbr.rel (!%p10_p4) target bundleno = 1 (0x1), region = 62 }

// kernel: darknet_forward.12
= control target key start
LH: loop header
LB: loop body
LE: loop exit
PB: predicated region body
PF: predicated region fallthrough
CT: control target
= control target key end

     0   :  { %s932_s12 = smov 0   ;;  %s1060_s0 = inlined_call_operand.vmem [shape: bf16[512,80], index: 0, kind: input, shape index: {}]   ;;  %s1061_s1 = inlined_call_operand.vmem [shape: bf16[80,128], index: 1, kind: input, shape index: {}]   ;;  %s1062_s2 = inlined_call_operand.vmem [shape: f32[1,128], index: 2, kind: input, shape index: {}]   ;;  %s1063_s3 = inlined_call_operand.vmem [shape: bf16[512,128], index: 3, kind: output, shape index: {}]  }
   0x1 LB: > { %s653_s13 = sadd.s32 4294967295, %s910_s12   ;;  %p657_p0 = scmp.ge.s32.totalorder %s910_s12, 1  ;;  %s910_s12 = sphi %s932_s12, %s13_s12  }
   0x2   : > { %p138_p1 = scmp.lt.s32.totalorder %s910_s12, 3 }
   0x4   : > { %p139_p2 = pnand %p657_p0, %p138_p1 }
   0x5   : > { %s658_s16 = sshll.u32 (!%p139_p2), %s653_s13, 5 }
   0x6   : > { %142 = sbr.rel (%p139_p2) target bundleno = 230 (0xe6), region = 32  ;;  %p163_p3 = scmp.lt.s32.totalorder (!%p139_p2), %s658_s16, 63 }
   0xb   : > { %v784_v0 = vld [vmem:[%s1061_s1 + $0x20] sm:$0xff]  ;;  %v783_v1 = vld [vmem:[%s1061_s1 + $0x18] sm:$0xff]  ;;  %v782_v2 = vld [vmem:[%s1061_s1 + $0x10] sm:$0xff]  ;;  %s1065_s16 = smov (!%p163_p3, %s658_s16), 63  ;;  %vm331_vm0 = vcmask 654336  }
   0xc   : > { %383 = vmatpush.bf16.msra.mxu0 %v784_v0  ;;  %880 = vmatpush.bf16.msra.mxu1 %v784_v0  ;;  %v781_v3 = vld [vmem:[%s1061_s1 + $0x8] sm:$0xff]  ;;  %s659_s23 = sshll.u32 %s1065_s16, 2  ;;  %v780_v4 = vld [vmem:[%s1061_s1] sm:$0xff] }
   0xd   : > { %881 = vmatpush.bf16.msra.mxu2 %v784_v0  ;;  %882 = vmatpush.bf16.msra.mxu3 %v784_v0  ;;  %s963_s28 = scalar_lea.vmem %s1060_s0, %s659_s23  ;;  %v1000_v23 = vld [vmem:[%s1062_s2] ss:$0 sm:$0xff]  ;;  %s1013_s6 = scalar_lea.vmem %s1063_s3, %s659_s23 }
   0xe   : > { %v764_v5 = vld [vmem:[%s963_s28] sm:$0xff]  ;;  %v765_v9 = vld [vmem:[%s963_s28 + $0x8] sm:$0xff]  ;;  %v766_v13 = vld [vmem:[%s963_s28 + $0x10] sm:$0xff] }
   0xf   : > { %v768_v6 = vld [vmem:[%s963_s28 + $0x20] sm:$0xff]  ;;  %v769_v10 = vld [vmem:[%s963_s28 + $0x28] sm:$0xff]  ;;  %v770_v14 = vld [vmem:[%s963_s28 + $0x30] sm:$0xff] }
  0x10   : > { %384 = vmatpush.bf16.msra.mxu0 %v783_v1  ;;  %883 = vmatpush.bf16.msra.mxu1 %v783_v1  ;;  %v772_v7 = vld [vmem:[%s963_s28 + $0x40] sm:$0xff]  ;;  %v773_v11 = vld [vmem:[%s963_s28 + $0x48] sm:$0xff]  ;;  %v774_v15 = vld [vmem:[%s963_s28 + $0x50] sm:$0xff] }
  0x11   : > { %884 = vmatpush.bf16.msra.mxu2 %v783_v1  ;;  %885 = vmatpush.bf16.msra.mxu3 %v783_v1  ;;  %v776_v8 = vld [vmem:[%s963_s28 + $0x60] sm:$0xff]  ;;  %v777_v12 = vld [vmem:[%s963_s28 + $0x68] sm:$0xff]  ;;  %v778_v16 = vld [vmem:[%s963_s28 + $0x70] sm:$0xff] }
  0x12   : > { %v767_v17 = vld [vmem:[%s963_s28 + $0x18] sm:$0xff] }
  0x13   : > { %v771_v18 = vld [vmem:[%s963_s28 + $0x38] sm:$0xff] }
  0x14   : > { %385 = vmatpush.bf16.msra.mxu0 %v782_v2  ;;  %886 = vmatpush.bf16.msra.mxu1 %v782_v2  ;;  %v775_v19 = vld [vmem:[%s963_s28 + $0x58] sm:$0xff] }
  0x15   : > { %887 = vmatpush.bf16.msra.mxu2 %v782_v2  ;;  %888 = vmatpush.bf16.msra.mxu3 %v782_v2  ;;  %v779_v20 = vld [vmem:[%s963_s28 + $0x78] sm:$0xff] }
  0x18   : > { %386 = vmatpush.bf16.msra.mxu0 %v781_v3  ;;  %889 = vmatpush.bf16.msra.mxu1 %v781_v3 }
  0x19   : > { %890 = vmatpush.bf16.msra.mxu2 %v781_v3  ;;  %891 = vmatpush.bf16.msra.mxu3 %v781_v3 }
  0x1c   : > { %387 = vmatpush.bf16.msra.mxu0 %v780_v4  ;;  %892 = vmatpush.bf16.msra.mxu1 %v780_v4 }
  0x1d   : > { %893 = vmatpush.bf16.msra.mxu2 %v780_v4  ;;  %894 = vmatpush.bf16.msra.mxu3 %v780_v4 }
  0x1f   : > { %746 = vmatmul.msk.bf16.vlgmr.msra.gmra.mxu0 %vm331_vm0, %v764_v5  ;;  %750 = vmatmul.msk.bf16.vlgmr.msra.gmra.mxu1 %vm331_vm0, %v768_v6 }
  0x20   : > { %754 = vmatmul.msk.bf16.vlgmr.msra.gmra.mxu2 %vm331_vm0, %v772_v7  ;;  %758 = vmatmul.msk.bf16.vlgmr.msra.gmra.mxu3 %vm331_vm0, %v776_v8 }
  0x2f   : > { %747 = vmatmul.msk.bf16.gmra.mxu0 %vm331_vm0, %v765_v9  ;;  %751 = vmatmul.msk.bf16.gmra.mxu1 %vm331_vm0, %v769_v10 }
  0x30   : > { %755 = vmatmul.msk.bf16.gmra.mxu2 %vm331_vm0, %v773_v11  ;;  %759 = vmatmul.msk.bf16.gmra.mxu3 %vm331_vm0, %v777_v12 }
  0x3f   : > { %748 = vmatmul.msk.bf16.gmra.mxu0 %vm331_vm0, %v766_v13  ;;  %752 = vmatmul.msk.bf16.gmra.mxu1 %vm331_vm0, %v770_v14 }
  0x40   : > { %756 = vmatmul.msk.bf16.gmra.mxu2 %vm331_vm0, %v774_v15  ;;  %760 = vmatmul.msk.bf16.gmra.mxu3 %vm331_vm0, %v778_v16 }
  0x4f   : > { %749 = vmatmul.msk.bf16.gmra.mxu0 %vm331_vm0, %v767_v17  ;;  %753 = vmatmul.msk.bf16.gmra.mxu1 %vm331_vm0, %v771_v18 }
  0x50   : > { %757 = vmatmul.msk.bf16.gmra.mxu2 %vm331_vm0, %v775_v19  ;;  %761 = vmatmul.msk.bf16.gmra.mxu3 %vm331_vm0, %v779_v20 }
  0x9c   : > { %v389_v21 = vpop.f32.mrf.mxu0  ;;  %v409_v22 = vpop.f32.mrf.mxu1 }
  0x9d   : > { %v390_v24 = vadd.f32 %v1000_v23, %v389_v21  ;;  %v410_v25 = vadd.f32 %v1000_v23, %v409_v22 }
  0x9f   : > { %v469_v30 = vmul.f32 0.1, %v390_v24  ;;  %v477_v31 = vmul.f32 0.1, %v410_v25 }
  0xa1   : > { %v501_v38 = vmax.f32 %v390_v24, %v469_v30  ;;  %v509_v39 = vmax.f32 %v410_v25, %v477_v31 }
  0xa3   : > { %v429_v26 = vpop.f32.mrf.mxu2  ;;  %v449_v27 = vpop.f32.mrf.mxu3 }
  0xa4   : > { %v391_v28 = vpop.f32.mrf.mxu0  ;;  %v411_v29 = vpop.f32.mrf.mxu1  ;;  %v430_v36 = vadd.f32 %v1000_v23, %v429_v26  ;;  %v450_v37 = vadd.f32 %v1000_v23, %v449_v27 }
  0xa5   : > { %v392_v32 = vadd.f32 %v1000_v23, %v391_v28  ;;  %v412_v33 = vadd.f32 %v1000_v23, %v411_v29 }
  0xa6   : > { %v485_v46 = vmul.f32 0.1, %v430_v36  ;;  %v493_v47 = vmul.f32 0.1, %v450_v37 }
  0xa7   : > { %v470_v34 = vmul.f32 0.1, %v392_v32  ;;  %v478_v35 = vmul.f32 0.1, %v412_v33 }
  0xa8   : > { %v517_v54 = vmax.f32 %v430_v36, %v485_v46  ;;  %v525_v55 = vmax.f32 %v450_v37, %v493_v47 }
  0xa9   : > { %v502_v40 = vmax.f32 %v392_v32, %v470_v34  ;;  %v510_v41 = vmax.f32 %v412_v33, %v478_v35 }
  0xab   : > { %v788_v42 = vpack.c.bf16 %v502_v40, %v501_v38  ;;  %v808_v43 = vpack.c.bf16 %v510_v41, %v509_v39  ;;  %v431_v44 = vpop.f32.mrf.mxu2  ;;  %v451_v45 = vpop.f32.mrf.mxu3 }
  0xac   : > { %v432_v48 = vadd.f32 %v1000_v23, %v431_v44  ;;  %v452_v49 = vadd.f32 %v1000_v23, %v451_v45  ;;  %v394_v50 = vpop.f32.mrf.mxu0  ;;  %v414_v51 = vpop.f32.mrf.mxu1 }
  0xad   : > { %789 = vst [vmem:[%s1013_s6] sm:$0xff] %v788_v42   ;;  %v395_v58 = vadd.f32 %v1000_v23, %v394_v50  ;;  %v415_v59 = vadd.f32 %v1000_v23, %v414_v51 }
  0xae   : > { %868 = vst [vmem:[%s1013_s6 + $0x20] sm:$0xff] %v808_v43   ;;  %v486_v52 = vmul.f32 0.1, %v432_v48  ;;  %v494_v53 = vmul.f32 0.1, %v452_v49 }
  0xaf   : > { %v471_v2 = vmul.f32 0.1, %v395_v58  ;;  %v479_v3 = vmul.f32 0.1, %v415_v59 }
  0xb0   : > { %v518_v56 = vmax.f32 %v432_v48, %v486_v52  ;;  %v526_v57 = vmax.f32 %v452_v49, %v494_v53 }
  0xb1   : > { %v503_v10 = vmax.f32 %v395_v58, %v471_v2  ;;  %v511_v11 = vmax.f32 %v415_v59, %v479_v3 }
  0xb2   : > { %v828_v60 = vpack.c.bf16 %v518_v56, %v517_v54  ;;  %v848_v61 = vpack.c.bf16 %v526_v57, %v525_v55 }
  0xb3   : > { %v434_v62 = vpop.f32.mrf.mxu2  ;;  %v454_v63 = vpop.f32.mrf.mxu3 }
  0xb4   : > { %872 = vst [vmem:[%s1013_s6 + $0x40] sm:$0xff] %v828_v60   ;;  %v396_v0 = vpop.f32.mrf.mxu0  ;;  %v416_v1 = vpop.f32.mrf.mxu1  ;;  %v435_v8 = vadd.f32 %v1000_v23, %v434_v62  ;;  %v455_v9 = vadd.f32 %v1000_v23, %v454_v63 }
  0xb5   : > { %876 = vst [vmem:[%s1013_s6 + $0x60] sm:$0xff] %v848_v61   ;;  %v397_v4 = vadd.f32 %v1000_v23, %v396_v0  ;;  %v417_v5 = vadd.f32 %v1000_v23, %v416_v1 }
  0xb6   : > { %v487_v18 = vmul.f32 0.1, %v435_v8  ;;  %v495_v19 = vmul.f32 0.1, %v455_v9 }
  0xb7   : > { %v472_v6 = vmul.f32 0.1, %v397_v4  ;;  %v480_v7 = vmul.f32 0.1, %v417_v5 }
  0xb8   : > { %v519_v27 = vmax.f32 %v435_v8, %v487_v18  ;;  %v527_v28 = vmax.f32 %v455_v9, %v495_v19 }
  0xb9   : > { %v504_v12 = vmax.f32 %v397_v4, %v472_v6  ;;  %v512_v13 = vmax.f32 %v417_v5, %v480_v7 }
  0xbb   : > { %v793_v14 = vpack.c.bf16 %v504_v12, %v503_v10  ;;  %v813_v15 = vpack.c.bf16 %v512_v13, %v511_v11  ;;  %v436_v16 = vpop.f32.mrf.mxu2  ;;  %v456_v17 = vpop.f32.mrf.mxu3 }
  0xbc   : > { %v437_v20 = vadd.f32 %v1000_v23, %v436_v16  ;;  %v457_v21 = vadd.f32 %v1000_v23, %v456_v17  ;;  %v399_v22 = vpop.f32.mrf.mxu0  ;;  %v419_v24 = vpop.f32.mrf.mxu1 }
  0xbd   : > { %865 = vst [vmem:[%s1013_s6 + $0x8] sm:$0xff] %v793_v14   ;;  %v400_v31 = vadd.f32 %v1000_v23, %v399_v22  ;;  %v420_v32 = vadd.f32 %v1000_v23, %v419_v24 }
  0xbe   : > { %869 = vst [vmem:[%s1013_s6 + $0x28] sm:$0xff] %v813_v15   ;;  %v488_v25 = vmul.f32 0.1, %v437_v20  ;;  %v496_v26 = vmul.f32 0.1, %v457_v21 }
  0xbf   : > { %v473_v39 = vmul.f32 0.1, %v400_v31  ;;  %v481_v40 = vmul.f32 0.1, %v420_v32 }
  0xc0   : > { %v520_v29 = vmax.f32 %v437_v20, %v488_v25  ;;  %v528_v30 = vmax.f32 %v457_v21, %v496_v26 }
  0xc1   : > { %v505_v47 = vmax.f32 %v400_v31, %v473_v39  ;;  %v513_v48 = vmax.f32 %v420_v32, %v481_v40 }
  0xc2   : > { %v833_v33 = vpack.c.bf16 %v520_v29, %v519_v27  ;;  %v853_v34 = vpack.c.bf16 %v528_v30, %v527_v28 }
  0xc3   : > { %v439_v35 = vpop.f32.mrf.mxu2  ;;  %v459_v36 = vpop.f32.mrf.mxu3 }
  0xc4   : > { %873 = vst [vmem:[%s1013_s6 + $0x48] sm:$0xff] %v833_v33   ;;  %v401_v37 = vpop.f32.mrf.mxu0  ;;  %v421_v38 = vpop.f32.mrf.mxu1  ;;  %v440_v45 = vadd.f32 %v1000_v23, %v439_v35  ;;  %v460_v46 = vadd.f32 %v1000_v23, %v459_v36 }
  0xc5   : > { %877 = vst [vmem:[%s1013_s6 + $0x68] sm:$0xff] %v853_v34   ;;  %v402_v41 = vadd.f32 %v1000_v23, %v401_v37  ;;  %v422_v42 = vadd.f32 %v1000_v23, %v421_v38 }
  0xc6   : > { %v489_v55 = vmul.f32 0.1, %v440_v45  ;;  %v497_v56 = vmul.f32 0.1, %v460_v46 }
  0xc7   : > { %v474_v43 = vmul.f32 0.1, %v402_v41  ;;  %v482_v44 = vmul.f32 0.1, %v422_v42 }
  0xc8   : > { %v521_v63 = vmax.f32 %v440_v45, %v489_v55  ;;  %v529_v0 = vmax.f32 %v460_v46, %v497_v56 }
  0xc9   : > { %v506_v49 = vmax.f32 %v402_v41, %v474_v43  ;;  %v514_v50 = vmax.f32 %v422_v42, %v482_v44 }
  0xcb   : > { %v798_v51 = vpack.c.bf16 %v506_v49, %v505_v47  ;;  %v818_v52 = vpack.c.bf16 %v514_v50, %v513_v48  ;;  %v441_v53 = vpop.f32.mrf.mxu2  ;;  %v461_v54 = vpop.f32.mrf.mxu3 }
  0xcc   : > { %v442_v57 = vadd.f32 %v1000_v23, %v441_v53  ;;  %v462_v58 = vadd.f32 %v1000_v23, %v461_v54  ;;  %v404_v59 = vpop.f32.mrf.mxu0  ;;  %v424_v60 = vpop.f32.mrf.mxu1 }
  0xcd   : > { %866 = vst [vmem:[%s1013_s6 + $0x10] sm:$0xff] %v798_v51   ;;  %v405_v3 = vadd.f32 %v1000_v23, %v404_v59  ;;  %v425_v4 = vadd.f32 %v1000_v23, %v424_v60 }
  0xce   : > { %870 = vst [vmem:[%s1013_s6 + $0x30] sm:$0xff] %v818_v52   ;;  %v490_v61 = vmul.f32 0.1, %v442_v57  ;;  %v498_v62 = vmul.f32 0.1, %v462_v58 }
  0xcf   : > { %v475_v11 = vmul.f32 0.1, %v405_v3  ;;  %v483_v12 = vmul.f32 0.1, %v425_v4 }
  0xd0   : > { %v522_v1 = vmax.f32 %v442_v57, %v490_v61  ;;  %v530_v2 = vmax.f32 %v462_v58, %v498_v62 }
  0xd1   : > { %v507_v19 = vmax.f32 %v405_v3, %v475_v11  ;;  %v515_v20 = vmax.f32 %v425_v4, %v483_v12 }
  0xd2   : > { %v838_v5 = vpack.c.bf16 %v522_v1, %v521_v63  ;;  %v858_v6 = vpack.c.bf16 %v530_v2, %v529_v0 }
  0xd3   : > { %v444_v7 = vpop.f32.mrf.mxu2  ;;  %v464_v8 = vpop.f32.mrf.mxu3 }
  0xd4   : > { %874 = vst [vmem:[%s1013_s6 + $0x50] sm:$0xff] %v838_v5   ;;  %v406_v9 = vpop.f32.mrf.mxu0  ;;  %v426_v10 = vpop.f32.mrf.mxu1  ;;  %v445_v17 = vadd.f32 %v1000_v23, %v444_v7  ;;  %v465_v18 = vadd.f32 %v1000_v23, %v464_v8 }
  0xd5   : > { %878 = vst [vmem:[%s1013_s6 + $0x70] sm:$0xff] %v858_v6   ;;  %v407_v13 = vadd.f32 %v1000_v23, %v406_v9  ;;  %v427_v14 = vadd.f32 %v1000_v23, %v426_v10 }
  0xd6   : > { %v491_v28 = vmul.f32 0.1, %v445_v17  ;;  %v499_v29 = vmul.f32 0.1, %v465_v18 }
  0xd7   : > { %v476_v15 = vmul.f32 0.1, %v407_v13  ;;  %v484_v16 = vmul.f32 0.1, %v427_v14 }
  0xd8   : > { %v523_v34 = vmax.f32 %v445_v17, %v491_v28  ;;  %v531_v35 = vmax.f32 %v465_v18, %v499_v29 }
  0xd9   : > { %v508_v21 = vmax.f32 %v407_v13, %v476_v15  ;;  %v516_v22 = vmax.f32 %v427_v14, %v484_v16 }
  0xdb   : > { %v803_v24 = vpack.c.bf16 %v508_v21, %v507_v19  ;;  %v823_v25 = vpack.c.bf16 %v516_v22, %v515_v20  ;;  %v446_v26 = vpop.f32.mrf.mxu2  ;;  %v466_v27 = vpop.f32.mrf.mxu3 }
  0xdc   : > { %v447_v30 = vadd.f32 %v1000_v23, %v446_v26  ;;  %v467_v31 = vadd.f32 %v1000_v23, %v466_v27 }
  0xdd   : > { %867 = vst [vmem:[%s1013_s6 + $0x18] sm:$0xff] %v803_v24  }
  0xde   : > { %871 = vst [vmem:[%s1013_s6 + $0x38] sm:$0xff] %v823_v25   ;;  %v492_v32 = vmul.f32 0.1, %v447_v30  ;;  %v500_v33 = vmul.f32 0.1, %v467_v31 }
  0xe0   : > { %v524_v36 = vmax.f32 %v447_v30, %v492_v32  ;;  %v532_v37 = vmax.f32 %v467_v31, %v500_v33 }
  0xe2   : > { %v843_v38 = vpack.c.bf16 %v524_v36, %v523_v34  ;;  %v863_v39 = vpack.c.bf16 %v532_v37, %v531_v35 }
  0xe4   : > { %875 = vst [vmem:[%s1013_s6 + $0x58] sm:$0xff] %v843_v38  }
  0xe5   : > { %879 = vst [vmem:[%s1013_s6 + $0x78] sm:$0xff] %v863_v39  }
  0xe6 PF: > { %s13_s12 = sadd.s32 1, %s910_s12  }
  0xe7   : > { %p10_p4 = scmp.ge.s32.totalorder %s13_s12, 4  }
  0xe9   :  { %12 = sbr.rel (!%p10_p4) target bundleno = 1 (0x1), region = 62 }

// kernel: darknet_forward.14
= control target key start
LH: loop header
LB: loop body
LE: loop exit
PB: predicated region body
PF: predicated region fallthrough
CT: control target
= control target key end

     0   :  { %vm91_vm0 = vcmask 261120   ;;  %s448_s1 = inlined_call_operand.vmem [shape: bf16[32,128], index: 1, kind: input, shape index: {}]   ;;  %s449_s0 = inlined_call_operand.vmem [shape: bf16[128,32], index: 0, kind: input, shape index: {}]   ;;  %s450_s2 = inlined_call_operand.vmem [shape: f32[1,128], index: 2, kind: input, shape index: {}]   ;;  %s451_s3 = inlined_call_operand.vmem [shape: bf16[128,128], index: 3, kind: output, shape index: {}]  }
   0x1   :  { %v290_v0 = vld [vmem:[%s448_s1 + $0x8] sm:$0xff]  ;;  %v289_v1 = vld [vmem:[%s448_s1] sm:$0xff]  ;;  %v283_v3 = vld [vmem:[%s449_s0 + $0x10] sm:$0xff] }
   0x2   :  { %122 = vmatpush.bf16.msra.mxu0 %v290_v0  ;;  %338 = vmatpush.bf16.msra.mxu1 %v290_v0  ;;  %v281_v2 = vld [vmem:[%s449_s0] sm:$0xff]  ;;  %v287_v5 = vld [vmem:[%s449_s0 + $0x30] sm:$0xff]  ;;  %v282_v6 = vld [vmem:[%s449_s0 + $0x8] sm:$0xff] }
   0x3   :  { %339 = vmatpush.bf16.msra.mxu2 %v290_v0  ;;  %340 = vmatpush.bf16.msra.mxu3 %v290_v0  ;;  %v285_v4 = vld [vmem:[%s449_s0 + $0x20] sm:$0xff]  ;;  %v284_v7 = vld [vmem:[%s449_s0 + $0x18] sm:$0xff]  ;;  %v286_v8 = vld [vmem:[%s449_s0 + $0x28] sm:$0xff] }
   0x4   :  { %v288_v9 = vld [vmem:[%s449_s0 + $0x38] sm:$0xff]  ;;  %v406_v12 = vld [vmem:[%s450_s2] ss:$0 sm:$0xff] }
   0x6   :  { %123 = vmatpush.bf16.msra.mxu0 %v289_v1  ;;  %341 = vmatpush.bf16.msra.mxu1 %v289_v1 }
   0x7   :  { %342 = vmatpush.bf16.msra.mxu2 %v289_v1  ;;  %343 = vmatpush.bf16.msra.mxu3 %v289_v1 }
   0x9   :  { %273 = vmatmul.msk.bf16.vlgmr.msra.gmra.mxu0 %vm91_vm0, %v281_v2  ;;  %275 = vmatmul.msk.bf16.vlgmr.msra.gmra.mxu1 %vm91_vm0, %v283_v3 }
   0xa   :  { %277 = vmatmul.msk.bf16.vlgmr.msra.gmra.mxu2 %vm91_vm0, %v285_v4  ;;  %279 = vmatmul.msk.bf16.vlgmr.msra.gmra.mxu3 %vm91_vm0, %v287_v5 }
  0x19   :  { %274 = vmatmul.msk.bf16.gmra.mxu0 %vm91_vm0, %v282_v6  ;;  %276 = vmatmul.msk.bf16.gmra.mxu1 %vm91_vm0, %v284_v7 }
  0x1a   :  { %278 = vmatmul.msk.bf16.gmra.mxu2 %vm91_vm0, %v286_v8  ;;  %280 = vmatmul.msk.bf16.gmra.mxu3 %vm91_vm0, %v288_v9 }
  0x86   :  { %v125_v10 = vpop.f32.mrf.mxu0  ;;  %v135_v11 = vpop.f32.mrf.mxu1 }
  0x87   :  { %v126_v13 = vadd.f32 %v406_v12, %v125_v10  ;;  %v136_v14 = vadd.f32 %v406_v12, %v135_v11 }
  0x89   :  { %v165_v19 = vmul.f32 0.1, %v126_v13  ;;  %v169_v20 = vmul.f32 0.1, %v136_v14 }
  0x8b   :  { %v181_v27 = vmax.f32 %v126_v13, %v165_v19  ;;  %v185_v28 = vmax.f32 %v136_v14, %v169_v20 }
  0x8d   :  { %v145_v15 = vpop.f32.mrf.mxu2  ;;  %v155_v16 = vpop.f32.mrf.mxu3 }
  0x8e   :  { %v127_v17 = vpop.f32.mrf.mxu0  ;;  %v137_v18 = vpop.f32.mrf.mxu1  ;;  %v146_v25 = vadd.f32 %v406_v12, %v145_v15  ;;  %v156_v26 = vadd.f32 %v406_v12, %v155_v16 }
  0x8f   :  { %v128_v21 = vadd.f32 %v406_v12, %v127_v17  ;;  %v138_v22 = vadd.f32 %v406_v12, %v137_v18 }
  0x90   :  { %v173_v35 = vmul.f32 0.1, %v146_v25  ;;  %v177_v36 = vmul.f32 0.1, %v156_v26 }
  0x91   :  { %v166_v23 = vmul.f32 0.1, %v128_v21  ;;  %v170_v24 = vmul.f32 0.1, %v138_v22 }
  0x92   :  { %v189_v43 = vmax.f32 %v146_v25, %v173_v35  ;;  %v193_v44 = vmax.f32 %v156_v26, %v177_v36 }
  0x93   :  { %v182_v29 = vmax.f32 %v128_v21, %v166_v23  ;;  %v186_v30 = vmax.f32 %v138_v22, %v170_v24 }
  0x95   :  { %v294_v31 = vpack.c.bf16 %v182_v29, %v181_v27  ;;  %v304_v32 = vpack.c.bf16 %v186_v30, %v185_v28  ;;  %v147_v33 = vpop.f32.mrf.mxu2  ;;  %v157_v34 = vpop.f32.mrf.mxu3 }
  0x96   :  { %v148_v37 = vadd.f32 %v406_v12, %v147_v33  ;;  %v158_v38 = vadd.f32 %v406_v12, %v157_v34  ;;  %v130_v39 = vpop.f32.mrf.mxu0  ;;  %v140_v40 = vpop.f32.mrf.mxu1 }
  0x97   :  { %295 = vst [vmem:[%s451_s3] sm:$0xff] %v294_v31   ;;  %v131_v47 = vadd.f32 %v406_v12, %v130_v39  ;;  %v141_v48 = vadd.f32 %v406_v12, %v140_v40 }
  0x98   :  { %332 = vst [vmem:[%s451_s3 + $0x10] sm:$0xff] %v304_v32   ;;  %v174_v41 = vmul.f32 0.1, %v148_v37  ;;  %v178_v42 = vmul.f32 0.1, %v158_v38 }
  0x99   :  { %v167_v55 = vmul.f32 0.1, %v131_v47  ;;  %v171_v56 = vmul.f32 0.1, %v141_v48 }
  0x9a   :  { %v190_v45 = vmax.f32 %v148_v37, %v174_v41  ;;  %v194_v46 = vmax.f32 %v158_v38, %v178_v42 }
  0x9b   :  { %v183_v63 = vmax.f32 %v131_v47, %v167_v55  ;;  %v187_v0 = vmax.f32 %v141_v48, %v171_v56 }
  0x9c   :  { %v314_v49 = vpack.c.bf16 %v190_v45, %v189_v43  ;;  %v324_v50 = vpack.c.bf16 %v194_v46, %v193_v44 }
  0x9d   :  { %v150_v51 = vpop.f32.mrf.mxu2  ;;  %v160_v52 = vpop.f32.mrf.mxu3 }
  0x9e   :  { %334 = vst [vmem:[%s451_s3 + $0x20] sm:$0xff] %v314_v49   ;;  %v132_v53 = vpop.f32.mrf.mxu0  ;;  %v142_v54 = vpop.f32.mrf.mxu1  ;;  %v151_v61 = vadd.f32 %v406_v12, %v150_v51  ;;  %v161_v62 = vadd.f32 %v406_v12, %v160_v52 }
  0x9f   :  { %336 = vst [vmem:[%s451_s3 + $0x30] sm:$0xff] %v324_v50   ;;  %v133_v57 = vadd.f32 %v406_v12, %v132_v53  ;;  %v143_v58 = vadd.f32 %v406_v12, %v142_v54 }
  0xa0   :  { %v175_v7 = vmul.f32 0.1, %v151_v61  ;;  %v179_v8 = vmul.f32 0.1, %v161_v62 }
  0xa1   :  { %v168_v59 = vmul.f32 0.1, %v133_v57  ;;  %v172_v60 = vmul.f32 0.1, %v143_v58 }
  0xa2   :  { %v191_v14 = vmax.f32 %v151_v61, %v175_v7  ;;  %v195_v15 = vmax.f32 %v161_v62, %v179_v8 }
  0xa3   :  { %v184_v1 = vmax.f32 %v133_v57, %v168_v59  ;;  %v188_v2 = vmax.f32 %v143_v58, %v172_v60 }
  0xa5   :  { %v299_v3 = vpack.c.bf16 %v184_v1, %v183_v63  ;;  %v309_v4 = vpack.c.bf16 %v188_v2, %v187_v0  ;;  %v152_v5 = vpop.f32.mrf.mxu2  ;;  %v162_v6 = vpop.f32.mrf.mxu3 }
  0xa6   :  { %v153_v9 = vadd.f32 %v406_v12, %v152_v5  ;;  %v163_v10 = vadd.f32 %v406_v12, %v162_v6 }
  0xa7   :  { %331 = vst [vmem:[%s451_s3 + $0x8] sm:$0xff] %v299_v3  }
  0xa8   :  { %333 = vst [vmem:[%s451_s3 + $0x18] sm:$0xff] %v309_v4   ;;  %v176_v11 = vmul.f32 0.1, %v153_v9  ;;  %v180_v13 = vmul.f32 0.1, %v163_v10 }
  0xaa   :  { %v192_v16 = vmax.f32 %v153_v9, %v176_v11  ;;  %v196_v17 = vmax.f32 %v163_v10, %v180_v13 }
  0xac   :  { %v319_v18 = vpack.c.bf16 %v192_v16, %v191_v14  ;;  %v329_v19 = vpack.c.bf16 %v196_v17, %v195_v15 }
  0xae   :  { %335 = vst [vmem:[%s451_s3 + $0x28] sm:$0xff] %v319_v18  }
  0xaf   :  { %337 = vst [vmem:[%s451_s3 + $0x38] sm:$0xff] %v329_v19  }

// kernel: darknet_forward.13
= control target key start
LH: loop header
LB: loop body
LE: loop exit
PB: predicated region body
PF: predicated region fallthrough
CT: control target
= control target key end

     0   :  { %vm179_vm0 = vcmask 130048   ;;  %s759_s1 = inlined_call_operand.vmem [shape: bf16[144,128], index: 1, kind: input, shape index: {}]   ;;  %s760_s0 = inlined_call_operand.vmem [shape: bf16[128,144], index: 0, kind: input, shape index: {}]   ;;  %s761_s2 = inlined_call_operand.vmem [shape: f32[1,128], index: 2, kind: input, shape index: {}]   ;;  %s762_s3 = inlined_call_operand.vmem [shape: bf16[128,128], index: 3, kind: output, shape index: {}]  }
   0x1   :  { %v501_v0 = vld [vmem:[%s759_s1 + $0x38] sm:$0xff]  ;;  %v502_v1 = vld [vmem:[%s759_s1 + $0x40] sm:$0xff]  ;;  %v374_v3 = vld [vmem:[%s760_s0 + $0x8] sm:$0xf0] }
   0x2   :  { %v478_v2 = vld [vmem:[%s760_s0 + $0x4] sm:$0xf]  ;;  %204 = vmatpush.bf16.msra.mxu0 %v501_v0  ;;  %550 = vmatpush.bf16.msra.mxu2 %v501_v0  ;;  %v500_v5 = vld [vmem:[%s759_s1 + $0x30] sm:$0xff]  ;;  %v499_v6 = vld [vmem:[%s759_s1 + $0x28] sm:$0xff] }
   0x3   :  { %v377_v4 = vor.u32 %v478_v2, %v374_v3  ;;  %260 = vmatpush.bf16.msra.mxu1 %v502_v1  ;;  %558 = vmatpush.bf16.msra.mxu3 %v502_v1  ;;  %v488_v7 = vld [vmem:[%s760_s0 + $0x54] sm:$0xf]  ;;  %v414_v8 = vld [vmem:[%s760_s0 + $0x58] sm:$0xf0]  ;;  %v498_v10 = vld [vmem:[%s759_s1 + $0x20] sm:$0xff] }
   0x4   :  { %v417_v9 = vor.u32 %v488_v7, %v414_v8  ;;  %v497_v11 = vld [vmem:[%s759_s1 + $0x18] sm:$0xff]  ;;  %v480_v12 = vld [vmem:[%s760_s0 + $0x14] sm:$0xf]  ;;  %v495_v16 = vld [vmem:[%s759_s1 + $0x8] sm:$0xff] }
   0x5   :  { %v382_v13 = vld [vmem:[%s760_s0 + $0x18] sm:$0xf0]  ;;  %v496_v15 = vld [vmem:[%s759_s1 + $0x10] sm:$0xff]  ;;  %v490_v17 = vld [vmem:[%s760_s0 + $0x64] sm:$0xf] }
   0x6   :  { %470 = vmatmul.msk.bf16.vlgmr.msra.gmra.mxu1 %vm179_vm0, %v377_v4  ;;  %205 = vmatpush.bf16.msra.mxu0 %v500_v5  ;;  %v385_v14 = vor.u32 %v480_v12, %v382_v13  ;;  %v422_v18 = vld [vmem:[%s760_s0 + $0x68] sm:$0xf0]  ;;  %v494_v20 = vld [vmem:[%s759_s1] sm:$0xff]  ;;  %v479_v22 = vld [vmem:[%s760_s0 + $0x4] sm:$0xf0] }
   0x7   :  { %551 = vmatpush.bf16.msra.mxu2 %v500_v5  ;;  %475 = vmatmul.msk.bf16.vlgmr.msra.gmra.mxu3 %vm179_vm0, %v417_v9  ;;  %v425_v19 = vor.u32 %v490_v17, %v422_v18  ;;  %v372_v21 = vld [vmem:[%s760_s0] sm:$0xf]  ;;  %v487_v24 = vld [vmem:[%s760_s0 + $0x44] sm:$0xf0]  ;;  %v482_v27 = vld [vmem:[%s760_s0 + $0x24] sm:$0xf] }
   0x8   :  { %v404_v23 = vld [vmem:[%s760_s0 + $0x40] sm:$0xf]  ;;  %v373_v25 = vor.u32 %v479_v22, %v372_v21  ;;  %v390_v28 = vld [vmem:[%s760_s0 + $0x28] sm:$0xf0]  ;;  %v492_v30 = vld [vmem:[%s760_s0 + $0x74] sm:$0xf] }
   0x9   :  { %v405_v26 = vor.u32 %v487_v24, %v404_v23  ;;  %v393_v29 = vor.u32 %v482_v27, %v390_v28  ;;  %v430_v31 = vld [vmem:[%s760_s0 + $0x78] sm:$0xf0]  ;;  %v380_v33 = vld [vmem:[%s760_s0 + $0x10] sm:$0xf]  ;;  %v481_v34 = vld [vmem:[%s760_s0 + $0x14] sm:$0xf0] }
   0xa   :  { %206 = vmatpush.bf16.msra.mxu0 %v499_v6  ;;  %v433_v32 = vor.u32 %v492_v30, %v430_v31  ;;  %v412_v35 = vld [vmem:[%s760_s0 + $0x50] sm:$0xf]  ;;  %v489_v36 = vld [vmem:[%s760_s0 + $0x54] sm:$0xf0]  ;;  %v381_v37 = vor.u32 %v481_v34, %v380_v33  ;;  %v484_v39 = vld [vmem:[%s760_s0 + $0x34] sm:$0xf] }
   0xb   :  { %552 = vmatpush.bf16.msra.mxu2 %v499_v6  ;;  %v413_v38 = vor.u32 %v489_v36, %v412_v35  ;;  %v398_v40 = vld [vmem:[%s760_s0 + $0x38] sm:$0xf0]  ;;  %v388_v42 = vld [vmem:[%s760_s0 + $0x20] sm:$0xf]  ;;  %v483_v43 = vld [vmem:[%s760_s0 + $0x24] sm:$0xf0] }
   0xc   :  { %v401_v41 = vor.u32 %v484_v39, %v398_v40  ;;  %v420_v44 = vld [vmem:[%s760_s0 + $0x60] sm:$0xf]  ;;  %v491_v45 = vld [vmem:[%s760_s0 + $0x64] sm:$0xf0]  ;;  %v389_v46 = vor.u32 %v483_v43, %v388_v42  ;;  %v486_v48 = vld [vmem:[%s760_s0 + $0x44] sm:$0xf] }
   0xd   :  { %v421_v47 = vor.u32 %v491_v45, %v420_v44  ;;  %v406_v49 = vld [vmem:[%s760_s0 + $0x48] sm:$0xf0]  ;;  %v396_v51 = vld [vmem:[%s760_s0 + $0x30] sm:$0xf]  ;;  %v485_v52 = vld [vmem:[%s760_s0 + $0x34] sm:$0xf0] }
   0xe   :  { %207 = vmatpush.bf16.msra.mxu0 %v498_v10  ;;  %v409_v50 = vor.u32 %v486_v48, %v406_v49  ;;  %v428_v53 = vld [vmem:[%s760_s0 + $0x70] sm:$0xf]  ;;  %v493_v54 = vld [vmem:[%s760_s0 + $0x74] sm:$0xf0]  ;;  %v397_v55 = vor.u32 %v485_v52, %v396_v51  ;;  %v714_v61 = vld [vmem:[%s761_s2] ss:$0 sm:$0xff] }
   0xf   :  { %553 = vmatpush.bf16.msra.mxu2 %v498_v10  ;;  %v429_v56 = vor.u32 %v493_v54, %v428_v53 }
  0x12   :  { %208 = vmatpush.bf16.msra.mxu0 %v497_v11 }
  0x13   :  { %554 = vmatpush.bf16.msra.mxu2 %v497_v11 }
  0x16   :  { %471 = vmatmul.msk.bf16.gmra.mxu1 %vm179_vm0, %v385_v14  ;;  %209 = vmatpush.bf16.msra.mxu0 %v496_v15 }
  0x17   :  { %555 = vmatpush.bf16.msra.mxu2 %v496_v15  ;;  %476 = vmatmul.msk.bf16.gmra.mxu3 %vm179_vm0, %v425_v19 }
  0x1a   :  { %210 = vmatpush.bf16.msra.mxu0 %v495_v16 }
  0x1b   :  { %556 = vmatpush.bf16.msra.mxu2 %v495_v16 }
  0x1e   :  { %211 = vmatpush.bf16.msra.mxu0 %v494_v20 }
  0x1f   :  { %557 = vmatpush.bf16.msra.mxu2 %v494_v20 }
  0x21   :  { %212 = vmatmul.bf16.vlgmr.msra.gmra.mxu0 %v373_v25 }
  0x22   :  { %232 = vmatmul.bf16.vlgmr.msra.gmra.mxu2 %v405_v26 }
  0x26   :  { %472 = vmatmul.msk.bf16.gmra.mxu1 %vm179_vm0, %v393_v29 }
  0x27   :  { %477 = vmatmul.msk.bf16.gmra.mxu3 %vm179_vm0, %v433_v32 }
  0x31   :  { %217 = vmatmul.bf16.gmra.mxu0 %v381_v37 }
  0x32   :  { %237 = vmatmul.bf16.gmra.mxu2 %v413_v38 }
  0x36   :  { %473 = vmatmul.msk.bf16.gmra.mxu1 %vm179_vm0, %v401_v41 }
  0x41   :  { %222 = vmatmul.bf16.gmra.mxu0 %v389_v46 }
  0x42   :  { %242 = vmatmul.bf16.gmra.mxu2 %v421_v47 }
  0x46   :  { %474 = vmatmul.msk.bf16.gmra.mxu1 %vm179_vm0, %v409_v50 }
  0x51   :  { %227 = vmatmul.bf16.gmra.mxu0 %v397_v55 }
  0x52   :  { %247 = vmatmul.bf16.gmra.mxu2 %v429_v56 }
  0x83   :  { %v262_v57 = vpop.f32.mrf.mxu1 }
  0x8a   :  { %v287_v12 = vpop.f32.mrf.mxu3 }
  0x8b   :  { %v264_v58 = vpop.f32.mrf.mxu1 }
  0x92   :  { %v289_v21 = vpop.f32.mrf.mxu3 }
  0x93   :  { %v267_v59 = vpop.f32.mrf.mxu1 }
  0x9a   :  { %v292_v37 = vpop.f32.mrf.mxu3 }
  0x9b   :  { %v269_v60 = vpop.f32.mrf.mxu1 }
  0x9e   :  { %v213_v62 = vpop.f32.mrf.mxu0 }
  0x9f   :  { %v214_v63 = vadd.f32 %v714_v61, %v213_v62 }
  0xa1   :  { %v263_v1 = vadd.f32 %v262_v57, %v214_v63 }
  0xa2   :  { %v294_v54 = vpop.f32.mrf.mxu3 }
  0xa3   :  { %v272_v0 = vpop.f32.mrf.mxu1  ;;  %v302_v5 = vmul.f32 0.1, %v263_v1 }
  0xa5   :  { %v233_v2 = vpop.f32.mrf.mxu2  ;;  %v318_v9 = vmax.f32 %v263_v1, %v302_v5 }
  0xa6   :  { %v215_v3 = vpop.f32.mrf.mxu0  ;;  %v234_v44 = vadd.f32 %v714_v61, %v233_v2 }
  0xa7   :  { %v216_v4 = vadd.f32 %v714_v61, %v215_v3 }
  0xa9   :  { %v265_v6 = vadd.f32 %v264_v58, %v216_v4 }
  0xab   :  { %v303_v7 = vmul.f32 0.1, %v265_v6  ;;  %v274_v8 = vpop.f32.mrf.mxu1 }
  0xad   :  { %v319_v10 = vmax.f32 %v265_v6, %v303_v7  ;;  %v235_v11 = vpop.f32.mrf.mxu2 }
  0xae   :  { %v218_v13 = vpop.f32.mrf.mxu0  ;;  %v236_v52 = vadd.f32 %v714_v61, %v235_v11 }
  0xaf   :  { %v506_v14 = vpack.c.bf16 %v319_v10, %v318_v9  ;;  %v219_v15 = vadd.f32 %v714_v61, %v218_v13  ;;  %v297_v13 = vpop.f32.mrf.mxu3 }
  0xb1   :  { %507 = vst [vmem:[%s762_s3] sm:$0xff] %v506_v14   ;;  %v268_v17 = vadd.f32 %v267_v59, %v219_v15 }
  0xb3   :  { %v722_v16 = vpop.f32.mrf.mxu1  ;;  %v304_v23 = vmul.f32 0.1, %v268_v17 }
  0xb5   :  { %v238_v18 = vpop.f32.mrf.mxu2  ;;  %v320_v28 = vmax.f32 %v268_v17, %v304_v23 }
  0xb6   :  { %v220_v19 = vpop.f32.mrf.mxu0  ;;  %v239_v22 = vadd.f32 %v714_v61, %v238_v18 }
  0xb7   :  { %v221_v20 = vadd.f32 %v714_v61, %v220_v19 }
  0xb8   :  { %v288_v27 = vadd.f32 %v287_v12, %v239_v22 }
  0xb9   :  { %v270_v24 = vadd.f32 %v269_v60, %v221_v20 }
  0xba   :  { %v312_v34 = vmul.f32 0.1, %v288_v27 }
  0xbb   :  { %v305_v25 = vmul.f32 0.1, %v270_v24  ;;  %v279_v26 = vpop.f32.mrf.mxu1 }
  0xbc   :  { %v328_v40 = vmax.f32 %v288_v27, %v312_v34 }
  0xbd   :  { %v321_v29 = vmax.f32 %v270_v24, %v305_v25  ;;  %v240_v30 = vpop.f32.mrf.mxu2 }
  0xbe   :  { %v241_v31 = vadd.f32 %v714_v61, %v240_v30  ;;  %v223_v32 = vpop.f32.mrf.mxu0 }
  0xbf   :  { %v511_v33 = vpack.c.bf16 %v321_v29, %v320_v28  ;;  %v224_v36 = vadd.f32 %v714_v61, %v223_v32  ;;  %v299_v29 = vpop.f32.mrf.mxu3 }
  0xc0   :  { %v290_v35 = vadd.f32 %v289_v21, %v241_v31 }
  0xc1   :  { %543 = vst [vmem:[%s762_s3 + $0x8] sm:$0xff] %v511_v33   ;;  %v273_v42 = vadd.f32 %v272_v0, %v224_v36 }
  0xc2   :  { %v313_v38 = vmul.f32 0.1, %v290_v35 }
  0xc3   :  { %v282_v39 = vpop.f32.mrf.mxu1  ;;  %v306_v50 = vmul.f32 0.1, %v273_v42 }
  0xc4   :  { %v329_v41 = vmax.f32 %v290_v35, %v313_v38  ;;  %v283_v48 = vadd.f32 %v282_v39, %v234_v44 }
  0xc5   :  { %v243_v43 = vpop.f32.mrf.mxu2  ;;  %v322_v59 = vmax.f32 %v273_v42, %v306_v50 }
  0xc6   :  { %v531_v45 = vpack.c.bf16 %v329_v41, %v328_v40  ;;  %v225_v46 = vpop.f32.mrf.mxu0  ;;  %v244_v49 = vadd.f32 %v714_v61, %v243_v43  ;;  %v310_v56 = vmul.f32 0.1, %v283_v48 }
  0xc7   :  { %v226_v47 = vadd.f32 %v714_v61, %v225_v46 }
  0xc8   :  { %547 = vst [vmem:[%s762_s3 + $0x28] sm:$0xff] %v531_v45   ;;  %v293_v57 = vadd.f32 %v292_v37, %v244_v49  ;;  %v326_v3 = vmax.f32 %v283_v48, %v310_v56 }
  0xc9   :  { %v275_v51 = vadd.f32 %v274_v8, %v226_v47 }
  0xca   :  { %v314_v4 = vmul.f32 0.1, %v293_v57 }
  0xcb   :  { %v307_v53 = vmul.f32 0.1, %v275_v51  ;;  %v284_v55 = vpop.f32.mrf.mxu1 }
  0xcc   :  { %v285_v58 = vadd.f32 %v284_v55, %v236_v52  ;;  %v330_v10 = vmax.f32 %v293_v57, %v314_v4 }
  0xcd   :  { %v323_v60 = vmax.f32 %v275_v51, %v307_v53  ;;  %v245_v62 = vpop.f32.mrf.mxu2 }
  0xce   :  { %v311_v63 = vmul.f32 0.1, %v285_v58  ;;  %v246_v0 = vadd.f32 %v714_v61, %v245_v62  ;;  %v228_v1 = vpop.f32.mrf.mxu0 }
  0xcf   :  { %v516_v2 = vpack.c.bf16 %v323_v60, %v322_v59  ;;  %v229_v7 = vadd.f32 %v714_v61, %v228_v1 }
  0xd0   :  { %v327_v5 = vmax.f32 %v285_v58, %v311_v63  ;;  %v295_v6 = vadd.f32 %v294_v54, %v246_v0 }
  0xd1   :  { %544 = vst [vmem:[%s762_s3 + $0x10] sm:$0xff] %v516_v2   ;;  %v278_v12 = vadd.f32 %v722_v16, %v229_v7 }
  0xd2   :  { %v526_v8 = vpack.c.bf16 %v327_v5, %v326_v3  ;;  %v315_v9 = vmul.f32 0.1, %v295_v6 }
  0xd3   :  { %v308_v20 = vmul.f32 0.1, %v278_v12 }
  0xd4   :  { %546 = vst [vmem:[%s762_s3 + $0x20] sm:$0xff] %v526_v8   ;;  %v331_v11 = vmax.f32 %v295_v6, %v315_v9 }
  0xd5   :  { %v248_v14 = vpop.f32.mrf.mxu2  ;;  %v324_v24 = vmax.f32 %v278_v12, %v308_v20 }
  0xd6   :  { %v536_v15 = vpack.c.bf16 %v331_v11, %v330_v10  ;;  %v230_v17 = vpop.f32.mrf.mxu0  ;;  %v249_v19 = vadd.f32 %v714_v61, %v248_v14 }
  0xd7   :  { %v231_v18 = vadd.f32 %v714_v61, %v230_v17 }
  0xd8   :  { %548 = vst [vmem:[%s762_s3 + $0x30] sm:$0xff] %v536_v15   ;;  %v298_v23 = vadd.f32 %v297_v13, %v249_v19 }
  0xd9   :  { %v280_v21 = vadd.f32 %v279_v26, %v231_v18 }
  0xda   :  { %v316_v30 = vmul.f32 0.1, %v298_v23 }
  0xdb   :  { %v309_v22 = vmul.f32 0.1, %v280_v21 }
  0xdc   :  { %v332_v33 = vmax.f32 %v298_v23, %v316_v30 }
  0xdd   :  { %v325_v25 = vmax.f32 %v280_v21, %v309_v22  ;;  %v250_v27 = vpop.f32.mrf.mxu2 }
  0xde   :  { %v251_v16 = vadd.f32 %v714_v61, %v250_v27 }
  0xdf   :  { %v521_v28 = vpack.c.bf16 %v325_v25, %v324_v24 }
  0xe0   :  { %v300_v31 = vadd.f32 %v299_v29, %v251_v16 }
  0xe1   :  { %545 = vst [vmem:[%s762_s3 + $0x18] sm:$0xff] %v521_v28  }
  0xe2   :  { %v317_v32 = vmul.f32 0.1, %v300_v31 }
  0xe4   :  { %v333_v34 = vmax.f32 %v300_v31, %v317_v32 }
  0xe6   :  { %v541_v35 = vpack.c.bf16 %v333_v34, %v332_v33 }
  0xe8   :  { %549 = vst [vmem:[%s762_s3 + $0x38] sm:$0xff] %v541_v35  }

// kernel: darknet_forward.15
= control target key start
LH: loop header
LB: loop body
LE: loop exit
PB: predicated region body
PF: predicated region fallthrough
CT: control target
= control target key end

     0   :  { %vm182_vm0 = vcmask 130048   ;;  %s881_s1 = inlined_call_operand.vmem [shape: bf16[144,128], index: 1, kind: input, shape index: {}]   ;;  %s882_s0 = inlined_call_operand.vmem [shape: bf16[128,144], index: 0, kind: input, shape index: {}]   ;;  %s883_s2 = inlined_call_operand.vmem [shape: f32[1,128], index: 2, kind: input, shape index: {}]   ;;  %s884_s3 = inlined_call_operand.vmem [shape: bf16[128,128], index: 3, kind: input, shape index: {}]   ;;  %s885_s4 = inlined_call_operand.vmem [shape: bf16[128,128], index: 4, kind: output, shape index: {}]  }
   0x1   :  { %v552_v0 = vld [vmem:[%s881_s1 + $0x38] sm:$0xff]  ;;  %v553_v1 = vld [vmem:[%s881_s1 + $0x40] sm:$0xff]  ;;  %v425_v3 = vld [vmem:[%s882_s0 + $0x8] sm:$0xf0] }
   0x2   :  { %v529_v2 = vld [vmem:[%s882_s0 + $0x4] sm:$0xf]  ;;  %207 = vmatpush.bf16.msra.mxu0 %v552_v0  ;;  %640 = vmatpush.bf16.msra.mxu2 %v552_v0  ;;  %v551_v5 = vld [vmem:[%s881_s1 + $0x30] sm:$0xff]  ;;  %v550_v6 = vld [vmem:[%s881_s1 + $0x28] sm:$0xff] }
   0x3   :  { %v428_v4 = vor.u32 %v529_v2, %v425_v3  ;;  %263 = vmatpush.bf16.msra.mxu1 %v553_v1  ;;  %648 = vmatpush.bf16.msra.mxu3 %v553_v1  ;;  %v539_v7 = vld [vmem:[%s882_s0 + $0x54] sm:$0xf]  ;;  %v465_v8 = vld [vmem:[%s882_s0 + $0x58] sm:$0xf0]  ;;  %v549_v10 = vld [vmem:[%s881_s1 + $0x20] sm:$0xff] }
   0x4   :  { %v468_v9 = vor.u32 %v539_v7, %v465_v8  ;;  %v548_v11 = vld [vmem:[%s881_s1 + $0x18] sm:$0xff]  ;;  %v531_v12 = vld [vmem:[%s882_s0 + $0x14] sm:$0xf]  ;;  %v546_v16 = vld [vmem:[%s881_s1 + $0x8] sm:$0xff] }
   0x5   :  { %v433_v13 = vld [vmem:[%s882_s0 + $0x18] sm:$0xf0]  ;;  %v547_v15 = vld [vmem:[%s881_s1 + $0x10] sm:$0xff]  ;;  %v541_v17 = vld [vmem:[%s882_s0 + $0x64] sm:$0xf] }
   0x6   :  { %521 = vmatmul.msk.bf16.vlgmr.msra.gmra.mxu1 %vm182_vm0, %v428_v4  ;;  %208 = vmatpush.bf16.msra.mxu0 %v551_v5  ;;  %v436_v14 = vor.u32 %v531_v12, %v433_v13  ;;  %v473_v18 = vld [vmem:[%s882_s0 + $0x68] sm:$0xf0]  ;;  %v545_v20 = vld [vmem:[%s881_s1] sm:$0xff]  ;;  %v530_v22 = vld [vmem:[%s882_s0 + $0x4] sm:$0xf0] }
   0x7   :  { %641 = vmatpush.bf16.msra.mxu2 %v551_v5  ;;  %526 = vmatmul.msk.bf16.vlgmr.msra.gmra.mxu3 %vm182_vm0, %v468_v9  ;;  %v476_v19 = vor.u32 %v541_v17, %v473_v18  ;;  %v423_v21 = vld [vmem:[%s882_s0] sm:$0xf]  ;;  %v538_v24 = vld [vmem:[%s882_s0 + $0x44] sm:$0xf0]  ;;  %v533_v27 = vld [vmem:[%s882_s0 + $0x24] sm:$0xf] }
   0x8   :  { %v455_v23 = vld [vmem:[%s882_s0 + $0x40] sm:$0xf]  ;;  %v424_v25 = vor.u32 %v530_v22, %v423_v21  ;;  %v441_v28 = vld [vmem:[%s882_s0 + $0x28] sm:$0xf0]  ;;  %v543_v30 = vld [vmem:[%s882_s0 + $0x74] sm:$0xf] }
   0x9   :  { %v456_v26 = vor.u32 %v538_v24, %v455_v23  ;;  %v444_v29 = vor.u32 %v533_v27, %v441_v28  ;;  %v481_v31 = vld [vmem:[%s882_s0 + $0x78] sm:$0xf0]  ;;  %v431_v33 = vld [vmem:[%s882_s0 + $0x10] sm:$0xf]  ;;  %v532_v34 = vld [vmem:[%s882_s0 + $0x14] sm:$0xf0] }
   0xa   :  { %209 = vmatpush.bf16.msra.mxu0 %v550_v6  ;;  %v484_v32 = vor.u32 %v543_v30, %v481_v31  ;;  %v463_v35 = vld [vmem:[%s882_s0 + $0x50] sm:$0xf]  ;;  %v540_v36 = vld [vmem:[%s882_s0 + $0x54] sm:$0xf0]  ;;  %v432_v37 = vor.u32 %v532_v34, %v431_v33  ;;  %v535_v39 = vld [vmem:[%s882_s0 + $0x34] sm:$0xf] }
   0xb   :  { %642 = vmatpush.bf16.msra.mxu2 %v550_v6  ;;  %v464_v38 = vor.u32 %v540_v36, %v463_v35  ;;  %v449_v40 = vld [vmem:[%s882_s0 + $0x38] sm:$0xf0]  ;;  %v439_v42 = vld [vmem:[%s882_s0 + $0x20] sm:$0xf]  ;;  %v534_v43 = vld [vmem:[%s882_s0 + $0x24] sm:$0xf0] }
   0xc   :  { %v452_v41 = vor.u32 %v535_v39, %v449_v40  ;;  %v471_v44 = vld [vmem:[%s882_s0 + $0x60] sm:$0xf]  ;;  %v542_v45 = vld [vmem:[%s882_s0 + $0x64] sm:$0xf0]  ;;  %v440_v46 = vor.u32 %v534_v43, %v439_v42  ;;  %v537_v48 = vld [vmem:[%s882_s0 + $0x44] sm:$0xf] }
   0xd   :  { %v472_v47 = vor.u32 %v542_v45, %v471_v44  ;;  %v457_v49 = vld [vmem:[%s882_s0 + $0x48] sm:$0xf0]  ;;  %v447_v51 = vld [vmem:[%s882_s0 + $0x30] sm:$0xf]  ;;  %v536_v52 = vld [vmem:[%s882_s0 + $0x34] sm:$0xf0] }
   0xe   :  { %210 = vmatpush.bf16.msra.mxu0 %v549_v10  ;;  %v460_v50 = vor.u32 %v537_v48, %v457_v49  ;;  %v479_v53 = vld [vmem:[%s882_s0 + $0x70] sm:$0xf]  ;;  %v544_v54 = vld [vmem:[%s882_s0 + $0x74] sm:$0xf0]  ;;  %v448_v55 = vor.u32 %v536_v52, %v447_v51  ;;  %v809_v61 = vld [vmem:[%s883_s2] ss:$0 sm:$0xff] }
   0xf   :  { %643 = vmatpush.bf16.msra.mxu2 %v549_v10  ;;  %v480_v56 = vor.u32 %v544_v54, %v479_v53  ;;  %v555_v6 = vld [vmem:[%s884_s3] sm:$0xff]   ;;  %v630_v43 = vld [vmem:[%s884_s3 + $0x28] sm:$0xff]  }
  0x10   :  { %v556_v9 = vunpack.c.l.bf16 %v555_v6  ;;  %v577_v52 = vunpack.c.h.bf16 %v630_v43 }
  0x12   :  { %211 = vmatpush.bf16.msra.mxu0 %v548_v11 }
  0x13   :  { %644 = vmatpush.bf16.msra.mxu2 %v548_v11  ;;  %v557_v11 = vunpack.c.h.bf16 %v555_v6 }
  0x16   :  { %522 = vmatmul.msk.bf16.gmra.mxu1 %vm182_vm0, %v436_v14  ;;  %212 = vmatpush.bf16.msra.mxu0 %v547_v15 }
  0x17   :  { %645 = vmatpush.bf16.msra.mxu2 %v547_v15  ;;  %527 = vmatmul.msk.bf16.gmra.mxu3 %vm182_vm0, %v476_v19 }
  0x1a   :  { %213 = vmatpush.bf16.msra.mxu0 %v546_v16 }
  0x1b   :  { %646 = vmatpush.bf16.msra.mxu2 %v546_v16 }
  0x1e   :  { %214 = vmatpush.bf16.msra.mxu0 %v545_v20 }
  0x1f   :  { %647 = vmatpush.bf16.msra.mxu2 %v545_v20 }
  0x21   :  { %215 = vmatmul.bf16.vlgmr.msra.gmra.mxu0 %v424_v25 }
  0x22   :  { %235 = vmatmul.bf16.vlgmr.msra.gmra.mxu2 %v456_v26 }
  0x26   :  { %523 = vmatmul.msk.bf16.gmra.mxu1 %vm182_vm0, %v444_v29  ;;  %v626_v29 = vld [vmem:[%s884_s3 + $0x8] sm:$0xff]  }
  0x27   :  { %528 = vmatmul.msk.bf16.gmra.mxu3 %vm182_vm0, %v484_v32  ;;  %v560_v33 = vunpack.c.l.bf16 %v626_v29  ;;  %v561_v35 = vunpack.c.h.bf16 %v626_v29 }
  0x31   :  { %220 = vmatmul.bf16.gmra.mxu0 %v432_v37 }
  0x32   :  { %240 = vmatmul.bf16.gmra.mxu2 %v464_v38 }
  0x36   :  { %524 = vmatmul.msk.bf16.gmra.mxu1 %vm182_vm0, %v452_v41 }
  0x41   :  { %225 = vmatmul.bf16.gmra.mxu0 %v440_v46 }
  0x42   :  { %245 = vmatmul.bf16.gmra.mxu2 %v472_v47 }
  0x46   :  { %525 = vmatmul.msk.bf16.gmra.mxu1 %vm182_vm0, %v460_v50  ;;  %v576_v50 = vunpack.c.l.bf16 %v630_v43 }
  0x51   :  { %230 = vmatmul.bf16.gmra.mxu0 %v448_v55 }
  0x52   :  { %250 = vmatmul.bf16.gmra.mxu2 %v480_v56 }
  0x83   :  { %v265_v57 = vpop.f32.mrf.mxu1 }
  0x8a   :  { %v290_v15 = vpop.f32.mrf.mxu3 }
  0x8b   :  { %v267_v58 = vpop.f32.mrf.mxu1 }
  0x92   :  { %v292_v28 = vpop.f32.mrf.mxu3 }
  0x93   :  { %v270_v59 = vpop.f32.mrf.mxu1 }
  0x9a   :  { %v295_v48 = vpop.f32.mrf.mxu3 }
  0x9b   :  { %v272_v60 = vpop.f32.mrf.mxu1 }
  0x9e   :  { %v216_v62 = vpop.f32.mrf.mxu0 }
  0x9f   :  { %v217_v63 = vadd.f32 %v809_v61, %v216_v62 }
  0xa1   :  { %v266_v0 = vadd.f32 %v265_v57, %v217_v63 }
  0xa3   :  { %v275_v1 = vpop.f32.mrf.mxu1  ;;  %v305_v4 = vmul.f32 0.1, %v266_v0 }
  0xa5   :  { %v236_v2 = vpop.f32.mrf.mxu2  ;;  %v321_v8 = vmax.f32 %v266_v0, %v305_v4 }
  0xa6   :  { %v218_v3 = vpop.f32.mrf.mxu0  ;;  %v237_v55 = vadd.f32 %v809_v61, %v236_v2 }
  0xa7   :  { %v219_v5 = vadd.f32 %v809_v61, %v218_v3  ;;  %v369_v17 = vadd.f32 %v556_v9, %v321_v8 }
  0xa9   :  { %v268_v7 = vadd.f32 %v267_v58, %v219_v5  ;;  %v627_v5 = vld [vmem:[%s884_s3 + $0x10] sm:$0xff]  }
  0xab   :  { %v306_v10 = vmul.f32 0.1, %v268_v7  ;;  %v277_v12 = vpop.f32.mrf.mxu1 }
  0xad   :  { %v322_v13 = vmax.f32 %v268_v7, %v306_v10  ;;  %v238_v14 = vpop.f32.mrf.mxu2  ;;  %v629_v7 = vld [vmem:[%s884_s3 + $0x20] sm:$0xff]   ;;  %v564_v10 = vunpack.c.l.bf16 %v627_v5 }
  0xae   :  { %v221_v16 = vpop.f32.mrf.mxu0  ;;  %v239_v6 = vadd.f32 %v809_v61, %v238_v14  ;;  %v573_v14 = vunpack.c.h.bf16 %v629_v7 }
  0xaf   :  { %v370_v18 = vadd.f32 %v557_v11, %v322_v13  ;;  %v222_v19 = vadd.f32 %v809_v61, %v221_v16  ;;  %v565_v13 = vunpack.c.h.bf16 %v627_v5 }
  0xb1   :  { %v589_v20 = vpack.c.bf16 %v370_v18, %v369_v17  ;;  %v271_v21 = vadd.f32 %v270_v59, %v222_v19 }
  0xb3   :  { %590 = vst [vmem:[%s885_s4] sm:$0xff] %v589_v20   ;;  %v820_v22 = vpop.f32.mrf.mxu1  ;;  %v307_v26 = vmul.f32 0.1, %v271_v21 }
  0xb5   :  { %v241_v23 = vpop.f32.mrf.mxu2  ;;  %v323_v32 = vmax.f32 %v271_v21, %v307_v26 }
  0xb6   :  { %v242_v24 = vadd.f32 %v809_v61, %v241_v23  ;;  %v223_v25 = vpop.f32.mrf.mxu0  ;;  %v631_v23 = vld [vmem:[%s884_s3 + $0x30] sm:$0xff]  }
  0xb7   :  { %v224_v27 = vadd.f32 %v809_v61, %v223_v25  ;;  %v371_v42 = vadd.f32 %v560_v33, %v323_v32  ;;  %v580_v32 = vunpack.c.l.bf16 %v631_v23 }
  0xb8   :  { %v291_v31 = vadd.f32 %v290_v15, %v242_v24  ;;  %v297_v15 = vpop.f32.mrf.mxu3 }
  0xb9   :  { %v273_v30 = vadd.f32 %v272_v60, %v224_v27 }
  0xba   :  { %v315_v39 = vmul.f32 0.1, %v291_v31 }
  0xbb   :  { %v308_v34 = vmul.f32 0.1, %v273_v30  ;;  %v827_v36 = vpop.f32.mrf.mxu1 }
  0xbc   :  { %v331_v49 = vmax.f32 %v291_v31, %v315_v39 }
  0xbd   :  { %v324_v37 = vmax.f32 %v273_v30, %v308_v34  ;;  %v243_v38 = vpop.f32.mrf.mxu2  ;;  %v581_v34 = vunpack.c.h.bf16 %v631_v23 }
  0xbe   :  { %v244_v40 = vadd.f32 %v809_v61, %v243_v38  ;;  %v226_v41 = vpop.f32.mrf.mxu0  ;;  %v379_v58 = vadd.f32 %v576_v50, %v331_v49 }
  0xbf   :  { %v372_v44 = vadd.f32 %v561_v35, %v324_v37  ;;  %v227_v45 = vadd.f32 %v809_v61, %v226_v41 }
  0xc0   :  { %v293_v46 = vadd.f32 %v292_v28, %v244_v40  ;;  %v300_v43 = vpop.f32.mrf.mxu3 }
  0xc1   :  { %v594_v47 = vpack.c.bf16 %v372_v44, %v371_v42  ;;  %v276_v53 = vadd.f32 %v275_v1, %v227_v45 }
  0xc2   :  { %v316_v51 = vmul.f32 0.1, %v293_v46 }
  0xc3   :  { %633 = vst [vmem:[%s885_s4 + $0x8] sm:$0xff] %v594_v47   ;;  %v285_v54 = vpop.f32.mrf.mxu1  ;;  %v309_v0 = vmul.f32 0.1, %v276_v53 }
  0xc4   :  { %v332_v56 = vmax.f32 %v293_v46, %v316_v51  ;;  %v286_v60 = vadd.f32 %v285_v54, %v237_v55 }
  0xc5   :  { %v246_v57 = vpop.f32.mrf.mxu2  ;;  %v325_v9 = vmax.f32 %v276_v53, %v309_v0  ;;  %v632_v0 = vld [vmem:[%s884_s3 + $0x38] sm:$0xff]  }
  0xc6   :  { %v380_v59 = vadd.f32 %v577_v52, %v332_v56  ;;  %v247_v62 = vadd.f32 %v809_v61, %v246_v57  ;;  %v228_v63 = vpop.f32.mrf.mxu0  ;;  %v313_v2 = vmul.f32 0.1, %v286_v60 }
  0xc7   :  { %v229_v3 = vadd.f32 %v809_v61, %v228_v63  ;;  %v373_v27 = vadd.f32 %v564_v10, %v325_v9 }
  0xc8   :  { %v614_v4 = vpack.c.bf16 %v380_v59, %v379_v58  ;;  %v296_v8 = vadd.f32 %v295_v48, %v247_v62  ;;  %v329_v20 = vmax.f32 %v286_v60, %v313_v2 }
  0xc9   :  { %v278_v1 = vadd.f32 %v277_v12, %v229_v3  ;;  %v572_v12 = vunpack.c.l.bf16 %v629_v7  ;;  %v302_v3 = vpop.f32.mrf.mxu3  ;;  %v585_v7 = vunpack.c.h.bf16 %v632_v0 }
  0xca   :  { %637 = vst [vmem:[%s885_s4 + $0x28] sm:$0xff] %v614_v4   ;;  %v317_v21 = vmul.f32 0.1, %v296_v8 }
  0xcb   :  { %v310_v11 = vmul.f32 0.1, %v278_v1  ;;  %v287_v16 = vpop.f32.mrf.mxu1  ;;  %v377_v35 = vadd.f32 %v572_v12, %v329_v20 }
  0xcc   :  { %v288_v17 = vadd.f32 %v287_v16, %v239_v6  ;;  %v333_v37 = vmax.f32 %v296_v8, %v317_v21  ;;  %v584_v6 = vunpack.c.l.bf16 %v632_v0 }
  0xcd   :  { %v326_v18 = vmax.f32 %v278_v1, %v310_v11  ;;  %v248_v19 = vpop.f32.mrf.mxu2 }
  0xce   :  { %v314_v24 = vmul.f32 0.1, %v288_v17  ;;  %v249_v25 = vadd.f32 %v809_v61, %v248_v19  ;;  %v231_v26 = vpop.f32.mrf.mxu0  ;;  %v381_v45 = vadd.f32 %v580_v32, %v333_v37 }
  0xcf   :  { %v374_v28 = vadd.f32 %v565_v13, %v326_v18  ;;  %v232_v29 = vadd.f32 %v809_v61, %v231_v26 }
  0xd0   :  { %v330_v30 = vmax.f32 %v288_v17, %v314_v24  ;;  %v298_v31 = vadd.f32 %v297_v15, %v249_v25 }
  0xd1   :  { %v599_v33 = vpack.c.bf16 %v374_v28, %v373_v27  ;;  %v281_v40 = vadd.f32 %v820_v22, %v232_v29  ;;  %v628_v22 = vld [vmem:[%s884_s3 + $0x18] sm:$0xff]  }
  0xd2   :  { %v378_v38 = vadd.f32 %v573_v14, %v330_v30  ;;  %v318_v39 = vmul.f32 0.1, %v298_v31  ;;  %v568_v55 = vunpack.c.l.bf16 %v628_v22  ;;  %v569_v57 = vunpack.c.h.bf16 %v628_v22 }
  0xd3   :  { %634 = vst [vmem:[%s885_s4 + $0x10] sm:$0xff] %v599_v33   ;;  %v311_v49 = vmul.f32 0.1, %v281_v40 }
  0xd4   :  { %v609_v41 = vpack.c.bf16 %v378_v38, %v377_v35  ;;  %v334_v42 = vmax.f32 %v298_v31, %v318_v39 }
  0xd5   :  { %v251_v44 = vpop.f32.mrf.mxu2  ;;  %v327_v54 = vmax.f32 %v281_v40, %v311_v49 }
  0xd6   :  { %636 = vst [vmem:[%s885_s4 + $0x20] sm:$0xff] %v609_v41   ;;  %v382_v46 = vadd.f32 %v581_v34, %v334_v42  ;;  %v252_v47 = vadd.f32 %v809_v61, %v251_v44  ;;  %v233_v48 = vpop.f32.mrf.mxu0 }
  0xd7   :  { %v234_v50 = vadd.f32 %v809_v61, %v233_v48  ;;  %v375_v63 = vadd.f32 %v568_v55, %v327_v54 }
  0xd8   :  { %v619_v51 = vpack.c.bf16 %v382_v46, %v381_v45  ;;  %v301_v53 = vadd.f32 %v300_v43, %v252_v47 }
  0xd9   :  { %v283_v52 = vadd.f32 %v827_v36, %v234_v50 }
  0xda   :  { %638 = vst [vmem:[%s885_s4 + $0x30] sm:$0xff] %v619_v51   ;;  %v319_v60 = vmul.f32 0.1, %v301_v53 }
  0xdb   :  { %v312_v56 = vmul.f32 0.1, %v283_v52 }
  0xdc   :  { %v335_v1 = vmax.f32 %v301_v53, %v319_v60 }
  0xdd   :  { %v328_v58 = vmax.f32 %v283_v52, %v312_v56  ;;  %v253_v59 = vpop.f32.mrf.mxu2 }
  0xde   :  { %v254_v62 = vadd.f32 %v809_v61, %v253_v59  ;;  %v383_v9 = vadd.f32 %v584_v6, %v335_v1 }
  0xdf   :  { %v376_v36 = vadd.f32 %v569_v57, %v328_v58 }
  0xe0   :  { %v303_v4 = vadd.f32 %v302_v3, %v254_v62 }
  0xe1   :  { %v604_v5 = vpack.c.bf16 %v376_v36, %v375_v63 }
  0xe2   :  { %v320_v2 = vmul.f32 0.1, %v303_v4 }
  0xe3   :  { %635 = vst [vmem:[%s885_s4 + $0x18] sm:$0xff] %v604_v5  }
  0xe4   :  { %v336_v8 = vmax.f32 %v303_v4, %v320_v2 }
  0xe6   :  { %v384_v61 = vadd.f32 %v585_v7, %v336_v8 }
  0xe8   :  { %v624_v10 = vpack.c.bf16 %v384_v61, %v383_v9 }
  0xea   :  { %639 = vst [vmem:[%s885_s4 + $0x38] sm:$0xff] %v624_v10  }

// kernel: darknet_forward.16
= control target key start
LH: loop header
LB: loop body
LE: loop exit
PB: predicated region body
PF: predicated region fallthrough
CT: control target
= control target key end

     0   :  { %vm201_vm0 = vcmask 261120   ;;  %s548_s1 = inlined_call_operand.vmem [shape: bf16[288,128], index: 1, kind: input, shape index: {}]   ;;  %s549_s0 = inlined_call_operand.vmem [shape: bf16[32,288], index: 0, kind: input, shape index: {}]   ;;  %s550_s2 = inlined_call_operand.vmem [shape: f32[1,128], index: 2, kind: input, shape index: {}]   ;;  %s551_s3 = inlined_call_operand.vmem [shape: bf16[32,128], index: 3, kind: output, shape index: {}]  }
   0x1   :  { %v396_v0 = vld [vmem:[%s548_s1 + $0x38] sm:$0xff]  ;;  %v395_v2 = vld [vmem:[%s548_s1 + $0x30] sm:$0xff]  ;;  %v406_v3 = vld [vmem:[%s548_s1 + $0x88] sm:$0xff] }
   0x2   :  { %v404_v1 = vld [vmem:[%s548_s1 + $0x78] sm:$0xff]  ;;  %208 = vmatpush.bf16.msra.mxu0 %v396_v0  ;;  %418 = vmatpush.bf16.msra.mxu3 %v396_v0  ;;  %v403_v4 = vld [vmem:[%s548_s1 + $0x70] sm:$0xff]  ;;  %v405_v5 = vld [vmem:[%s548_s1 + $0x80] sm:$0xff] }
   0x3   :  { %227 = vmatpush.bf16.msra.mxu1 %v404_v1  ;;  %252 = vmatpush.bf16.msra.mxu2 %v406_v3  ;;  %v295_v6 = vld [vmem:[%s549_s0 + $0x8] sm:$0xf]  ;;  %v385_v7 = vld [vmem:[%s549_s0 + $0x10] sm:$0xf0]  ;;  %v393_v11 = vld [vmem:[%s548_s1 + $0x20] sm:$0xff] }
   0x4   :  { %v394_v8 = vld [vmem:[%s548_s1 + $0x28] sm:$0xff]  ;;  %v296_v10 = vor.u32 %v385_v7, %v295_v6  ;;  %v401_v12 = vld [vmem:[%s548_s1 + $0x60] sm:$0xff]  ;;  %v392_v13 = vld [vmem:[%s548_s1 + $0x18] sm:$0xff] }
   0x5   :  { %v402_v9 = vld [vmem:[%s548_s1 + $0x68] sm:$0xff]  ;;  %v400_v14 = vld [vmem:[%s548_s1 + $0x58] sm:$0xff]  ;;  %v391_v15 = vld [vmem:[%s548_s1 + $0x10] sm:$0xff] }
   0x6   :  { %209 = vmatpush.bf16.msra.mxu0 %v395_v2  ;;  %419 = vmatpush.bf16.msra.mxu3 %v395_v2  ;;  %v399_v16 = vld [vmem:[%s548_s1 + $0x50] sm:$0xff]  ;;  %v307_v17 = vld [vmem:[%s549_s0 + $0x20] sm:$0xf]  ;;  %v388_v18 = vld [vmem:[%s549_s0 + $0x28] sm:$0xf0] }
   0x7   :  { %228 = vmatpush.bf16.msra.mxu1 %v403_v4  ;;  %253 = vmatpush.bf16.msra.mxu2 %v405_v5  ;;  %v390_v19 = vld [vmem:[%s548_s1 + $0x8] sm:$0xff]  ;;  %v308_v21 = vor.u32 %v388_v18, %v307_v17  ;;  %v389_v22 = vld [vmem:[%s548_s1] sm:$0xff]  ;;  %v299_v25 = vld [vmem:[%s549_s0 + $0x18] sm:$0xf] }
   0x8   :  { %v398_v20 = vld [vmem:[%s548_s1 + $0x48] sm:$0xff]  ;;  %v287_v23 = vld [vmem:[%s549_s0] sm:$0xf]  ;;  %v387_v26 = vld [vmem:[%s549_s0 + $0x20] sm:$0xf0] }
   0x9   :  { %v384_v24 = vld [vmem:[%s549_s0 + $0x8] sm:$0xf0]  ;;  %v397_v27 = vld [vmem:[%s548_s1 + $0x40] sm:$0xff]  ;;  %v289_v29 = vld [vmem:[%s549_s0 + $0xc] sm:$0xf0]  ;;  %v300_v31 = vor.u32 %v387_v26, %v299_v25 }
   0xa   :  { %210 = vmatpush.bf16.msra.mxu0 %v394_v8  ;;  %420 = vmatpush.bf16.msra.mxu3 %v394_v8  ;;  %v383_v28 = vld [vmem:[%s549_s0 + $0x4] sm:$0xf]  ;;  %v288_v30 = vor.u32 %v384_v24, %v287_v23  ;;  %v386_v33 = vld [vmem:[%s549_s0 + $0x1c] sm:$0xf]  ;;  %v301_v34 = vld [vmem:[%s549_s0 + $0x24] sm:$0xf0] }
   0xb   :  { %229 = vmatpush.bf16.msra.mxu1 %v402_v9  ;;  %381 = vmatmul.msk.bf16.vlgmr.msra.gmra.mxu2 %vm201_vm0, %v296_v10  ;;  %v292_v32 = vor.u32 %v383_v28, %v289_v29  ;;  %v304_v35 = vor.u32 %v386_v33, %v301_v34  ;;  %v426_v37 = vld [vmem:[%s550_s2] ss:$0 sm:$0xff] }
   0xe   :  { %211 = vmatpush.bf16.msra.mxu0 %v393_v11  ;;  %421 = vmatpush.bf16.msra.mxu3 %v393_v11 }
   0xf   :  { %230 = vmatpush.bf16.msra.mxu1 %v401_v12 }
  0x12   :  { %212 = vmatpush.bf16.msra.mxu0 %v392_v13  ;;  %422 = vmatpush.bf16.msra.mxu3 %v392_v13 }
  0x13   :  { %231 = vmatpush.bf16.msra.mxu1 %v400_v14 }
  0x16   :  { %213 = vmatpush.bf16.msra.mxu0 %v391_v15  ;;  %423 = vmatpush.bf16.msra.mxu3 %v391_v15 }
  0x17   :  { %232 = vmatpush.bf16.msra.mxu1 %v399_v16 }
  0x1a   :  { %214 = vmatpush.bf16.msra.mxu0 %v390_v19  ;;  %424 = vmatpush.bf16.msra.mxu3 %v390_v19 }
  0x1b   :  { %233 = vmatpush.bf16.msra.mxu1 %v398_v20  ;;  %382 = vmatmul.msk.bf16.gmra.mxu2 %vm201_vm0, %v308_v21 }
  0x1e   :  { %215 = vmatpush.bf16.msra.mxu0 %v389_v22  ;;  %425 = vmatpush.bf16.msra.mxu3 %v389_v22 }
  0x1f   :  { %234 = vmatpush.bf16.msra.mxu1 %v397_v27 }
  0x21   :  { %216 = vmatmul.bf16.vlgmr.msra.gmra.mxu0 %v288_v30  ;;  %221 = vmatmul.bf16.vlgmr.msra.gmra.mxu3 %v300_v31 }
  0x22   :  { %235 = vmatmul.bf16.vlgmr.msra.gmra.mxu1 %v292_v32 }
  0x32   :  { %240 = vmatmul.bf16.gmra.mxu1 %v304_v35 }
  0x8e   :  { %v255_v36 = vpop.f32.mrf.mxu2 }
  0x96   :  { %v257_v42 = vpop.f32.mrf.mxu2 }
  0x9e   :  { %v217_v38 = vpop.f32.mrf.mxu0  ;;  %v260_v55 = vpop.f32.mrf.mxu2 }
  0x9f   :  { %v218_v39 = vadd.f32 %v426_v37, %v217_v38  ;;  %v236_v40 = vpop.f32.mrf.mxu1 }
  0xa1   :  { %v237_v41 = vadd.f32 %v236_v40, %v218_v39 }
  0xa3   :  { %v256_v44 = vadd.f32 %v255_v36, %v237_v41 }
  0xa4   :  { %v222_v47 = vpop.f32.mrf.mxu3 }
  0xa5   :  { %v265_v49 = vmul.f32 0.1, %v256_v44  ;;  %v223_v52 = vadd.f32 %v426_v37, %v222_v47 }
  0xa6   :  { %v219_v43 = vpop.f32.mrf.mxu0  ;;  %v262_v0 = vpop.f32.mrf.mxu2 }
  0xa7   :  { %v220_v45 = vadd.f32 %v426_v37, %v219_v43  ;;  %v238_v46 = vpop.f32.mrf.mxu1  ;;  %v269_v53 = vmax.f32 %v256_v44, %v265_v49 }
  0xa9   :  { %v239_v48 = vadd.f32 %v238_v46, %v220_v45 }
  0xab   :  { %v258_v50 = vadd.f32 %v257_v42, %v239_v48 }
  0xac   :  { %v224_v59 = vpop.f32.mrf.mxu3 }
  0xad   :  { %v266_v51 = vmul.f32 0.1, %v258_v50  ;;  %v225_v60 = vadd.f32 %v426_v37, %v224_v59 }
  0xaf   :  { %v270_v54 = vmax.f32 %v258_v50, %v266_v51  ;;  %v241_v56 = vpop.f32.mrf.mxu1 }
  0xb0   :  { %v242_v58 = vadd.f32 %v241_v56, %v223_v52 }
  0xb1   :  { %v410_v57 = vpack.c.bf16 %v270_v54, %v269_v53 }
  0xb2   :  { %v261_v61 = vadd.f32 %v260_v55, %v242_v58 }
  0xb3   :  { %411 = vst [vmem:[%s551_s3] sm:$0xff] %v410_v57  }
  0xb4   :  { %v267_v1 = vmul.f32 0.1, %v261_v61 }
  0xb6   :  { %v271_v4 = vmax.f32 %v261_v61, %v267_v1 }
  0xb7   :  { %v243_v62 = vpop.f32.mrf.mxu1 }
  0xb8   :  { %v244_v63 = vadd.f32 %v243_v62, %v225_v60 }
  0xba   :  { %v263_v2 = vadd.f32 %v262_v0, %v244_v63 }
  0xbc   :  { %v268_v3 = vmul.f32 0.1, %v263_v2 }
  0xbe   :  { %v272_v5 = vmax.f32 %v263_v2, %v268_v3 }
  0xc0   :  { %v415_v6 = vpack.c.bf16 %v272_v5, %v271_v4 }
  0xc2   :  { %417 = vst [vmem:[%s551_s3 + $0x8] sm:$0xff] %v415_v6  }

// kernel: darknet_forward.19
= control target key start
LH: loop header
LB: loop body
LE: loop exit
PB: predicated region body
PF: predicated region fallthrough
CT: control target
= control target key end

     0   :  { %vm52_vm0 = vcmask 523264   ;;  %s140_s1 = inlined_call_operand.vmem [shape: bf16[64,128], index: 1, kind: input, shape index: {}]   ;;  %s141_s2 = inlined_call_operand.vmem [shape: f32[1,128], index: 2, kind: input, shape index: {}]   ;;  %s142_s0 = inlined_call_operand.vmem [shape: bf16[8,64], index: 0, kind: input, shape index: {}]   ;;  %s143_s3 = inlined_call_operand.vmem [shape: bf16[8,128], index: 3, kind: output, shape index: {}]  }
   0x1   :  { %v97_v0 = vld [vmem:[%s140_s1 + $0x18] sm:$0xff]  ;;  %v96_v1 = vld [vmem:[%s140_s1 + $0x10] sm:$0xff]  ;;  %v95_v2 = vld [vmem:[%s140_s1 + $0x8] sm:$0xff] }
   0x2   :  { %60 = vmatpush.bf16.msra.mxu0 %v97_v0  ;;  %v94_v3 = vld [vmem:[%s140_s1] sm:$0xff] }
   0x3   :  { %v15_v4 = vld [vmem:[%s142_s0] sm:$0xf] }
   0x4   :  { %v98_v5 = vld [vmem:[%s141_s2] ss:$0 sm:$0xff] }
   0x6   :  { %61 = vmatpush.bf16.msra.mxu0 %v96_v1 }
   0xa   :  { %62 = vmatpush.bf16.msra.mxu0 %v95_v2 }
   0xe   :  { %63 = vmatpush.bf16.msra.mxu0 %v94_v3 }
  0x11   :  { %93 = vmatmul.msk.bf16.vlgmr.msra.gmra.mxu0 %vm52_vm0, %v15_v4 }
  0x8e   :  { %v65_v6 = vpop.f32.mrf.mxu0 }
  0x8f   :  { %v66_v7 = vadd.f32 %v98_v5, %v65_v6 }
  0x91   :  { %v69_v8 = vmul.f32 0.1, %v66_v7 }
  0x93   :  { %v70_v9 = vmax.f32 %v66_v7, %v69_v8 }
  0x95   :  { %v71_v10 = vpack.c.bf16 %v70_v9, %v70_v9 }
  0x96   :  { %v67_v11 = vpop.f32.mrf.mxu0 }
  0x97   :  { %72 = vst [vmem:[%s143_s3] sm:$0xf] %v71_v10 }

// kernel: darknet_forward.17
= control target key start
LH: loop header
LB: loop body
LE: loop exit
PB: predicated region body
PF: predicated region fallthrough
CT: control target
= control target key end

     0   :  { %vm175_vm0 = vcmask 261120   ;;  %s404_s1 = inlined_call_operand.vmem [shape: bf16[288,128], index: 1, kind: input, shape index: {}]   ;;  %s405_s0 = inlined_call_operand.vmem [shape: bf16[8,288], index: 0, kind: input, shape index: {}]   ;;  %s406_s2 = inlined_call_operand.vmem [shape: f32[1,128], index: 2, kind: input, shape index: {}]   ;;  %s407_s3 = inlined_call_operand.vmem [shape: bf16[8,128], index: 3, kind: output, shape index: {}]  }
   0x1   :  { %v306_v0 = vld [vmem:[%s404_s1 + $0x38] sm:$0xff]  ;;  %v305_v2 = vld [vmem:[%s404_s1 + $0x30] sm:$0xff]  ;;  %v316_v4 = vld [vmem:[%s404_s1 + $0x88] sm:$0xff] }
   0x2   :  { %v314_v1 = vld [vmem:[%s404_s1 + $0x78] sm:$0xff]  ;;  %179 = vmatpush.bf16.msra.mxu0 %v306_v0  ;;  %v313_v3 = vld [vmem:[%s404_s1 + $0x70] sm:$0xff]  ;;  %211 = vmatpush.bf16.msra.mxu2 %v316_v4  ;;  %v315_v5 = vld [vmem:[%s404_s1 + $0x80] sm:$0xff] }
   0x3   :  { %192 = vmatpush.bf16.msra.mxu1 %v314_v1  ;;  %v16_v6 = vld [vmem:[%s405_s0 + $0x8] sm:$0xf]  ;;  %v303_v11 = vld [vmem:[%s404_s1 + $0x20] sm:$0xff]  ;;  %v302_v13 = vld [vmem:[%s404_s1 + $0x18] sm:$0xff] }
   0x4   :  { %v61_v7 = vunpack.c.l.b16 %v16_v6  ;;  %v304_v8 = vld [vmem:[%s404_s1 + $0x28] sm:$0xff]  ;;  %v311_v12 = vld [vmem:[%s404_s1 + $0x60] sm:$0xff]  ;;  %v310_v14 = vld [vmem:[%s404_s1 + $0x58] sm:$0xff] }
   0x5   :  { %v312_v9 = vld [vmem:[%s404_s1 + $0x68] sm:$0xff]  ;;  %v301_v15 = vld [vmem:[%s404_s1 + $0x10] sm:$0xff]  ;;  %v15_v19 = vld [vmem:[%s405_s0] sm:$0xff] }
   0x6   :  { %180 = vmatpush.bf16.msra.mxu0 %v305_v2  ;;  %v64_v10 = vpack.c.b16 %v61_v7, %v61_v7  ;;  %212 = vmatpush.bf16.msra.mxu2 %v315_v5  ;;  %v309_v16 = vld [vmem:[%s404_s1 + $0x50] sm:$0xff]  ;;  %v300_v17 = vld [vmem:[%s404_s1 + $0x8] sm:$0xff]  ;;  %v59_v20 = vunpack.c.l.b16 %v15_v19  ;;  %v60_v21 = vunpack.c.h.b16 %v15_v19  ;;  %v299_v22 = vld [vmem:[%s404_s1] sm:$0xff] }
   0x7   :  { %193 = vmatpush.bf16.msra.mxu1 %v313_v3  ;;  %v308_v18 = vld [vmem:[%s404_s1 + $0x48] sm:$0xff]  ;;  %v307_v23 = vld [vmem:[%s404_s1 + $0x40] sm:$0xff] }
   0x8   :  { %v62_v24 = vpack.c.b16 %v59_v20, %v59_v20  ;;  %v63_v25 = vpack.c.b16 %v60_v21, %v60_v21  ;;  %v317_v28 = vld [vmem:[%s406_s2] ss:$0 sm:$0xff] }
   0x9   :  { %298 = vmatmul.msk.bf16.vlgmr.msra.gmra.mxu2 %vm175_vm0, %v64_v10 }
   0xa   :  { %181 = vmatpush.bf16.msra.mxu0 %v304_v8 }
   0xb   :  { %194 = vmatpush.bf16.msra.mxu1 %v312_v9 }
   0xe   :  { %182 = vmatpush.bf16.msra.mxu0 %v303_v11 }
   0xf   :  { %195 = vmatpush.bf16.msra.mxu1 %v311_v12 }
  0x12   :  { %183 = vmatpush.bf16.msra.mxu0 %v302_v13 }
  0x13   :  { %196 = vmatpush.bf16.msra.mxu1 %v310_v14 }
  0x16   :  { %184 = vmatpush.bf16.msra.mxu0 %v301_v15 }
  0x17   :  { %197 = vmatpush.bf16.msra.mxu1 %v309_v16 }
  0x1a   :  { %185 = vmatpush.bf16.msra.mxu0 %v300_v17 }
  0x1b   :  { %198 = vmatpush.bf16.msra.mxu1 %v308_v18 }
  0x1e   :  { %186 = vmatpush.bf16.msra.mxu0 %v299_v22 }
  0x1f   :  { %199 = vmatpush.bf16.msra.mxu1 %v307_v23 }
  0x21   :  { %187 = vmatmul.bf16.vlgmr.msra.gmra.mxu0 %v62_v24 }
  0x22   :  { %200 = vmatmul.bf16.vlgmr.msra.gmra.mxu1 %v63_v25 }
  0x8c   :  { %v214_v26 = vpop.f32.mrf.mxu2 }
  0x94   :  { %v216_v27 = vpop.f32.mrf.mxu2 }
  0x9e   :  { %v188_v29 = vpop.f32.mrf.mxu0 }
  0x9f   :  { %v201_v30 = vpop.f32.mrf.mxu1  ;;  %v189_v31 = vadd.f32 %v317_v28, %v188_v29 }
  0xa1   :  { %v202_v32 = vadd.f32 %v201_v30, %v189_v31 }
  0xa3   :  { %v215_v33 = vadd.f32 %v214_v26, %v202_v32 }
  0xa5   :  { %v218_v34 = vmul.f32 0.1, %v215_v33 }
  0xa6   :  { %v190_v35 = vpop.f32.mrf.mxu0 }
  0xa7   :  { %v203_v36 = vpop.f32.mrf.mxu1  ;;  %v219_v37 = vmax.f32 %v215_v33, %v218_v34 }
  0xa9   :  { %v220_v38 = vpack.c.bf16 %v219_v37, %v219_v37 }
  0xab   :  { %221 = vst [vmem:[%s407_s3] sm:$0xf] %v220_v38 }

// kernel: darknet_forward.18
= control target key start
LH: loop header
LB: loop body
LE: loop exit
PB: predicated region body
PF: predicated region fallthrough
CT: control target
= control target key end

     0   :  { %vm52_vm0 = vcmask 523264   ;;  %s138_s1 = inlined_call_operand.vmem [shape: bf16[64,128], index: 1, kind: input, shape index: {}]   ;;  %s139_s2 = inlined_call_operand.vmem [shape: f32[1,128], index: 2, kind: input, shape index: {}]   ;;  %s140_s0 = inlined_call_operand.vmem [shape: bf16[8,64], index: 0, kind: input, shape index: {}]   ;;  %s141_s3 = inlined_call_operand.vmem [shape: bf16[8,128], index: 3, kind: output, shape index: {}]  }
   0x1   :  { %v95_v0 = vld [vmem:[%s138_s1 + $0x18] sm:$0xff]  ;;  %v94_v1 = vld [vmem:[%s138_s1 + $0x10] sm:$0xff]  ;;  %v93_v2 = vld [vmem:[%s138_s1 + $0x8] sm:$0xff] }
   0x2   :  { %60 = vmatpush.bf16.msra.mxu0 %v95_v0  ;;  %v92_v3 = vld [vmem:[%s138_s1] sm:$0xff] }
   0x3   :  { %v15_v4 = vld [vmem:[%s140_s0] sm:$0xf] }
   0x4   :  { %v96_v5 = vld [vmem:[%s139_s2] ss:$0 sm:$0xff] }
   0x6   :  { %61 = vmatpush.bf16.msra.mxu0 %v94_v1 }
   0xa   :  { %62 = vmatpush.bf16.msra.mxu0 %v93_v2 }
   0xe   :  { %63 = vmatpush.bf16.msra.mxu0 %v92_v3 }
  0x11   :  { %91 = vmatmul.msk.bf16.vlgmr.msra.gmra.mxu0 %vm52_vm0, %v15_v4 }
  0x8e   :  { %v65_v6 = vpop.f32.mrf.mxu0 }
  0x8f   :  { %v66_v7 = vadd.f32 %v96_v5, %v65_v6 }
  0x91   :  { %v69_v8 = vpack.c.bf16 %v66_v7, %v66_v7 }
  0x93   :  { %70 = vst [vmem:[%s141_s3] sm:$0xf] %v69_v8 }
  0x96   :  { %v67_v9 = vpop.f32.mrf.mxu0 }

// kernel: darknet_forward.21
= control target key start
LH: loop header
LB: loop body
LE: loop exit
PB: predicated region body
PF: predicated region fallthrough
CT: control target
= control target key end

     0   :  { %vm49_vm0 = vcmask 261120   ;;  %s164_s1 = inlined_call_operand.vmem [shape: bf16[32,128], index: 1, kind: input, shape index: {}]   ;;  %s165_s2 = inlined_call_operand.vmem [shape: f32[1,128], index: 2, kind: input, shape index: {}]   ;;  %s166_s0 = inlined_call_operand.vmem [shape: bf16[32,32], index: 0, kind: input, shape index: {}]   ;;  %s167_s3 = inlined_call_operand.vmem [shape: bf16[32,128], index: 3, kind: output, shape index: {}]  }
   0x1   :  { %v108_v0 = vld [vmem:[%s164_s1 + $0x8] sm:$0xff]  ;;  %v107_v1 = vld [vmem:[%s164_s1] sm:$0xff] }
   0x2   :  { %62 = vmatpush.bf16.msra.mxu0 %v108_v0  ;;  %120 = vmatpush.bf16.msra.mxu1 %v108_v0  ;;  %v105_v2 = vld [vmem:[%s166_s0] sm:$0xff]  ;;  %v106_v3 = vld [vmem:[%s166_s0 + $0x8] sm:$0xff] }
   0x3   :  { %v122_v6 = vld [vmem:[%s165_s2] ss:$0 sm:$0xff] }
   0x6   :  { %63 = vmatpush.bf16.msra.mxu0 %v107_v1  ;;  %121 = vmatpush.bf16.msra.mxu1 %v107_v1 }
   0x9   :  { %103 = vmatmul.msk.bf16.vlgmr.msra.gmra.mxu0 %vm49_vm0, %v105_v2  ;;  %104 = vmatmul.msk.bf16.vlgmr.msra.gmra.mxu1 %vm49_vm0, %v106_v3 }
  0x86   :  { %v65_v4 = vpop.f32.mrf.mxu0  ;;  %v70_v5 = vpop.f32.mrf.mxu1 }
  0x87   :  { %v66_v9 = vadd.f32 %v122_v6, %v65_v4  ;;  %v71_v10 = vadd.f32 %v122_v6, %v70_v5 }
  0x8e   :  { %v67_v7 = vpop.f32.mrf.mxu0  ;;  %v72_v8 = vpop.f32.mrf.mxu1 }
  0x8f   :  { %v68_v11 = vadd.f32 %v122_v6, %v67_v7  ;;  %v73_v12 = vadd.f32 %v122_v6, %v72_v8 }
  0x91   :  { %v112_v13 = vpack.c.bf16 %v68_v11, %v66_v9  ;;  %v117_v14 = vpack.c.bf16 %v73_v12, %v71_v10 }
  0x93   :  { %113 = vst [vmem:[%s167_s3] sm:$0xff] %v112_v13  }
  0x94   :  { %119 = vst [vmem:[%s167_s3 + $0x8] sm:$0xff] %v117_v14  }

// kernel: darknet_forward.20
= control target key start
LH: loop header
LB: loop body
LE: loop exit
PB: predicated region body
PF: predicated region fallthrough
CT: control target
= control target key end

     0   :  { %vm369_vm0 = vcmask 523264   ;;  %s936_s1 = inlined_call_operand.vmem [shape: bf16[576,128], index: 1, kind: input, shape index: {}]   ;;  %s937_s2 = inlined_call_operand.vmem [shape: f32[1,128], index: 2, kind: input, shape index: {}]   ;;  %s938_s0 = inlined_call_operand.vmem [shape: bf16[32,576], index: 0, kind: input, shape index: {}]   ;;  %s939_s3 = inlined_call_operand.vmem [shape: bf16[32,128], index: 3, kind: output, shape index: {}]  }
   0x1   :  { %v694_v0 = vld [vmem:[%s936_s1 + $0x38] sm:$0xff]  ;;  %v693_v4 = vld [vmem:[%s936_s1 + $0x30] sm:$0xff]  ;;  %v692_v8 = vld [vmem:[%s936_s1 + $0x28] sm:$0xff] }
   0x2   :  { %v702_v1 = vld [vmem:[%s936_s1 + $0x78] sm:$0xff]  ;;  %376 = vmatpush.bf16.msra.mxu0 %v694_v0  ;;  %v701_v5 = vld [vmem:[%s936_s1 + $0x70] sm:$0xff]  ;;  %v700_v9 = vld [vmem:[%s936_s1 + $0x68] sm:$0xff] }
   0x3   :  { %v710_v2 = vld [vmem:[%s936_s1 + $0xb8] sm:$0xff]  ;;  %395 = vmatpush.bf16.msra.mxu1 %v702_v1  ;;  %v709_v6 = vld [vmem:[%s936_s1 + $0xb0] sm:$0xff]  ;;  %v708_v10 = vld [vmem:[%s936_s1 + $0xa8] sm:$0xff] }
   0x4   :  { %v718_v3 = vld [vmem:[%s936_s1 + $0xf8] sm:$0xff]  ;;  %414 = vmatpush.bf16.msra.mxu2 %v710_v2  ;;  %v717_v7 = vld [vmem:[%s936_s1 + $0xf0] sm:$0xff]  ;;  %v716_v11 = vld [vmem:[%s936_s1 + $0xe8] sm:$0xff] }
   0x5   :  { %433 = vmatpush.bf16.msra.mxu3 %v718_v3  ;;  %v691_v12 = vld [vmem:[%s936_s1 + $0x20] sm:$0xff]  ;;  %v690_v16 = vld [vmem:[%s936_s1 + $0x18] sm:$0xff]  ;;  %v689_v20 = vld [vmem:[%s936_s1 + $0x10] sm:$0xff] }
   0x6   :  { %377 = vmatpush.bf16.msra.mxu0 %v693_v4  ;;  %v699_v13 = vld [vmem:[%s936_s1 + $0x60] sm:$0xff]  ;;  %v698_v17 = vld [vmem:[%s936_s1 + $0x58] sm:$0xff]  ;;  %v697_v21 = vld [vmem:[%s936_s1 + $0x50] sm:$0xff] }
   0x7   :  { %396 = vmatpush.bf16.msra.mxu1 %v701_v5  ;;  %v707_v14 = vld [vmem:[%s936_s1 + $0xa0] sm:$0xff]  ;;  %v706_v18 = vld [vmem:[%s936_s1 + $0x98] sm:$0xff]  ;;  %v705_v22 = vld [vmem:[%s936_s1 + $0x90] sm:$0xff] }
   0x8   :  { %415 = vmatpush.bf16.msra.mxu2 %v709_v6  ;;  %v715_v15 = vld [vmem:[%s936_s1 + $0xe0] sm:$0xff]  ;;  %v714_v19 = vld [vmem:[%s936_s1 + $0xd8] sm:$0xff]  ;;  %v713_v23 = vld [vmem:[%s936_s1 + $0xd0] sm:$0xff] }
   0x9   :  { %434 = vmatpush.bf16.msra.mxu3 %v717_v7  ;;  %v688_v24 = vld [vmem:[%s936_s1 + $0x8] sm:$0xff]  ;;  %v687_v28 = vld [vmem:[%s936_s1] sm:$0xff]  ;;  %v679_v33 = vld [vmem:[%s938_s0 + $0x10] sm:$0xf0] }
   0xa   :  { %378 = vmatpush.bf16.msra.mxu0 %v692_v8  ;;  %v696_v25 = vld [vmem:[%s936_s1 + $0x48] sm:$0xff]  ;;  %v695_v29 = vld [vmem:[%s936_s1 + $0x40] sm:$0xff]  ;;  %v495_v35 = vld [vmem:[%s938_s0 + $0x14] sm:$0xf0] }
   0xb   :  { %397 = vmatpush.bf16.msra.mxu1 %v700_v9  ;;  %v704_v26 = vld [vmem:[%s936_s1 + $0x88] sm:$0xff]  ;;  %v703_v30 = vld [vmem:[%s936_s1 + $0x80] sm:$0xff]  ;;  %v680_v37 = vld [vmem:[%s938_s0 + $0x18] sm:$0xf0] }
   0xc   :  { %416 = vmatpush.bf16.msra.mxu2 %v708_v10  ;;  %v712_v27 = vld [vmem:[%s936_s1 + $0xc8] sm:$0xff]  ;;  %v711_v31 = vld [vmem:[%s936_s1 + $0xc0] sm:$0xff]  ;;  %v722_v40 = vld [vmem:[%s936_s1 + $0x118] sm:$0xff] }
   0xd   :  { %435 = vmatpush.bf16.msra.mxu3 %v716_v11  ;;  %v493_v32 = vld [vmem:[%s938_s0] sm:$0xf]  ;;  %v677_v34 = vld [vmem:[%s938_s0 + $0x4] sm:$0xf]  ;;  %v501_v36 = vld [vmem:[%s938_s0 + $0x8] sm:$0xf] }
   0xe   :  { %379 = vmatpush.bf16.msra.mxu0 %v691_v12  ;;  %v678_v38 = vld [vmem:[%s938_s0 + $0xc] sm:$0xf]  ;;  %v503_v39 = vld [vmem:[%s938_s0 + $0x1c] sm:$0xf0]  ;;  %v494_v41 = vor.u32 %v679_v33, %v493_v32  ;;  %v498_v42 = vor.u32 %v677_v34, %v495_v35  ;;  %v502_v43 = vor.u32 %v680_v37, %v501_v36  ;;  %v721_v45 = vld [vmem:[%s936_s1 + $0x110] sm:$0xff] }
   0xf   :  { %398 = vmatpush.bf16.msra.mxu1 %v699_v13  ;;  %v506_v44 = vor.u32 %v678_v38, %v503_v39  ;;  %v720_v46 = vld [vmem:[%s936_s1 + $0x108] sm:$0xff]  ;;  %v719_v47 = vld [vmem:[%s936_s1 + $0x100] sm:$0xff]  ;;  %v684_v49 = vld [vmem:[%s938_s0 + $0x38] sm:$0xf0] }
  0x10   :  { %417 = vmatpush.bf16.msra.mxu2 %v707_v14  ;;  %v513_v48 = vld [vmem:[%s938_s0 + $0x28] sm:$0xf]  ;;  %v682_v50 = vld [vmem:[%s938_s0 + $0x2c] sm:$0xf]  ;;  %v515_v51 = vld [vmem:[%s938_s0 + $0x3c] sm:$0xf0] }
  0x11   :  { %436 = vmatpush.bf16.msra.mxu3 %v715_v15  ;;  %v521_v52 = vld [vmem:[%s938_s0 + $0x30] sm:$0xf]  ;;  %v685_v53 = vld [vmem:[%s938_s0 + $0x40] sm:$0xf0]  ;;  %v683_v54 = vld [vmem:[%s938_s0 + $0x34] sm:$0xf]  ;;  %v514_v56 = vor.u32 %v684_v49, %v513_v48  ;;  %v518_v57 = vor.u32 %v682_v50, %v515_v51 }
  0x12   :  { %380 = vmatpush.bf16.msra.mxu0 %v690_v16  ;;  %v523_v55 = vld [vmem:[%s938_s0 + $0x44] sm:$0xf0]  ;;  %v522_v58 = vor.u32 %v685_v53, %v521_v52  ;;  %v509_v60 = vld [vmem:[%s938_s0 + $0x10] sm:$0xf]  ;;  %v681_v61 = vld [vmem:[%s938_s0 + $0x20] sm:$0xf0] }
  0x13   :  { %399 = vmatpush.bf16.msra.mxu1 %v698_v17  ;;  %v526_v59 = vor.u32 %v683_v54, %v523_v55  ;;  %v529_v62 = vld [vmem:[%s938_s0 + $0x38] sm:$0xf]  ;;  %v686_v63 = vld [vmem:[%s938_s0 + $0x48] sm:$0xf0]  ;;  %v510_v0 = vor.u32 %v681_v61, %v509_v60  ;;  %v738_v12 = vld [vmem:[%s937_s2] ss:$0 sm:$0xff] }
  0x14   :  { %418 = vmatpush.bf16.msra.mxu2 %v706_v18  ;;  %v530_v1 = vor.u32 %v686_v63, %v529_v62 }
  0x15   :  { %437 = vmatpush.bf16.msra.mxu3 %v714_v19 }
  0x16   :  { %381 = vmatpush.bf16.msra.mxu0 %v689_v20 }
  0x17   :  { %400 = vmatpush.bf16.msra.mxu1 %v697_v21 }
  0x18   :  { %419 = vmatpush.bf16.msra.mxu2 %v705_v22 }
  0x19   :  { %438 = vmatpush.bf16.msra.mxu3 %v713_v23 }
  0x1a   :  { %382 = vmatpush.bf16.msra.mxu0 %v688_v24 }
  0x1b   :  { %401 = vmatpush.bf16.msra.mxu1 %v696_v25 }
  0x1c   :  { %420 = vmatpush.bf16.msra.mxu2 %v704_v26 }
  0x1d   :  { %439 = vmatpush.bf16.msra.mxu3 %v712_v27 }
  0x1e   :  { %383 = vmatpush.bf16.msra.mxu0 %v687_v28 }
  0x1f   :  { %402 = vmatpush.bf16.msra.mxu1 %v695_v29 }
  0x20   :  { %421 = vmatpush.bf16.msra.mxu2 %v703_v30 }
  0x21   :  { %440 = vmatpush.bf16.msra.mxu3 %v711_v31  ;;  %384 = vmatmul.bf16.vlgmr.msra.gmra.mxu0 %v494_v41 }
  0x22   :  { %456 = vmatpush.bf16.msrb.mxu0 %v722_v40  ;;  %403 = vmatmul.bf16.vlgmr.msra.gmra.mxu1 %v498_v42 }
  0x23   :  { %734 = vmatpush.bf16.msrb.mxu1 %v722_v40  ;;  %422 = vmatmul.bf16.vlgmr.msra.gmra.mxu2 %v502_v43 }
  0x24   :  { %441 = vmatmul.bf16.vlgmr.msra.gmra.mxu3 %v506_v44 }
  0x26   :  { %457 = vmatpush.bf16.msrb.mxu0 %v721_v45 }
  0x27   :  { %735 = vmatpush.bf16.msrb.mxu1 %v721_v45 }
  0x2a   :  { %458 = vmatpush.bf16.msrb.mxu0 %v720_v46 }
  0x2b   :  { %736 = vmatpush.bf16.msrb.mxu1 %v720_v46 }
  0x2e   :  { %459 = vmatpush.bf16.msrb.mxu0 %v719_v47 }
  0x2f   :  { %737 = vmatpush.bf16.msrb.mxu1 %v719_v47 }
  0x31   :  { %389 = vmatmul.bf16.gmra.mxu0 %v514_v56 }
  0x32   :  { %408 = vmatmul.bf16.gmra.mxu1 %v518_v57 }
  0x33   :  { %427 = vmatmul.bf16.gmra.mxu2 %v522_v58 }
  0x34   :  { %446 = vmatmul.bf16.gmra.mxu3 %v526_v59 }
  0x41   :  { %675 = vmatmul.msk.bf16.vlgmr.msrb.gmra.mxu0 %vm369_vm0, %v510_v0 }
  0x42   :  { %676 = vmatmul.msk.bf16.vlgmr.msrb.gmra.mxu1 %vm369_vm0, %v530_v1 }
  0x9e   :  { %v385_v2 = vpop.f32.mrf.mxu0 }
  0x9f   :  { %v404_v3 = vpop.f32.mrf.mxu1  ;;  %v386_v16 = vadd.f32 %v738_v12, %v385_v2 }
  0xa1   :  { %v405_v19 = vadd.f32 %v404_v3, %v386_v16 }
  0xa6   :  { %v423_v4 = vpop.f32.mrf.mxu2  ;;  %v387_v6 = vpop.f32.mrf.mxu0 }
  0xa7   :  { %v442_v5 = vpop.f32.mrf.mxu3  ;;  %v406_v7 = vpop.f32.mrf.mxu1  ;;  %v388_v20 = vadd.f32 %v738_v12, %v387_v6  ;;  %v424_v23 = vadd.f32 %v423_v4, %v405_v19 }
  0xa9   :  { %v407_v28 = vadd.f32 %v406_v7, %v388_v20  ;;  %v443_v30 = vadd.f32 %v442_v5, %v424_v23 }
  0xae   :  { %v425_v8 = vpop.f32.mrf.mxu2  ;;  %v390_v9 = vpop.f32.mrf.mxu0 }
  0xaf   :  { %v409_v10 = vpop.f32.mrf.mxu1  ;;  %v444_v11 = vpop.f32.mrf.mxu3  ;;  %v391_v17 = vadd.f32 %v738_v12, %v390_v9  ;;  %v426_v31 = vadd.f32 %v425_v8, %v407_v28 }
  0xb1   :  { %v410_v21 = vadd.f32 %v409_v10, %v391_v17  ;;  %v445_v37 = vadd.f32 %v444_v11, %v426_v31 }
  0xb6   :  { %v428_v13 = vpop.f32.mrf.mxu2  ;;  %v392_v14 = vpop.f32.mrf.mxu0 }
  0xb7   :  { %v411_v15 = vpop.f32.mrf.mxu1  ;;  %v447_v18 = vpop.f32.mrf.mxu3  ;;  %v393_v22 = vadd.f32 %v738_v12, %v392_v14  ;;  %v429_v24 = vadd.f32 %v428_v13, %v410_v21 }
  0xb9   :  { %v412_v29 = vadd.f32 %v411_v15, %v393_v22  ;;  %v448_v32 = vadd.f32 %v447_v18, %v429_v24 }
  0xbe   :  { %v430_v25 = vpop.f32.mrf.mxu2  ;;  %v461_v26 = vpop.f32.mrf.mxu0 }
  0xbf   :  { %v466_v27 = vpop.f32.mrf.mxu1  ;;  %v431_v33 = vadd.f32 %v430_v25, %v412_v29  ;;  %v462_v34 = vadd.f32 %v461_v26, %v443_v30  ;;  %v449_v36 = vpop.f32.mrf.mxu3 }
  0xc0   :  { %v467_v35 = vadd.f32 %v466_v27, %v448_v32 }
  0xc1   :  { %v450_v38 = vadd.f32 %v449_v36, %v431_v33  ;;  %v471_v41 = vmul.f32 0.1, %v462_v34 }
  0xc2   :  { %v473_v42 = vmul.f32 0.1, %v467_v35 }
  0xc3   :  { %v475_v47 = vmax.f32 %v462_v34, %v471_v41 }
  0xc4   :  { %v477_v48 = vmax.f32 %v467_v35, %v473_v42 }
  0xc6   :  { %v463_v39 = vpop.f32.mrf.mxu0 }
  0xc7   :  { %v468_v40 = vpop.f32.mrf.mxu1  ;;  %v464_v43 = vadd.f32 %v463_v39, %v445_v37 }
  0xc8   :  { %v469_v44 = vadd.f32 %v468_v40, %v450_v38 }
  0xc9   :  { %v472_v45 = vmul.f32 0.1, %v464_v43 }
  0xca   :  { %v474_v46 = vmul.f32 0.1, %v469_v44 }
  0xcb   :  { %v476_v49 = vmax.f32 %v464_v43, %v472_v45 }
  0xcc   :  { %v478_v50 = vmax.f32 %v469_v44, %v474_v46 }
  0xcd   :  { %v726_v51 = vpack.c.bf16 %v476_v49, %v475_v47 }
  0xce   :  { %v731_v52 = vpack.c.bf16 %v478_v50, %v477_v48 }
  0xcf   :  { %727 = vst [vmem:[%s939_s3] sm:$0xff] %v726_v51  }
  0xd0   :  { %733 = vst [vmem:[%s939_s3 + $0x8] sm:$0xff] %v731_v52  }

</bundles_post_ra>
